<compile_context>
chip_gen: v6e
topology: v6e:2x2x1
jax: 0.10.0
libtpu: 0.0.40
codegen_flags: <defaults>
</compile_context>

<pallas_src>
import functools

import jax
import jax.numpy as jnp
from jax.experimental import pallas as pl
from jax.experimental.pallas import tpu as pltpu

LANE = 128
_VMEM_LIMIT = 32 * 1024 * 1024  # explicit scoped-VMEM cap, safe on v5e/v6e/v7x


def _round_up(x, m):
    return (x + m - 1) // m * m


def _im2col_matmul(xpad, w_ref, H, W):
    """xpad: (1, H+2, W+2, C) f32 value; w_ref: (9*C, Cp) bf16 -> (H*W, Cp) f32.

    Single MXU matmul with K = 9*C instead of nine K=C matmuls.
    """
    C = xpad.shape[-1]
    patches = jnp.concatenate(
        [xpad[:, kh:kh + H, kw:kw + W, :] for kh in range(3) for kw in range(3)],
        axis=-1)                                         # (1, H, W, 9*C)
    p2d = patches.reshape(H * W, 9 * C).astype(jnp.bfloat16)
    return jnp.dot(p2d, w_ref[...], preferred_element_type=jnp.float32)


# ---------------------------------------------------------------------------
# pass A: conv1 + streamed per-channel sum / sumsq
# ---------------------------------------------------------------------------
def _conv1_kernel(x_ref, w_ref, out_ref, s_ref, ss_ref, xpad_s, *, H, W):
    i = pl.program_id(0)

    @pl.when(i == 0)
    def _init():
        s_ref[...] = jnp.zeros_like(s_ref)
        ss_ref[...] = jnp.zeros_like(ss_ref)
        xpad_s[...] = jnp.zeros_like(xpad_s)   # zero halo once; interior rewritten

    # stage the unpadded tile into the zero-bordered scratch ('same' padding)
    xpad_s[:, 1:H + 1, 1:W + 1, :] = x_ref[...].astype(xpad_s.dtype)

    acc = _im2col_matmul(xpad_s[...], w_ref, H, W)          # (H*W, Cp) f32
    out_ref[...] = acc.reshape(out_ref.shape)
    # one-pass biased stats: accumulate sum and sum-of-squares (f32)
    s_ref[...] += jnp.sum(acc, axis=0, keepdims=True)
    ss_ref[...] += jnp.sum(acc * acc, axis=0, keepdims=True)


# ---------------------------------------------------------------------------
# pass B: finalize BN1 (scale/shift) + ReLU on the fly, conv2 + streamed stats
# ---------------------------------------------------------------------------
def _bn_relu_conv2_kernel(raw_ref, s1_ref, ss1_ref, g1_ref, b1_ref, w_ref,
                          out_ref, s_ref, ss_ref, ypad_s, *, H, W, inv_m, eps):
    i = pl.program_id(0)

    @pl.when(i == 0)
    def _init():
        s_ref[...] = jnp.zeros_like(s_ref)
        ss_ref[...] = jnp.zeros_like(ss_ref)
        ypad_s[...] = jnp.zeros_like(ypad_s)

    Cp = s1_ref.shape[-1]

    # BN1 folded into one per-channel FMA: y = x*scale + shift  (f32)
    mean1 = s1_ref[...] * inv_m
    var1 = jnp.maximum(ss1_ref[...] * inv_m - mean1 * mean1, 0.0)
    scale1 = g1_ref[...] * jax.lax.rsqrt(var1 + eps)
    shift1 = b1_ref[...] - mean1 * scale1

    y = raw_ref[...].reshape(H * W, Cp)
    y = jnp.maximum(y * scale1 + shift1, 0.0)               # BN1 + ReLU
    ypad_s[:, 1:H + 1, 1:W + 1, :] = y.reshape(1, H, W, Cp).astype(ypad_s.dtype)

    acc = _im2col_matmul(ypad_s[...], w_ref, H, W)           # (H*W, Cp) f32
    out_ref[...] = acc.reshape(out_ref.shape)
    s_ref[...] += jnp.sum(acc, axis=0, keepdims=True)
    ss_ref[...] += jnp.sum(acc * acc, axis=0, keepdims=True)


# ---------------------------------------------------------------------------
# pass C: finalize BN2 + ReLU (pointwise, lane-dense)
# ---------------------------------------------------------------------------
def _bn_relu_kernel(raw_ref, s_ref, ss_ref, g_ref, b_ref, out_ref, *, inv_m, eps):
    mean = s_ref[...] * inv_m
    var = jnp.maximum(ss_ref[...] * inv_m - mean * mean, 0.0)
    scale = g_ref[...] * jax.lax.rsqrt(var + eps)
    shift = b_ref[...] - mean * scale
    out_ref[...] = jnp.maximum(raw_ref[...] * scale + shift, 0.0)


# ---------------------------------------------------------------------------
# wrapper
# ---------------------------------------------------------------------------
def _prep_conv_weight(w_hwio, ci_pad, co_pad):
    kh, kw, ci, co = w_hwio.shape
    w = jnp.pad(w_hwio, ((0, 0), (0, 0), (0, ci_pad - ci), (0, co_pad - co)))
    return w.reshape(kh * kw * ci_pad, co_pad).astype(jnp.bfloat16)


def _prep_vec(v, cp):
    return jnp.pad(v.astype(jnp.float32), (0, cp - v.shape[0])).reshape(1, cp)


def double_conv(x_nchw, params, *, eps=1e-5):
    """Forward pass of DoubleConv. Input/output are NCHW (PyTorch convention)."""
    x = jnp.transpose(x_nchw, (0, 2, 3, 1)).astype(jnp.float32)    # NCHW -> NHWC
    N, H, W, Ci = x.shape
    Co = params["w1"].shape[-1]
    Cp = _round_up(Co, LANE)          # lane-dense padded channel width
    M = N * H * W                     # BN reduction size (biased, train mode)
    inv_m = 1.0 / M

    w1m = _prep_conv_weight(params["w1"], Ci, Cp)   # (9*Ci, Cp)  bf16
    w2m = _prep_conv_weight(params["w2"], Cp, Cp)   # (9*Cp, Cp)  bf16
    g1, b1 = _prep_vec(params["gamma1"], Cp), _prep_vec(params["beta1"], Cp)
    g2, b2 = _prep_vec(params["gamma2"], Cp), _prep_vec(params["beta2"], Cp)
    # Conv biases are intentionally unused: training-mode BatchNorm subtracts the
    # per-channel mean, which cancels a constant bias exactly (forward-identical).

    vec_spec = pl.BlockSpec((1, Cp), lambda i: (0, 0))
    stat_shape = jax.ShapeDtypeStruct((1, Cp), jnp.float32)

    # ---- pass A: conv1 + streamed sum / sumsq (batch-tiled, 'arbitrary') ----
    conv1_raw, s1, ss1 = pl.pallas_call(
        functools.partial(_conv1_kernel, H=H, W=W),
        grid=(N,),
        in_specs=[
            pl.BlockSpec((1, H, W, Ci), lambda i: (i, 0, 0, 0)),
            pl.BlockSpec((9 * Ci, Cp), lambda i: (0, 0)),
        ],
        out_specs=[
            pl.BlockSpec((1, H, W, Cp), lambda i: (i, 0, 0, 0)),
            vec_spec, vec_spec,
        ],
        out_shape=(jax.ShapeDtypeStruct((N, H, W, Cp), jnp.float32),
                   stat_shape, stat_shape),
        scratch_shapes=[pltpu.VMEM((1, H + 2, W + 2, Ci), jnp.float32)],
        compiler_params=pltpu.CompilerParams(
            dimension_semantics=("arbitrary",),
            vmem_limit_bytes=_VMEM_LIMIT),
    )(x, w1m)

    # ---- pass B: BN1+ReLU applied on the fly, conv2 + streamed sum / sumsq --
    conv2_raw, s2, ss2 = pl.pallas_call(
        functools.partial(_bn_relu_conv2_kernel, H=H, W=W, inv_m=inv_m, eps=eps),
        grid=(N,),
        in_specs=[
            pl.BlockSpec((1, H, W, Cp), lambda i: (i, 0, 0, 0)),
            vec_spec, vec_spec, vec_spec, vec_spec,
            pl.BlockSpec((9 * Cp, Cp), lambda i: (0, 0)),
        ],
        out_specs=[
            pl.BlockSpec((1, H, W, Cp), lambda i: (i, 0, 0, 0)),
            vec_spec, vec_spec,
        ],
        out_shape=(jax.ShapeDtypeStruct((N, H, W, Cp), jnp.float32),
                   stat_shape, stat_shape),
        scratch_shapes=[pltpu.VMEM((1, H + 2, W + 2, Cp), jnp.float32)],
        compiler_params=pltpu.CompilerParams(
            dimension_semantics=("arbitrary",),
            vmem_limit_bytes=_VMEM_LIMIT),
    )(conv1_raw, s1, ss1, g1, b1, w2m)

    # ---- pass C: BN2 + ReLU (pointwise, lane-dense, 'parallel') -------------
    flat = conv2_raw.reshape(M, Cp)
    out_flat = pl.pallas_call(
        functools.partial(_bn_relu_kernel, inv_m=inv_m, eps=eps),
        grid=(N,),
        in_specs=[
            pl.BlockSpec((H * W, Cp), lambda i: (i, 0)),
            vec_spec, vec_spec, vec_spec, vec_spec,
        ],
        out_specs=pl.BlockSpec((H * W, Cp), lambda i: (i, 0)),
        out_shape=jax.ShapeDtypeStruct((M, Cp), jnp.float32),
        compiler_params=pltpu.CompilerParams(
            dimension_semantics=("parallel",),
            vmem_limit_bytes=_VMEM_LIMIT),
    )(flat, s2, ss2, g2, b2)

    out = out_flat.reshape(N, H, W, Cp)[..., :Co]
    return jnp.transpose(out, (0, 3, 1, 2))                  # NHWC -> NCHW
    # TODO(synk): BatchNorm running-mean/var buffer updates (module state
    # mutation) are not represented; only the train-mode forward output is made.


def init_double_conv_params(key, in_channels, out_channels):
    """Deterministic synthetic parameters matching nn.Conv2d/nn.BatchNorm2d shapes."""
    k1, k2, k3, k4 = jax.random.split(key, 4)
    return {
        # conv weights are HWIO (kh, kw, Ci, Co)
        "w1": jax.random.normal(k1, (3, 3, in_channels, out_channels), jnp.float32) * 0.1,
        "b1": jax.random.normal(k2, (out_channels,), jnp.float32) * 0.05,  # cancelled by train-mode BN
        "gamma1": jnp.ones((out_channels,), jnp.float32),
        "beta1": jnp.zeros((out_channels,), jnp.float32),
        "w2": jax.random.normal(k3, (3, 3, out_channels, out_channels), jnp.float32) * 0.1,
        "b2": jax.random.normal(k4, (out_channels,), jnp.float32) * 0.05,  # cancelled by train-mode BN
        "gamma2": jnp.ones((out_channels,), jnp.float32),
        "beta2": jnp.zeros((out_channels,), jnp.float32),
    }


if __name__ == "__main__":
    key = jax.random.PRNGKey(0)
    kx, kp = jax.random.split(key)

    N, C_IN, C_OUT, HW = 2, 4, 8, 16
    x = jax.random.normal(kx, (N, C_IN, HW, HW), jnp.float32)   # NCHW, like PyTorch

    params = init_double_conv_params(kp, C_IN, C_OUT)

    out = jax.jit(double_conv)(x, params)
    out = jax.block_until_ready(out)

    assert out.shape == (N, C_OUT, HW, HW), out.shape
    assert out.dtype == jnp.float32
    print("KERNEL_OK")
</pallas_src>

<mosaic_0001>
module attributes {stable_mosaic.version = 11 : i64} {
  func.func @_bn_relu_conv2_kernel(%arg0: i32, %arg1: memref<1x16x16x128xf32, #tpu.memory_space<vmem>>, %arg2: memref<1x128xf32, #tpu.memory_space<vmem>>, %arg3: memref<1x128xf32, #tpu.memory_space<vmem>>, %arg4: memref<1x128xf32, #tpu.memory_space<vmem>>, %arg5: memref<1x128xf32, #tpu.memory_space<vmem>>, %arg6: memref<1152x128xbf16, #tpu.memory_space<vmem>>, %arg7: memref<1x16x16x128xf32, #tpu.memory_space<vmem>>, %arg8: memref<1x128xf32, #tpu.memory_space<vmem>>, %arg9: memref<1x128xf32, #tpu.memory_space<vmem>>, %arg10: memref<1x18x18x128xf32, #tpu.memory_space<vmem>>) attributes {dimension_semantics = [#tpu.dimension_semantics<arbitrary>], iteration_bounds = array<i64: 2>, scalar_prefetch = 0 : i64, scratch_operands = 1 : i64, tpu.core_type = #tpu.core_type<tc>, window_params = [{transform_indices = @transform_0, window_bounds = array<i64: 1, 16, 16, 128>}, {pipeline_mode = #tpu.pipeline_mode<synchronous>, transform_indices = @transform_1, window_bounds = array<i64: 1, 128>}, {pipeline_mode = #tpu.pipeline_mode<synchronous>, transform_indices = @transform_2, window_bounds = array<i64: 1, 128>}, {pipeline_mode = #tpu.pipeline_mode<synchronous>, transform_indices = @transform_3, window_bounds = array<i64: 1, 128>}, {pipeline_mode = #tpu.pipeline_mode<synchronous>, transform_indices = @transform_4, window_bounds = array<i64: 1, 128>}, {pipeline_mode = #tpu.pipeline_mode<synchronous>, transform_indices = @transform_5, window_bounds = array<i64: 1152, 128>}, {transform_indices = @transform_6, window_bounds = array<i64: 1, 16, 16, 128>}, {pipeline_mode = #tpu.pipeline_mode<synchronous>, transform_indices = @transform_7, window_bounds = array<i64: 1, 128>}, {pipeline_mode = #tpu.pipeline_mode<synchronous>, transform_indices = @transform_8, window_bounds = array<i64: 1, 128>}]} {
    %c0_i32 = arith.constant 0 : i32
    %0 = arith.cmpi eq, %arg0, %c0_i32 : i32
    %1 = arith.extui %0 : i1 to i32
    %c0_i32_0 = arith.constant 0 : i32
    %2 = arith.cmpi ne, %1, %c0_i32_0 : i32
    scf.if %2 {
      %cst_40 = arith.constant 0.000000e+00 : f32
      %59 = vector.broadcast %cst_40 : f32 to vector<1x128xf32>
      %c0_41 = arith.constant 0 : index
      %c0_42 = arith.constant 0 : index
      %60 = vector.load %arg8[%c0_41, %c0_42] : memref<1x128xf32, #tpu.memory_space<vmem>>, vector<1x128xf32>
      tpu.vector_store %arg8[%c0_41, %c0_42], %59 {strides = array<i32>} : memref<1x128xf32, #tpu.memory_space<vmem>>, vector<1x128xf32>,
      %cst_43 = arith.constant 0.000000e+00 : f32
      %61 = vector.broadcast %cst_43 : f32 to vector<1x128xf32>
      %c0_44 = arith.constant 0 : index
      %c0_45 = arith.constant 0 : index
      %62 = vector.load %arg9[%c0_44, %c0_45] : memref<1x128xf32, #tpu.memory_space<vmem>>, vector<1x128xf32>
      tpu.vector_store %arg9[%c0_44, %c0_45], %61 {strides = array<i32>} : memref<1x128xf32, #tpu.memory_space<vmem>>, vector<1x128xf32>,
      %cst_46 = arith.constant 0.000000e+00 : f32
      %63 = vector.broadcast %cst_46 : f32 to vector<1x18x18x128xf32>
      %c0_47 = arith.constant 0 : index
      %c0_48 = arith.constant 0 : index
      %c0_49 = arith.constant 0 : index
      %c0_50 = arith.constant 0 : index
      %64 = vector.load %arg10[%c0_47, %c0_48, %c0_49, %c0_50] : memref<1x18x18x128xf32, #tpu.memory_space<vmem>>, vector<1x18x18x128xf32>
      tpu.vector_store %arg10[%c0_47, %c0_48, %c0_49, %c0_50], %63 {strides = array<i32>} : memref<1x18x18x128xf32, #tpu.memory_space<vmem>>, vector<1x18x18x128xf32>,
    } else {
    }
    %c0 = arith.constant 0 : index
    %c0_1 = arith.constant 0 : index
    %3 = vector.load %arg2[%c0, %c0_1] : memref<1x128xf32, #tpu.memory_space<vmem>>, vector<1x128xf32>
    %cst = arith.constant 0.001953125 : f32
    %4 = vector.broadcast %cst : f32 to vector<1x128xf32>
    %5 = arith.mulf %3, %4 : vector<1x128xf32>
    %c0_2 = arith.constant 0 : index
    %c0_3 = arith.constant 0 : index
    %6 = vector.load %arg3[%c0_2, %c0_3] : memref<1x128xf32, #tpu.memory_space<vmem>>, vector<1x128xf32>
    %cst_4 = arith.constant 0.001953125 : f32
    %7 = vector.broadcast %cst_4 : f32 to vector<1x128xf32>
    %8 = arith.mulf %6, %7 : vector<1x128xf32>
    %9 = arith.mulf %5, %5 : vector<1x128xf32>
    %10 = arith.subf %8, %9 : vector<1x128xf32>
    %cst_5 = arith.constant 0.000000e+00 : f32
    %11 = vector.broadcast %cst_5 : f32 to vector<1x128xf32>
    %12 = arith.maximumf %10, %11 : vector<1x128xf32>
    %c0_6 = arith.constant 0 : index
    %c0_7 = arith.constant 0 : index
    %13 = vector.load %arg4[%c0_6, %c0_7] : memref<1x128xf32, #tpu.memory_space<vmem>>, vector<1x128xf32>
    %cst_8 = arith.constant 9.99999974E-6 : f32
    %14 = vector.broadcast %cst_8 : f32 to vector<1x128xf32>
    %15 = arith.addf %12, %14 : vector<1x128xf32>
    %16 = math.rsqrt %15 : vector<1x128xf32>
    %17 = arith.mulf %13, %16 : vector<1x128xf32>
    %c0_9 = arith.constant 0 : index
    %c0_10 = arith.constant 0 : index
    %18 = vector.load %arg5[%c0_9, %c0_10] : memref<1x128xf32, #tpu.memory_space<vmem>>, vector<1x128xf32>
    %19 = arith.mulf %5, %17 : vector<1x128xf32>
    %20 = arith.subf %18, %19 : vector<1x128xf32>
    %c0_11 = arith.constant 0 : index
    %c0_12 = arith.constant 0 : index
    %c0_13 = arith.constant 0 : index
    %c0_14 = arith.constant 0 : index
    %21 = vector.load %arg1[%c0_11, %c0_12, %c0_13, %c0_14] : memref<1x16x16x128xf32, #tpu.memory_space<vmem>>, vector<1x16x16x128xf32>
    %22 = vector.shape_cast %21 : vector<1x16x16x128xf32> to vector<256x128xf32>
    %23 = vector.broadcast %17 : vector<1x128xf32> to vector<256x128xf32>
    %24 = arith.mulf %22, %23 : vector<256x128xf32>
    %25 = vector.broadcast %20 : vector<1x128xf32> to vector<256x128xf32>
    %26 = arith.addf %24, %25 : vector<256x128xf32>
    %cst_15 = arith.constant 0.000000e+00 : f32
    %27 = vector.broadcast %cst_15 : f32 to vector<256x128xf32>
    %28 = arith.maximumf %26, %27 : vector<256x128xf32>
    %29 = vector.shape_cast %28 : vector<256x128xf32> to vector<1x16x16x128xf32>
    %c0_16 = arith.constant 0 : index
    %c1 = arith.constant 1 : index
    %c1_17 = arith.constant 1 : index
    %c0_18 = arith.constant 0 : index
    %30 = vector.load %arg10[%c0_16, %c1, %c1_17, %c0_18] : memref<1x18x18x128xf32, #tpu.memory_space<vmem>>, vector<1x16x16x128xf32>
    tpu.vector_store %arg10[%c0_16, %c1, %c1_17, %c0_18], %29 {strides = array<i32>} : memref<1x18x18x128xf32, #tpu.memory_space<vmem>>, vector<1x16x16x128xf32>,
    %c0_19 = arith.constant 0 : index
    %c0_20 = arith.constant 0 : index
    %c0_21 = arith.constant 0 : index
    %c0_22 = arith.constant 0 : index
    %31 = vector.load %arg10[%c0_19, %c0_20, %c0_21, %c0_22] : memref<1x18x18x128xf32, #tpu.memory_space<vmem>>, vector<1x18x18x128xf32>
    %32 = vector.extract_strided_slice %31 {offsets = [0, 0, 0, 0], sizes = [1, 16, 16, 128], strides = [1, 1, 1, 1]} : vector<1x18x18x128xf32> to vector<1x16x16x128xf32>
    %33 = vector.extract_strided_slice %31 {offsets = [0, 0, 1, 0], sizes = [1, 16, 16, 128], strides = [1, 1, 1, 1]} : vector<1x18x18x128xf32> to vector<1x16x16x128xf32>
    %34 = vector.extract_strided_slice %31 {offsets = [0, 0, 2, 0], sizes = [1, 16, 16, 128], strides = [1, 1, 1, 1]} : vector<1x18x18x128xf32> to vector<1x16x16x128xf32>
    %35 = vector.extract_strided_slice %31 {offsets = [0, 1, 0, 0], sizes = [1, 16, 16, 128], strides = [1, 1, 1, 1]} : vector<1x18x18x128xf32> to vector<1x16x16x128xf32>
    %36 = vector.extract_strided_slice %31 {offsets = [0, 1, 1, 0], sizes = [1, 16, 16, 128], strides = [1, 1, 1, 1]} : vector<1x18x18x128xf32> to vector<1x16x16x128xf32>
    %37 = vector.extract_strided_slice %31 {offsets = [0, 1, 2, 0], sizes = [1, 16, 16, 128], strides = [1, 1, 1, 1]} : vector<1x18x18x128xf32> to vector<1x16x16x128xf32>
    %38 = vector.extract_strided_slice %31 {offsets = [0, 2, 0, 0], sizes = [1, 16, 16, 128], strides = [1, 1, 1, 1]} : vector<1x18x18x128xf32> to vector<1x16x16x128xf32>
    %39 = vector.extract_strided_slice %31 {offsets = [0, 2, 1, 0], sizes = [1, 16, 16, 128], strides = [1, 1, 1, 1]} : vector<1x18x18x128xf32> to vector<1x16x16x128xf32>
    %40 = vector.extract_strided_slice %31 {offsets = [0, 2, 2, 0], sizes = [1, 16, 16, 128], strides = [1, 1, 1, 1]} : vector<1x18x18x128xf32> to vector<1x16x16x128xf32>
    %41 = tpu.concatenate %32, %33, %34, %35, %36, %37, %38, %39, %40 in 3 : vector<1x16x16x128xf32>, vector<1x16x16x128xf32>, vector<1x16x16x128xf32>, vector<1x16x16x128xf32>, vector<1x16x16x128xf32>, vector<1x16x16x128xf32>, vector<1x16x16x128xf32>, vector<1x16x16x128xf32>, vector<1x16x16x128xf32> -> vector<1x16x16x1152xf32>
    %42 = vector.shape_cast %41 : vector<1x16x16x1152xf32> to vector<256x1152xf32>
    %43 = arith.truncf %42 : vector<256x1152xf32> to vector<256x1152xbf16>
    %c0_23 = arith.constant 0 : index
    %c0_24 = arith.constant 0 : index
    %44 = vector.load %arg6[%c0_23, %c0_24] : memref<1152x128xbf16, #tpu.memory_space<vmem>>, vector<1152x128xbf16>
    %cst_25 = arith.constant dense<0.000000e+00> : vector<256x128xf32>
    %45 = tpu.matmul %43, %44, %cst_25 {dimension_numbers = #tpu.dot_dimension_numbers<[1], [0], [0], [1], [0, 0, 1, 1], [], []>} : vector<256x1152xbf16>, vector<1152x128xbf16>, vector<256x128xf32> -> vector<256x128xf32>
    %46 = vector.shape_cast %45 : vector<256x128xf32> to vector<1x16x16x128xf32>
    %c0_26 = arith.constant 0 : index
    %c0_27 = arith.constant 0 : index
    %c0_28 = arith.constant 0 : index
    %c0_29 = arith.constant 0 : index
    %47 = vector.load %arg7[%c0_26, %c0_27, %c0_28, %c0_29] : memref<1x16x16x128xf32, #tpu.memory_space<vmem>>, vector<1x16x16x128xf32>
    tpu.vector_store %arg7[%c0_26, %c0_27, %c0_28, %c0_29], %46 {strides = array<i32>} : memref<1x16x16x128xf32, #tpu.memory_space<vmem>>, vector<1x16x16x128xf32>,
    %c0_30 = arith.constant 0 : index
    %c0_31 = arith.constant 0 : index
    %48 = vector.load %arg8[%c0_30, %c0_31] : memref<1x128xf32, #tpu.memory_space<vmem>>, vector<1x128xf32>
    %cst_32 = arith.constant dense<0.000000e+00> : vector<128xf32>
    %49 = vector.multi_reduction <add>, %45, %cst_32 [0] : vector<256x128xf32> to vector<128xf32>
    %50 = vector.shape_cast %49 : vector<128xf32> to vector<1x128xf32>
    %51 = arith.addf %48, %50 : vector<1x128xf32>
    %c0_33 = arith.constant 0 : index
    %c0_34 = arith.constant 0 : index
    %52 = vector.load %arg8[%c0_33, %c0_34] : memref<1x128xf32, #tpu.memory_space<vmem>>, vector<1x128xf32>
    tpu.vector_store %arg8[%c0_33, %c0_34], %51 {strides = array<i32>} : memref<1x128xf32, #tpu.memory_space<vmem>>, vector<1x128xf32>,
    %c0_35 = arith.constant 0 : index
    %c0_36 = arith.constant 0 : index
    %53 = vector.load %arg9[%c0_35, %c0_36] : memref<1x128xf32, #tpu.memory_space<vmem>>, vector<1x128xf32>
    %54 = arith.mulf %45, %45 : vector<256x128xf32>
    %cst_37 = arith.constant dense<0.000000e+00> : vector<128xf32>
    %55 = vector.multi_reduction <add>, %54, %cst_37 [0] : vector<256x128xf32> to vector<128xf32>
    %56 = vector.shape_cast %55 : vector<128xf32> to vector<1x128xf32>
    %57 = arith.addf %53, %56 : vector<1x128xf32>
    %c0_38 = arith.constant 0 : index
    %c0_39 = arith.constant 0 : index
    %58 = vector.load %arg9[%c0_38, %c0_39] : memref<1x128xf32, #tpu.memory_space<vmem>>, vector<1x128xf32>
    tpu.vector_store %arg9[%c0_38, %c0_39], %57 {strides = array<i32>} : memref<1x128xf32, #tpu.memory_space<vmem>>, vector<1x128xf32>,
    return
  }
  func.func @transform_0(%arg0: i32) -> (i32, i32, i32, i32) {
    %c0_i32 = arith.constant 0 : i32
    %c0_i32_0 = arith.constant 0 : i32
    %c0_i32_1 = arith.constant 0 : i32
    %c0_i32_2 = arith.constant 0 : i32
    return %arg0, %c0_i32, %c0_i32_0, %c0_i32_1 : i32, i32, i32, i32
  }
  func.func @transform_1(%arg0: i32) -> (i32, i32) {
    %c0_i32 = arith.constant 0 : i32
    %c0_i32_0 = arith.constant 0 : i32
    %c0_i32_1 = arith.constant 0 : i32
    return %c0_i32, %c0_i32_0 : i32, i32
  }
  func.func @transform_2(%arg0: i32) -> (i32, i32) {
    %c0_i32 = arith.constant 0 : i32
    %c0_i32_0 = arith.constant 0 : i32
    %c0_i32_1 = arith.constant 0 : i32
    return %c0_i32, %c0_i32_0 : i32, i32
  }
  func.func @transform_3(%arg0: i32) -> (i32, i32) {
    %c0_i32 = arith.constant 0 : i32
    %c0_i32_0 = arith.constant 0 : i32
    %c0_i32_1 = arith.constant 0 : i32
    return %c0_i32, %c0_i32_0 : i32, i32
  }
  func.func @transform_4(%arg0: i32) -> (i32, i32) {
    %c0_i32 = arith.constant 0 : i32
    %c0_i32_0 = arith.constant 0 : i32
    %c0_i32_1 = arith.constant 0 : i32
    return %c0_i32, %c0_i32_0 : i32, i32
  }
  func.func @transform_5(%arg0: i32) -> (i32, i32) {
    %c0_i32 = arith.constant 0 : i32
    %c0_i32_0 = arith.constant 0 : i32
    %c0_i32_1 = arith.constant 0 : i32
    return %c0_i32, %c0_i32_0 : i32, i32
  }
  func.func @transform_6(%arg0: i32) -> (i32, i32, i32, i32) {
    %c0_i32 = arith.constant 0 : i32
    %c0_i32_0 = arith.constant 0 : i32
    %c0_i32_1 = arith.constant 0 : i32
    %c0_i32_2 = arith.constant 0 : i32
    return %arg0, %c0_i32, %c0_i32_0, %c0_i32_1 : i32, i32, i32, i32
  }
  func.func @transform_7(%arg0: i32) -> (i32, i32) {
    %c0_i32 = arith.constant 0 : i32
    %c0_i32_0 = arith.constant 0 : i32
    %c0_i32_1 = arith.constant 0 : i32
    return %c0_i32, %c0_i32_0 : i32, i32
  }
  func.func @transform_8(%arg0: i32) -> (i32, i32) {
    %c0_i32 = arith.constant 0 : i32
    %c0_i32_0 = arith.constant 0 : i32
    %c0_i32_1 = arith.constant 0 : i32
    return %c0_i32, %c0_i32_0 : i32, i32
  }
}

module attributes {stable_mosaic.version = 11 : i64} {
  func.func @_bn_relu_kernel(%arg0: i32, %arg1: memref<256x128xf32, #tpu.memory_space<vmem>>, %arg2: memref<1x128xf32, #tpu.memory_space<vmem>>, %arg3: memref<1x128xf32, #tpu.memory_space<vmem>>, %arg4: memref<1x128xf32, #tpu.memory_space<vmem>>, %arg5: memref<1x128xf32, #tpu.memory_space<vmem>>, %arg6: memref<256x128xf32, #tpu.memory_space<vmem>>) attributes {dimension_semantics = [#tpu.dimension_semantics<parallel>], iteration_bounds = array<i64: 2>, scalar_prefetch = 0 : i64, scratch_operands = 0 : i64, tpu.core_type = #tpu.core_type<tc>, window_params = [{transform_indices = @transform_0, window_bounds = array<i64: 256, 128>}, {pipeline_mode = #tpu.pipeline_mode<synchronous>, transform_indices = @transform_1, window_bounds = array<i64: 1, 128>}, {pipeline_mode = #tpu.pipeline_mode<synchronous>, transform_indices = @transform_2, window_bounds = array<i64: 1, 128>}, {pipeline_mode = #tpu.pipeline_mode<synchronous>, transform_indices = @transform_3, window_bounds = array<i64: 1, 128>}, {pipeline_mode = #tpu.pipeline_mode<synchronous>, transform_indices = @transform_4, window_bounds = array<i64: 1, 128>}, {transform_indices = @transform_5, window_bounds = array<i64: 256, 128>}]} {
    %c0 = arith.constant 0 : index
    %c0_0 = arith.constant 0 : index
    %0 = vector.load %arg2[%c0, %c0_0] : memref<1x128xf32, #tpu.memory_space<vmem>>, vector<1x128xf32>
    %cst = arith.constant 0.001953125 : f32
    %1 = vector.broadcast %cst : f32 to vector<1x128xf32>
    %2 = arith.mulf %0, %1 : vector<1x128xf32>
    %c0_1 = arith.constant 0 : index
    %c0_2 = arith.constant 0 : index
    %3 = vector.load %arg3[%c0_1, %c0_2] : memref<1x128xf32, #tpu.memory_space<vmem>>, vector<1x128xf32>
    %cst_3 = arith.constant 0.001953125 : f32
    %4 = vector.broadcast %cst_3 : f32 to vector<1x128xf32>
    %5 = arith.mulf %3, %4 : vector<1x128xf32>
    %6 = arith.mulf %2, %2 : vector<1x128xf32>
    %7 = arith.subf %5, %6 : vector<1x128xf32>
    %cst_4 = arith.constant 0.000000e+00 : f32
    %8 = vector.broadcast %cst_4 : f32 to vector<1x128xf32>
    %9 = arith.maximumf %7, %8 : vector<1x128xf32>
    %c0_5 = arith.constant 0 : index
    %c0_6 = arith.constant 0 : index
    %10 = vector.load %arg4[%c0_5, %c0_6] : memref<1x128xf32, #tpu.memory_space<vmem>>, vector<1x128xf32>
    %cst_7 = arith.constant 9.99999974E-6 : f32
    %11 = vector.broadcast %cst_7 : f32 to vector<1x128xf32>
    %12 = arith.addf %9, %11 : vector<1x128xf32>
    %13 = math.rsqrt %12 : vector<1x128xf32>
    %14 = arith.mulf %10, %13 : vector<1x128xf32>
    %c0_8 = arith.constant 0 : index
    %c0_9 = arith.constant 0 : index
    %15 = vector.load %arg5[%c0_8, %c0_9] : memref<1x128xf32, #tpu.memory_space<vmem>>, vector<1x128xf32>
    %16 = arith.mulf %2, %14 : vector<1x128xf32>
    %17 = arith.subf %15, %16 : vector<1x128xf32>
    %c0_10 = arith.constant 0 : index
    %c0_11 = arith.constant 0 : index
    %18 = vector.load %arg1[%c0_10, %c0_11] : memref<256x128xf32, #tpu.memory_space<vmem>>, vector<256x128xf32>
    %19 = vector.broadcast %14 : vector<1x128xf32> to vector<256x128xf32>
    %20 = arith.mulf %18, %19 : vector<256x128xf32>
    %21 = vector.broadcast %17 : vector<1x128xf32> to vector<256x128xf32>
    %22 = arith.addf %20, %21 : vector<256x128xf32>
    %cst_12 = arith.constant 0.000000e+00 : f32
    %23 = vector.broadcast %cst_12 : f32 to vector<256x128xf32>
    %24 = arith.maximumf %22, %23 : vector<256x128xf32>
    %c0_13 = arith.constant 0 : index
    %c0_14 = arith.constant 0 : index
    %25 = vector.load %arg6[%c0_13, %c0_14] : memref<256x128xf32, #tpu.memory_space<vmem>>, vector<256x128xf32>
    tpu.vector_store %arg6[%c0_13, %c0_14], %24 {strides = array<i32>} : memref<256x128xf32, #tpu.memory_space<vmem>>, vector<256x128xf32>,
    return
  }
  func.func @transform_0(%arg0: i32) -> (i32, i32) {
    %c0_i32 = arith.constant 0 : i32
    %c0_i32_0 = arith.constant 0 : i32
    return %arg0, %c0_i32 : i32, i32
  }
  func.func @transform_1(%arg0: i32) -> (i32, i32) {
    %c0_i32 = arith.constant 0 : i32
    %c0_i32_0 = arith.constant 0 : i32
    %c0_i32_1 = arith.constant 0 : i32
    return %c0_i32, %c0_i32_0 : i32, i32
  }
  func.func @transform_2(%arg0: i32) -> (i32, i32) {
    %c0_i32 = arith.constant 0 : i32
    %c0_i32_0 = arith.constant 0 : i32
    %c0_i32_1 = arith.constant 0 : i32
    return %c0_i32, %c0_i32_0 : i32, i32
  }
  func.func @transform_3(%arg0: i32) -> (i32, i32) {
    %c0_i32 = arith.constant 0 : i32
    %c0_i32_0 = arith.constant 0 : i32
    %c0_i32_1 = arith.constant 0 : i32
    return %c0_i32, %c0_i32_0 : i32, i32
  }
  func.func @transform_4(%arg0: i32) -> (i32, i32) {
    %c0_i32 = arith.constant 0 : i32
    %c0_i32_0 = arith.constant 0 : i32
    %c0_i32_1 = arith.constant 0 : i32
    return %c0_i32, %c0_i32_0 : i32, i32
  }
  func.func @transform_5(%arg0: i32) -> (i32, i32) {
    %c0_i32 = arith.constant 0 : i32
    %c0_i32_0 = arith.constant 0 : i32
    return %arg0, %c0_i32 : i32, i32
  }
}

module attributes {stable_mosaic.version = 11 : i64} {
  func.func @_conv1_kernel(%arg0: i32, %arg1: memref<1x16x16x4xf32, #tpu.memory_space<vmem>>, %arg2: memref<36x128xbf16, #tpu.memory_space<vmem>>, %arg3: memref<1x16x16x128xf32, #tpu.memory_space<vmem>>, %arg4: memref<1x128xf32, #tpu.memory_space<vmem>>, %arg5: memref<1x128xf32, #tpu.memory_space<vmem>>, %arg6: memref<1x18x18x4xf32, #tpu.memory_space<vmem>>) attributes {dimension_semantics = [#tpu.dimension_semantics<arbitrary>], iteration_bounds = array<i64: 2>, scalar_prefetch = 0 : i64, scratch_operands = 1 : i64, tpu.core_type = #tpu.core_type<tc>, window_params = [{transform_indices = @transform_0, window_bounds = array<i64: 1, 16, 16, 4>}, {pipeline_mode = #tpu.pipeline_mode<synchronous>, transform_indices = @transform_1, window_bounds = array<i64: 36, 128>}, {transform_indices = @transform_2, window_bounds = array<i64: 1, 16, 16, 128>}, {pipeline_mode = #tpu.pipeline_mode<synchronous>, transform_indices = @transform_3, window_bounds = array<i64: 1, 128>}, {pipeline_mode = #tpu.pipeline_mode<synchronous>, transform_indices = @transform_4, window_bounds = array<i64: 1, 128>}]} {
    %c0_i32 = arith.constant 0 : i32
    %0 = arith.cmpi eq, %arg0, %c0_i32 : i32
    %1 = arith.extui %0 : i1 to i32
    %c0_i32_0 = arith.constant 0 : i32
    %2 = arith.cmpi ne, %1, %c0_i32_0 : i32
    scf.if %2 {
      %cst_27 = arith.constant 0.000000e+00 : f32
      %33 = vector.broadcast %cst_27 : f32 to vector<1x128xf32>
      %c0_28 = arith.constant 0 : index
      %c0_29 = arith.constant 0 : index
      %34 = vector.load %arg4[%c0_28, %c0_29] : memref<1x128xf32, #tpu.memory_space<vmem>>, vector<1x128xf32>
      tpu.vector_store %arg4[%c0_28, %c0_29], %33 {strides = array<i32>} : memref<1x128xf32, #tpu.memory_space<vmem>>, vector<1x128xf32>,
      %cst_30 = arith.constant 0.000000e+00 : f32
      %35 = vector.broadcast %cst_30 : f32 to vector<1x128xf32>
      %c0_31 = arith.constant 0 : index
      %c0_32 = arith.constant 0 : index
      %36 = vector.load %arg5[%c0_31, %c0_32] : memref<1x128xf32, #tpu.memory_space<vmem>>, vector<1x128xf32>
      tpu.vector_store %arg5[%c0_31, %c0_32], %35 {strides = array<i32>} : memref<1x128xf32, #tpu.memory_space<vmem>>, vector<1x128xf32>,
      %cst_33 = arith.constant 0.000000e+00 : f32
      %37 = vector.broadcast %cst_33 : f32 to vector<1x18x18x4xf32>
      %c0_34 = arith.constant 0 : index
      %c0_35 = arith.constant 0 : index
      %c0_36 = arith.constant 0 : index
      %c0_37 = arith.constant 0 : index
      %38 = vector.load %arg6[%c0_34, %c0_35, %c0_36, %c0_37] : memref<1x18x18x4xf32, #tpu.memory_space<vmem>>, vector<1x18x18x4xf32>
      tpu.vector_store %arg6[%c0_34, %c0_35, %c0_36, %c0_37], %37 {strides = array<i32>} : memref<1x18x18x4xf32, #tpu.memory_space<vmem>>, vector<1x18x18x4xf32>,
    } else {
    }
    %c0 = arith.constant 0 : index
    %c0_1 = arith.constant 0 : index
    %c0_2 = arith.constant 0 : index
    %c0_3 = arith.constant 0 : index
    %3 = vector.load %arg1[%c0, %c0_1, %c0_2, %c0_3] : memref<1x16x16x4xf32, #tpu.memory_space<vmem>>, vector<1x16x16x4xf32>
    %c0_4 = arith.constant 0 : index
    %c1 = arith.constant 1 : index
    %c1_5 = arith.constant 1 : index
    %c0_6 = arith.constant 0 : index
    %4 = vector.load %arg6[%c0_4, %c1, %c1_5, %c0_6] : memref<1x18x18x4xf32, #tpu.memory_space<vmem>>, vector<1x16x16x4xf32>
    tpu.vector_store %arg6[%c0_4, %c1, %c1_5, %c0_6], %3 {strides = array<i32>} : memref<1x18x18x4xf32, #tpu.memory_space<vmem>>, vector<1x16x16x4xf32>,
    %c0_7 = arith.constant 0 : index
    %c0_8 = arith.constant 0 : index
    %c0_9 = arith.constant 0 : index
    %c0_10 = arith.constant 0 : index
    %5 = vector.load %arg6[%c0_7, %c0_8, %c0_9, %c0_10] : memref<1x18x18x4xf32, #tpu.memory_space<vmem>>, vector<1x18x18x4xf32>
    %6 = vector.extract_strided_slice %5 {offsets = [0, 0, 0, 0], sizes = [1, 16, 16, 4], strides = [1, 1, 1, 1]} : vector<1x18x18x4xf32> to vector<1x16x16x4xf32>
    %7 = vector.extract_strided_slice %5 {offsets = [0, 0, 1, 0], sizes = [1, 16, 16, 4], strides = [1, 1, 1, 1]} : vector<1x18x18x4xf32> to vector<1x16x16x4xf32>
    %8 = vector.extract_strided_slice %5 {offsets = [0, 0, 2, 0], sizes = [1, 16, 16, 4], strides = [1, 1, 1, 1]} : vector<1x18x18x4xf32> to vector<1x16x16x4xf32>
    %9 = vector.extract_strided_slice %5 {offsets = [0, 1, 0, 0], sizes = [1, 16, 16, 4], strides = [1, 1, 1, 1]} : vector<1x18x18x4xf32> to vector<1x16x16x4xf32>
    %10 = vector.extract_strided_slice %5 {offsets = [0, 1, 1, 0], sizes = [1, 16, 16, 4], strides = [1, 1, 1, 1]} : vector<1x18x18x4xf32> to vector<1x16x16x4xf32>
    %11 = vector.extract_strided_slice %5 {offsets = [0, 1, 2, 0], sizes = [1, 16, 16, 4], strides = [1, 1, 1, 1]} : vector<1x18x18x4xf32> to vector<1x16x16x4xf32>
    %12 = vector.extract_strided_slice %5 {offsets = [0, 2, 0, 0], sizes = [1, 16, 16, 4], strides = [1, 1, 1, 1]} : vector<1x18x18x4xf32> to vector<1x16x16x4xf32>
    %13 = vector.extract_strided_slice %5 {offsets = [0, 2, 1, 0], sizes = [1, 16, 16, 4], strides = [1, 1, 1, 1]} : vector<1x18x18x4xf32> to vector<1x16x16x4xf32>
    %14 = vector.extract_strided_slice %5 {offsets = [0, 2, 2, 0], sizes = [1, 16, 16, 4], strides = [1, 1, 1, 1]} : vector<1x18x18x4xf32> to vector<1x16x16x4xf32>
    %15 = tpu.concatenate %6, %7, %8, %9, %10, %11, %12, %13, %14 in 3 : vector<1x16x16x4xf32>, vector<1x16x16x4xf32>, vector<1x16x16x4xf32>, vector<1x16x16x4xf32>, vector<1x16x16x4xf32>, vector<1x16x16x4xf32>, vector<1x16x16x4xf32>, vector<1x16x16x4xf32>, vector<1x16x16x4xf32> -> vector<1x16x16x36xf32>
    %16 = vector.shape_cast %15 : vector<1x16x16x36xf32> to vector<256x36xf32>
    %17 = arith.truncf %16 : vector<256x36xf32> to vector<256x36xbf16>
    %c0_11 = arith.constant 0 : index
    %c0_12 = arith.constant 0 : index
    %18 = vector.load %arg2[%c0_11, %c0_12] : memref<36x128xbf16, #tpu.memory_space<vmem>>, vector<36x128xbf16>
    %cst = arith.constant dense<0.000000e+00> : vector<256x128xf32>
    %19 = tpu.matmul %17, %18, %cst {dimension_numbers = #tpu.dot_dimension_numbers<[1], [0], [0], [1], [0, 0, 1, 1], [], []>} : vector<256x36xbf16>, vector<36x128xbf16>, vector<256x128xf32> -> vector<256x128xf32>
    %20 = vector.shape_cast %19 : vector<256x128xf32> to vector<1x16x16x128xf32>
    %c0_13 = arith.constant 0 : index
    %c0_14 = arith.constant 0 : index
    %c0_15 = arith.constant 0 : index
    %c0_16 = arith.constant 0 : index
    %21 = vector.load %arg3[%c0_13, %c0_14, %c0_15, %c0_16] : memref<1x16x16x128xf32, #tpu.memory_space<vmem>>, vector<1x16x16x128xf32>
    tpu.vector_store %arg3[%c0_13, %c0_14, %c0_15, %c0_16], %20 {strides = array<i32>} : memref<1x16x16x128xf32, #tpu.memory_space<vmem>>, vector<1x16x16x128xf32>,
    %c0_17 = arith.constant 0 : index
    %c0_18 = arith.constant 0 : index
    %22 = vector.load %arg4[%c0_17, %c0_18] : memref<1x128xf32, #tpu.memory_space<vmem>>, vector<1x128xf32>
    %cst_19 = arith.constant dense<0.000000e+00> : vector<128xf32>
    %23 = vector.multi_reduction <add>, %19, %cst_19 [0] : vector<256x128xf32> to vector<128xf32>
    %24 = vector.shape_cast %23 : vector<128xf32> to vector<1x128xf32>
    %25 = arith.addf %22, %24 : vector<1x128xf32>
    %c0_20 = arith.constant 0 : index
    %c0_21 = arith.constant 0 : index
    %26 = vector.load %arg4[%c0_20, %c0_21] : memref<1x128xf32, #tpu.memory_space<vmem>>, vector<1x128xf32>
    tpu.vector_store %arg4[%c0_20, %c0_21], %25 {strides = array<i32>} : memref<1x128xf32, #tpu.memory_space<vmem>>, vector<1x128xf32>,
    %c0_22 = arith.constant 0 : index
    %c0_23 = arith.constant 0 : index
    %27 = vector.load %arg5[%c0_22, %c0_23] : memref<1x128xf32, #tpu.memory_space<vmem>>, vector<1x128xf32>
    %28 = arith.mulf %19, %19 : vector<256x128xf32>
    %cst_24 = arith.constant dense<0.000000e+00> : vector<128xf32>
    %29 = vector.multi_reduction <add>, %28, %cst_24 [0] : vector<256x128xf32> to vector<128xf32>
    %30 = vector.shape_cast %29 : vector<128xf32> to vector<1x128xf32>
    %31 = arith.addf %27, %30 : vector<1x128xf32>
    %c0_25 = arith.constant 0 : index
    %c0_26 = arith.constant 0 : index
    %32 = vector.load %arg5[%c0_25, %c0_26] : memref<1x128xf32, #tpu.memory_space<vmem>>, vector<1x128xf32>
    tpu.vector_store %arg5[%c0_25, %c0_26], %31 {strides = array<i32>} : memref<1x128xf32, #tpu.memory_space<vmem>>, vector<1x128xf32>,
    return
  }
  func.func @transform_0(%arg0: i32) -> (i32, i32, i32, i32) {
    %c0_i32 = arith.constant 0 : i32
    %c0_i32_0 = arith.constant 0 : i32
    %c0_i32_1 = arith.constant 0 : i32
    %c0_i32_2 = arith.constant 0 : i32
    return %arg0, %c0_i32, %c0_i32_0, %c0_i32_1 : i32, i32, i32, i32
  }
  func.func @transform_1(%arg0: i32) -> (i32, i32) {
    %c0_i32 = arith.constant 0 : i32
    %c0_i32_0 = arith.constant 0 : i32
    %c0_i32_1 = arith.constant 0 : i32
    return %c0_i32, %c0_i32_0 : i32, i32
  }
  func.func @transform_2(%arg0: i32) -> (i32, i32, i32, i32) {
    %c0_i32 = arith.constant 0 : i32
    %c0_i32_0 = arith.constant 0 : i32
    %c0_i32_1 = arith.constant 0 : i32
    %c0_i32_2 = arith.constant 0 : i32
    return %arg0, %c0_i32, %c0_i32_0, %c0_i32_1 : i32, i32, i32, i32
  }
  func.func @transform_3(%arg0: i32) -> (i32, i32) {
    %c0_i32 = arith.constant 0 : i32
    %c0_i32_0 = arith.constant 0 : i32
    %c0_i32_1 = arith.constant 0 : i32
    return %c0_i32, %c0_i32_0 : i32, i32
  }
  func.func @transform_4(%arg0: i32) -> (i32, i32) {
    %c0_i32 = arith.constant 0 : i32
    %c0_i32_0 = arith.constant 0 : i32
    %c0_i32_1 = arith.constant 0 : i32
    return %c0_i32, %c0_i32_0 : i32, i32
  }
}

</mosaic_0001>

<bundles_post_ra>
// kernel: double_conv.5
= control target key start
LH: loop header
LB: loop body
LE: loop exit
PB: predicated region body
PF: predicated region fallthrough
CT: control target
= control target key end

     0   :  { %s529_s18 = smov 0   ;;  %s701_s0 = inlined_call_operand.vmem [shape: f32[512,128], index: 0, kind: input, shape index: {}]   ;;  %s702_s1 = inlined_call_operand.vmem [shape: f32[1,128], index: 1, kind: input, shape index: {}]   ;;  %s703_s2 = inlined_call_operand.vmem [shape: f32[1,128], index: 2, kind: input, shape index: {}]   ;;  %s704_s3 = inlined_call_operand.vmem [shape: f32[1,128], index: 3, kind: input, shape index: {}]   ;;  %s705_s4 = inlined_call_operand.vmem [shape: f32[1,128], index: 4, kind: input, shape index: {}]   ;;  %s706_s5 = inlined_call_operand.vmem [shape: f32[512,128], index: 5, kind: output, shape index: {}]  }
   0x1 LB: > { %s470_s19 = sadd.s32 4294967295, %s497_s18   ;;  %p474_p0 = scmp.ge.s32.totalorder %s497_s18, 1  ;;  %s497_s18 = sphi %s529_s18, %s15_s18  }
   0x2   : > { %p188_p1 = scmp.lt.s32.totalorder %s497_s18, 3 }
   0x4   : > { %p189_p2 = pnand %p474_p0, %p188_p1 }
   0x5   : > { %s475_s24 = sshll.u32 (!%p189_p2), %s470_s19, 5 }
   0x6   : > { %192 = sbr.rel (%p189_p2) target bundleno = 70 (0x46), region = 40  ;;  %p217_p3 = scmp.lt.s32.totalorder (!%p189_p2), %s475_s24, 63 }
   0xb   : > { %v228_v0 = vld [vmem:[%s702_s1] sm:$0x1]  ;;  %s708_s24 = smov (!%p217_p3, %s475_s24), 63  ;;  %v275_v8 = vlaneseq }
   0xc   : > { %v230_v1 = vld [vmem:[%s703_s2] sm:$0x1]  ;;  %v229_v2 = vmul.f32 0.001953125, %v228_v0  ;;  %s476_s25 = sshll.u32 %s708_s24, 3 }
   0xd   : > { %v231_v3 = vmul.f32 0.001953125, %v230_v1  ;;  %v276_v9 = vshrl.u32 %v275_v8, 7  ;;  %s551_s28 = scalar_lea.vmem %s701_s0, %s476_s25  ;;  %v235_v10 = vld [vmem:[%s704_s3] sm:$0x1]  ;;  %s600_s10 = scalar_lea.vmem %s706_s5, %s476_s25 }
   0xe   : > { %v232_v4 = vmul.f32 %v229_v2, %v229_v2  ;;  %v239_v14 = vld [vmem:[%s705_s4] sm:$0x1]  ;;  %v243_v16 = vld [vmem:[%s551_s28 + $0x8] sm:$0xff]  ;;  %v244_v17 = vld [vmem:[%s551_s28 + $0x10] sm:$0xff] }
   0xf   : > { %v277_v11 = vsub.s32 0, %v276_v9  ;;  %v242_v15 = vld [vmem:[%s551_s28] sm:$0xff]  ;;  %v245_v18 = vld [vmem:[%s551_s28 + $0x18] sm:$0xff]  ;;  %v247_v22 = vld [vmem:[%s551_s28 + $0x28] sm:$0xff] }
  0x10   : > { %v233_v5 = vsub.f32 %v231_v3, %v232_v4  ;;  %v246_v19 = vld [vmem:[%s551_s28 + $0x20] sm:$0xff]  ;;  %v248_v23 = vld [vmem:[%s551_s28 + $0x30] sm:$0xff]  ;;  %v249_v24 = vld [vmem:[%s551_s28 + $0x38] sm:$0xff] }
  0x11   : > { %v250_v25 = vld [vmem:[%s551_s28 + $0x40] sm:$0xff]  ;;  %v251_v26 = vld [vmem:[%s551_s28 + $0x48] sm:$0xff]  ;;  %v252_v27 = vld [vmem:[%s551_s28 + $0x50] sm:$0xff] }
  0x12   : > { %v234_v6 = vmax.f32 %v233_v5, 0.0  ;;  %v253_v32 = vld [vmem:[%s551_s28 + $0x58] sm:$0xff]  ;;  %v254_v33 = vld [vmem:[%s551_s28 + $0x60] sm:$0xff]  ;;  %v255_v34 = vld [vmem:[%s551_s28 + $0x68] sm:$0xff] }
  0x13   : > { %v256_v59 = vld [vmem:[%s551_s28 + $0x70] sm:$0xff]  ;;  %v257_v60 = vld [vmem:[%s551_s28 + $0x78] sm:$0xff]  ;;  %v258_v5 = vld [vmem:[%s551_s28 + $0x80] sm:$0xff] }
  0x14   : > { %v236_v7 = vadd.f32 1e-05, %v234_v6 }
  0x16   : > { %489 = vrsqrt.f32 %v236_v7 }
  0x23   : > { %v490_v12 = vpop.eup %489 }
  0x24   : > { %v238_v13 = vmul.f32 %v490_v12, %v235_v10  ;;  %v259_v10 = vld [vmem:[%s551_s28 + $0x88] sm:$0xff]  ;;  %v261_v12 = vld [vmem:[%s551_s28 + $0x98] sm:$0xff] }
  0x26   : > { %v240_v20 = vmul.f32 %v238_v13, %v229_v2  ;;  %v564_v21 = vrot.slane %v238_v13, %v277_v11 }
  0x28   : > { %v241_v28 = vsub.f32 %v239_v14, %v240_v20  ;;  %v280_v29 = vmul.f32 %v564_v21, %v242_v15  ;;  %v281_v30 = vmul.f32 %v564_v21, %v243_v16  ;;  %v282_v31 = vmul.f32 %v564_v21, %v244_v17  ;;  %v262_v17 = vld [vmem:[%s551_s28 + $0xa0] sm:$0xff] }
  0x29   : > { %v283_v35 = vmul.f32 %v564_v21, %v245_v18  ;;  %v284_v36 = vmul.f32 %v564_v21, %v246_v19  ;;  %v285_v37 = vmul.f32 %v564_v21, %v247_v22  ;;  %v286_v38 = vmul.f32 %v564_v21, %v248_v23  ;;  %v263_v18 = vld [vmem:[%s551_s28 + $0xa8] sm:$0xff] }
  0x2a   : > { %v582_v39 = vrot.slane %v241_v28, %v277_v11  ;;  %v287_v40 = vmul.f32 %v564_v21, %v249_v24  ;;  %v288_v41 = vmul.f32 %v564_v21, %v250_v25  ;;  %v289_v42 = vmul.f32 %v564_v21, %v251_v26  ;;  %v260_v11 = vld [vmem:[%s551_s28 + $0x90] sm:$0xff] }
  0x2b   : > { %v290_v43 = vmul.f32 %v564_v21, %v252_v27  ;;  %v291_v44 = vmul.f32 %v564_v21, %v253_v32  ;;  %v292_v45 = vmul.f32 %v564_v21, %v254_v33  ;;  %v293_v46 = vmul.f32 %v564_v21, %v255_v34  ;;  %v264_v28 = vld [vmem:[%s551_s28 + $0xb0] sm:$0xff] }
  0x2c   : > { %v318_v47 = vadd.f32 %v582_v39, %v280_v29  ;;  %v319_v48 = vadd.f32 %v582_v39, %v281_v30  ;;  %v320_v49 = vadd.f32 %v582_v39, %v282_v31  ;;  %v321_v50 = vadd.f32 %v582_v39, %v283_v35  ;;  %v265_v29 = vld [vmem:[%s551_s28 + $0xb8] sm:$0xff] }
  0x2d   : > { %v322_v51 = vadd.f32 %v582_v39, %v284_v36  ;;  %v323_v52 = vadd.f32 %v582_v39, %v285_v37  ;;  %v324_v53 = vadd.f32 %v582_v39, %v286_v38  ;;  %v325_v54 = vadd.f32 %v582_v39, %v287_v40  ;;  %v266_v38 = vld [vmem:[%s551_s28 + $0xc0] sm:$0xff] }
  0x2e   : > { %v350_v55 = vmax.f32 %v318_v47, 0.0  ;;  %v351_v56 = vmax.f32 %v319_v48, 0.0  ;;  %v352_v57 = vmax.f32 %v320_v49, 0.0  ;;  %v353_v58 = vmax.f32 %v321_v50, 0.0 }
  0x2f   : > { %v354_v61 = vmax.f32 %v322_v51, 0.0  ;;  %v355_v62 = vmax.f32 %v323_v52, 0.0  ;;  %v356_v63 = vmax.f32 %v324_v53, 0.0  ;;  %v357_v0 = vmax.f32 %v325_v54, 0.0  ;;  %v270_v51 = vld [vmem:[%s551_s28 + $0xe0] sm:$0xff]  ;;  %v271_v52 = vld [vmem:[%s551_s28 + $0xe8] sm:$0xff] }
  0x30   : > { %382 = vst [vmem:[%s600_s10] sm:$0xff] %v350_v55  ;;  %383 = vst [vmem:[%s600_s10 + $0x8] sm:$0xff] %v351_v56  ;;  %v326_v1 = vadd.f32 %v582_v39, %v288_v41  ;;  %v327_v2 = vadd.f32 %v582_v39, %v289_v42  ;;  %v328_v3 = vadd.f32 %v582_v39, %v290_v43 }
  0x31   : > { %384 = vst [vmem:[%s600_s10 + $0x10] sm:$0xff] %v352_v57  ;;  %385 = vst [vmem:[%s600_s10 + $0x18] sm:$0xff] %v353_v58  ;;  %v329_v4 = vadd.f32 %v582_v39, %v291_v44  ;;  %v330_v6 = vadd.f32 %v582_v39, %v292_v45  ;;  %v331_v7 = vadd.f32 %v582_v39, %v293_v46  ;;  %v267_v44 = vld [vmem:[%s551_s28 + $0xc8] sm:$0xff]  ;;  %v268_v45 = vld [vmem:[%s551_s28 + $0xd0] sm:$0xff] }
  0x32   : > { %386 = vst [vmem:[%s600_s10 + $0x20] sm:$0xff] %v354_v61  ;;  %387 = vst [vmem:[%s600_s10 + $0x28] sm:$0xff] %v355_v62  ;;  %v294_v8 = vmul.f32 %v564_v21, %v256_v59  ;;  %v295_v9 = vmul.f32 %v564_v21, %v257_v60  ;;  %v358_v13 = vmax.f32 %v326_v1, 0.0  ;;  %v359_v14 = vmax.f32 %v327_v2, 0.0  ;;  %v269_v46 = vld [vmem:[%s551_s28 + $0xd8] sm:$0xff]  ;;  %v272_v61 = vld [vmem:[%s551_s28 + $0xf0] sm:$0xff] }
  0x33   : > { %388 = vst [vmem:[%s600_s10 + $0x30] sm:$0xff] %v356_v63  ;;  %389 = vst [vmem:[%s600_s10 + $0x38] sm:$0xff] %v357_v0  ;;  %v360_v15 = vmax.f32 %v328_v3, 0.0  ;;  %v361_v16 = vmax.f32 %v329_v4, 0.0  ;;  %v362_v19 = vmax.f32 %v330_v6, 0.0  ;;  %v363_v20 = vmax.f32 %v331_v7, 0.0 }
  0x34   : > { %v332_v22 = vadd.f32 %v582_v39, %v294_v8  ;;  %v333_v23 = vadd.f32 %v582_v39, %v295_v9  ;;  %390 = vst [vmem:[%s600_s10 + $0x40] sm:$0xff] %v358_v13  ;;  %391 = vst [vmem:[%s600_s10 + $0x48] sm:$0xff] %v359_v14  ;;  %v296_v24 = vmul.f32 %v564_v21, %v258_v5  ;;  %v273_v62 = vld [vmem:[%s551_s28 + $0xf8] sm:$0xff] }
  0x35   : > { %392 = vst [vmem:[%s600_s10 + $0x50] sm:$0xff] %v360_v15  ;;  %393 = vst [vmem:[%s600_s10 + $0x58] sm:$0xff] %v361_v16  ;;  %v297_v25 = vmul.f32 %v564_v21, %v259_v10  ;;  %v298_v26 = vmul.f32 %v564_v21, %v260_v11  ;;  %v299_v27 = vmul.f32 %v564_v21, %v261_v12 }
  0x36   : > { %394 = vst [vmem:[%s600_s10 + $0x60] sm:$0xff] %v362_v19  ;;  %395 = vst [vmem:[%s600_s10 + $0x68] sm:$0xff] %v363_v20  ;;  %v364_v30 = vmax.f32 %v332_v22, 0.0  ;;  %v365_v31 = vmax.f32 %v333_v23, 0.0  ;;  %v300_v32 = vmul.f32 %v564_v21, %v262_v17  ;;  %v301_v33 = vmul.f32 %v564_v21, %v263_v18 }
  0x37   : > { %v334_v34 = vadd.f32 %v582_v39, %v296_v24  ;;  %v335_v35 = vadd.f32 %v582_v39, %v297_v25  ;;  %v336_v36 = vadd.f32 %v582_v39, %v298_v26  ;;  %v337_v37 = vadd.f32 %v582_v39, %v299_v27 }
  0x38   : > { %396 = vst [vmem:[%s600_s10 + $0x70] sm:$0xff] %v364_v30  ;;  %397 = vst [vmem:[%s600_s10 + $0x78] sm:$0xff] %v365_v31  ;;  %v338_v40 = vadd.f32 %v582_v39, %v300_v32  ;;  %v339_v41 = vadd.f32 %v582_v39, %v301_v33  ;;  %v302_v42 = vmul.f32 %v564_v21, %v264_v28 }
  0x39   : > { %v303_v43 = vmul.f32 %v564_v21, %v265_v29  ;;  %v366_v47 = vmax.f32 %v334_v34, 0.0  ;;  %v367_v48 = vmax.f32 %v335_v35, 0.0  ;;  %v368_v49 = vmax.f32 %v336_v36, 0.0 }
  0x3a   : > { %v369_v50 = vmax.f32 %v337_v37, 0.0  ;;  %v370_v53 = vmax.f32 %v338_v40, 0.0  ;;  %v371_v54 = vmax.f32 %v339_v41, 0.0  ;;  %v340_v55 = vadd.f32 %v582_v39, %v302_v42 }
  0x3b   : > { %v341_v56 = vadd.f32 %v582_v39, %v303_v43  ;;  %398 = vst [vmem:[%s600_s10 + $0x80] sm:$0xff] %v366_v47  ;;  %399 = vst [vmem:[%s600_s10 + $0x88] sm:$0xff] %v367_v48  ;;  %v304_v57 = vmul.f32 %v564_v21, %v266_v38  ;;  %v305_v58 = vmul.f32 %v564_v21, %v267_v44 }
  0x3c   : > { %400 = vst [vmem:[%s600_s10 + $0x90] sm:$0xff] %v368_v49  ;;  %401 = vst [vmem:[%s600_s10 + $0x98] sm:$0xff] %v369_v50  ;;  %v306_v59 = vmul.f32 %v564_v21, %v268_v45  ;;  %v307_v60 = vmul.f32 %v564_v21, %v269_v46  ;;  %v372_v63 = vmax.f32 %v340_v55, 0.0  ;;  %v308_v1 = vmul.f32 %v564_v21, %v270_v51 }
  0x3d   : > { %402 = vst [vmem:[%s600_s10 + $0xa0] sm:$0xff] %v370_v53  ;;  %403 = vst [vmem:[%s600_s10 + $0xa8] sm:$0xff] %v371_v54  ;;  %v373_v0 = vmax.f32 %v341_v56, 0.0  ;;  %v309_v2 = vmul.f32 %v564_v21, %v271_v52  ;;  %v342_v3 = vadd.f32 %v582_v39, %v304_v57  ;;  %v343_v4 = vadd.f32 %v582_v39, %v305_v58 }
  0x3e   : > { %v344_v5 = vadd.f32 %v582_v39, %v306_v59  ;;  %v345_v6 = vadd.f32 %v582_v39, %v307_v60  ;;  %404 = vst [vmem:[%s600_s10 + $0xb0] sm:$0xff] %v372_v63  ;;  %v346_v7 = vadd.f32 %v582_v39, %v308_v1  ;;  %v310_v9 = vmul.f32 %v564_v21, %v272_v61 }
  0x3f   : > { %405 = vst [vmem:[%s600_s10 + $0xb8] sm:$0xff] %v373_v0  ;;  %v347_v8 = vadd.f32 %v582_v39, %v309_v2  ;;  %v311_v10 = vmul.f32 %v564_v21, %v273_v62  ;;  %v374_v11 = vmax.f32 %v342_v3, 0.0  ;;  %v375_v12 = vmax.f32 %v343_v4, 0.0 }
  0x40   : > { %v376_v13 = vmax.f32 %v344_v5, 0.0  ;;  %v377_v14 = vmax.f32 %v345_v6, 0.0  ;;  %v378_v15 = vmax.f32 %v346_v7, 0.0  ;;  %v348_v17 = vadd.f32 %v582_v39, %v310_v9 }
  0x41   : > { %v379_v16 = vmax.f32 %v347_v8, 0.0  ;;  %v349_v18 = vadd.f32 %v582_v39, %v311_v10  ;;  %406 = vst [vmem:[%s600_s10 + $0xc0] sm:$0xff] %v374_v11  ;;  %407 = vst [vmem:[%s600_s10 + $0xc8] sm:$0xff] %v375_v12 }
  0x42   : > { %408 = vst [vmem:[%s600_s10 + $0xd0] sm:$0xff] %v376_v13  ;;  %409 = vst [vmem:[%s600_s10 + $0xd8] sm:$0xff] %v377_v14  ;;  %v380_v19 = vmax.f32 %v348_v17, 0.0 }
  0x43   : > { %410 = vst [vmem:[%s600_s10 + $0xe0] sm:$0xff] %v378_v15  ;;  %411 = vst [vmem:[%s600_s10 + $0xe8] sm:$0xff] %v379_v16  ;;  %v381_v21 = vmax.f32 %v349_v18, 0.0 }
  0x44   : > { %412 = vst [vmem:[%s600_s10 + $0xf0] sm:$0xff] %v380_v19 }
  0x45   : > { %413 = vst [vmem:[%s600_s10 + $0xf8] sm:$0xff] %v381_v21 }
  0x46 PF: > { %s15_s18 = sadd.s32 1, %s497_s18  }
  0x47   : > { %p12_p4 = scmp.ge.s32.totalorder %s15_s18, 4  }
  0x49   :  { %14 = sbr.rel (!%p12_p4) target bundleno = 1 (0x1), region = 70 }

// kernel: double_conv.4
= control target key start
LH: loop header
LB: loop body
LE: loop exit
PB: predicated region body
PF: predicated region fallthrough
CT: control target
= control target key end

     0   :  { %s3316_s27 = smov 0   ;;  %s4662_s0 = inlined_call_operand.vmem [shape: f32[2,16,16,128], index: 0, kind: input, shape index: {}]   ;;  %s4663_s1 = inlined_call_operand.vmem [shape: f32[1,128], index: 1, kind: input, shape index: {}]   ;;  %s4664_s2 = inlined_call_operand.vmem [shape: f32[1,128], index: 2, kind: input, shape index: {}]   ;;  %s4665_s3 = inlined_call_operand.vmem [shape: f32[1,128], index: 3, kind: input, shape index: {}]   ;;  %s4666_s4 = inlined_call_operand.vmem [shape: f32[1,128], index: 4, kind: input, shape index: {}]   ;;  %s4667_s5 = inlined_call_operand.vmem [shape: bf16[1152,128], index: 5, kind: input, shape index: {}]   ;;  %s4668_s6 = inlined_call_operand.vmem [shape: f32[2,16,16,128], index: 6, kind: output, shape index: {0}]   ;;  %s4669_s7 = inlined_call_operand.vmem [shape: f32[1,128], index: 7, kind: output, shape index: {1}]   ;;  %s4670_s8 = inlined_call_operand.vmem [shape: f32[1,128], index: 8, kind: output, shape index: {2}]  }
   0x1 LB: > { %s2557_s28 = sadd.s32 4294967295, %s3268_s27   ;;  %p2561_p0 = scmp.ge.s32.totalorder %s3268_s27, 1  ;;  %s3268_s27 = sphi %s3316_s27, %s19_s27  }
   0x2   : > { %p257_p1 = scmp.lt.s32.totalorder %s3268_s27, 3 }
   0x4   : > { %p258_p2 = pnand %p2561_p0, %p257_p1 }
   0x6   : > { %261 = sbr.rel (%p258_p2) target bundleno = 611 (0x263), region = 44 }
   0xb   : > { %p291_p3 = scmp.lt.s32.totalorder %s2557_s28, 1  ;;  %p2566_p4 = scmp.ne.s32.totalorder %s2557_s28, 0 }
   0xd   : > { %s292_s29 = scalar_select %p291_p3, %s2557_s28, 1 }
   0xe   : > { %305 = sbr.rel (%p2566_p4) target bundleno = 48 (0x30), region = 48 }
   0xf   : > { %s2641_s30 = sshll.u32 %s292_s29, 8 }
  0x10   : > { %s3327_s11 = scalar_lea.vmem %s4662_s0, %s2641_s30  ;;  %s3332_s14 = scalar_lea.vmem %s4668_s6, %s2641_s30 }
  0x13   : > { %v3270_v0 = vmov 0.0  }
  0x14   : > { %306 = vst [vmem:[%s4669_s7] sm:$0x1] %v3270_v0  ;;  %307 = vst [vmem:[%s4670_s8] sm:$0x1] %v3270_v0 }
  0x15   : > { %308 = vst [vmem:[#allocation2] sm:$0xff] %v3270_v0  ;;  %309 = vst [vmem:[#allocation2 + $0x8] sm:$0xff] %v3270_v0 }
  0x16   : > { %310 = vst [vmem:[#allocation2 + $0x10] sm:$0x3] %v3270_v0  ;;  %311 = vst [vmem:[#allocation2 + $0x18] sm:$0xff] %v3270_v0 }
  0x17   : > { %312 = vst [vmem:[#allocation2 + $0x20] sm:$0xff] %v3270_v0  ;;  %313 = vst [vmem:[#allocation2 + $0x28] sm:$0x3] %v3270_v0 }
  0x18   : > { %314 = vst [vmem:[#allocation2 + $0x30] sm:$0xff] %v3270_v0  ;;  %315 = vst [vmem:[#allocation2 + $0x38] sm:$0xff] %v3270_v0 }
  0x19   : > { %316 = vst [vmem:[#allocation2 + $0x40] sm:$0x3] %v3270_v0  ;;  %317 = vst [vmem:[#allocation2 + $0x48] sm:$0xff] %v3270_v0 }
  0x1a   : > { %318 = vst [vmem:[#allocation2 + $0x50] sm:$0xff] %v3270_v0  ;;  %319 = vst [vmem:[#allocation2 + $0x58] sm:$0x3] %v3270_v0 }
  0x1b   : > { %320 = vst [vmem:[#allocation2 + $0x60] sm:$0xff] %v3270_v0  ;;  %321 = vst [vmem:[#allocation2 + $0x68] sm:$0xff] %v3270_v0 }
  0x1c   : > { %322 = vst [vmem:[#allocation2 + $0x70] sm:$0x3] %v3270_v0  ;;  %323 = vst [vmem:[#allocation2 + $0x78] sm:$0xff] %v3270_v0 }
  0x1d   : > { %324 = vst [vmem:[#allocation2 + $0x80] sm:$0xff] %v3270_v0  ;;  %325 = vst [vmem:[#allocation2 + $0x88] sm:$0x3] %v3270_v0 }
  0x1e   : > { %326 = vst [vmem:[#allocation2 + $0x90] sm:$0xff] %v3270_v0  ;;  %327 = vst [vmem:[#allocation2 + $0x98] sm:$0xff] %v3270_v0 }
  0x1f   : > { %328 = vst [vmem:[#allocation2 + $0xa0] sm:$0x3] %v3270_v0  ;;  %329 = vst [vmem:[#allocation2 + $0xa8] sm:$0xff] %v3270_v0 }
  0x20   : > { %330 = vst [vmem:[#allocation2 + $0xb0] sm:$0xff] %v3270_v0  ;;  %331 = vst [vmem:[#allocation2 + $0xb8] sm:$0x3] %v3270_v0 }
  0x21   : > { %332 = vst [vmem:[#allocation2 + $0xc0] sm:$0xff] %v3270_v0  ;;  %333 = vst [vmem:[#allocation2 + $0xc8] sm:$0xff] %v3270_v0 }
  0x22   : > { %334 = vst [vmem:[#allocation2 + $0xd0] sm:$0x3] %v3270_v0  ;;  %335 = vst [vmem:[#allocation2 + $0xd8] sm:$0xff] %v3270_v0 }
  0x23   : > { %336 = vst [vmem:[#allocation2 + $0xe0] sm:$0xff] %v3270_v0  ;;  %337 = vst [vmem:[#allocation2 + $0xe8] sm:$0x3] %v3270_v0 }
  0x24   : > { %338 = vst [vmem:[#allocation2 + $0xf0] sm:$0xff] %v3270_v0  ;;  %339 = vst [vmem:[#allocation2 + $0xf8] sm:$0xff] %v3270_v0 }
  0x25   : > { %340 = vst [vmem:[#allocation2 + $0x100] sm:$0x3] %v3270_v0  ;;  %341 = vst [vmem:[#allocation2 + $0x108] sm:$0xff] %v3270_v0 }
  0x26   : > { %342 = vst [vmem:[#allocation2 + $0x110] sm:$0xff] %v3270_v0  ;;  %343 = vst [vmem:[#allocation2 + $0x118] sm:$0x3] %v3270_v0 }
  0x27   : > { %344 = vst [vmem:[#allocation2 + $0x120] sm:$0xff] %v3270_v0  ;;  %345 = vst [vmem:[#allocation2 + $0x128] sm:$0xff] %v3270_v0 }
  0x28   : > { %346 = vst [vmem:[#allocation2 + $0x130] sm:$0x3] %v3270_v0  ;;  %347 = vst [vmem:[#allocation2 + $0x138] sm:$0xff] %v3270_v0 }
  0x29   : > { %348 = vst [vmem:[#allocation2 + $0x140] sm:$0xff] %v3270_v0  ;;  %349 = vst [vmem:[#allocation2 + $0x148] sm:$0x3] %v3270_v0 }
  0x2a   : > { %350 = vst [vmem:[#allocation2 + $0x150] sm:$0xff] %v3270_v0  ;;  %351 = vst [vmem:[#allocation2 + $0x158] sm:$0xff] %v3270_v0 }
  0x2b   : > { %352 = vst [vmem:[#allocation2 + $0x160] sm:$0x3] %v3270_v0  ;;  %353 = vst [vmem:[#allocation2 + $0x168] sm:$0xff] %v3270_v0 }
  0x2c   : > { %354 = vst [vmem:[#allocation2 + $0x170] sm:$0xff] %v3270_v0  ;;  %355 = vst [vmem:[#allocation2 + $0x178] sm:$0x3] %v3270_v0 }
  0x2d   : > { %356 = vst [vmem:[#allocation2 + $0x180] sm:$0xff] %v3270_v0  ;;  %357 = vst [vmem:[#allocation2 + $0x188] sm:$0xff] %v3270_v0 }
  0x2e   : > { %358 = vst [vmem:[#allocation2 + $0x190] sm:$0x3] %v3270_v0  ;;  %359 = vst [vmem:[#allocation2 + $0x198] sm:$0xff] %v3270_v0 }
  0x2f   : > { %360 = vst [vmem:[#allocation2 + $0x1a0] sm:$0xff] %v3270_v0  ;;  %361 = vst [vmem:[#allocation2 + $0x1a8] sm:$0x3] %v3270_v0 }
  0x30 PF: > { %v3188_v1 = vld [vmem:[%s4667_s5 + $0x78] sm:$0xff]   ;;  %v3190_v3 = vld [vmem:[%s4667_s5 + $0x70] sm:$0xff]   ;;  %v3192_v5 = vld [vmem:[%s4667_s5 + $0x68] sm:$0xff]   ;;  %vm651_vm0 = vcmask 1046528   ;;  %vm764_vm1 = vcmask 1045504   ;;  %v409_v44 = vlaneseq }
  0x31   : > { %v3189_v2 = vld [vmem:[%s4667_s5 + $0x38] sm:$0xff]   ;;  %2643 = vmatprep.subr.bf16.mxu0 %v3188_v1  ;;  %3163 = vmatprep.subr.bf16.mxu1 %v3188_v1  ;;  %v3191_v4 = vld [vmem:[%s4667_s5 + $0x30] sm:$0xff]   ;;  %v3193_v6 = vld [vmem:[%s4667_s5 + $0x28] sm:$0xff]  }
  0x32   : > { %2644 = vmatpush3.bf16.msra.mxu0 %v3189_v2  ;;  %3171 = vmatpush3.bf16.msra.mxu1 %v3189_v2  ;;  %v3194_v7 = vld [vmem:[%s4667_s5 + $0x60] sm:$0xff]   ;;  %v3196_v9 = vld [vmem:[%s4667_s5 + $0x58] sm:$0xff]   ;;  %v3198_v11 = vld [vmem:[%s4667_s5 + $0x50] sm:$0xff]   ;;  %v410_v47 = vshrl.u32 %v409_v44, 7 }
  0x33   : > { %2645 = vmatprep.subr.bf16.mxu0 %v3190_v3  ;;  %3164 = vmatprep.subr.bf16.mxu1 %v3190_v3  ;;  %v3195_v8 = vld [vmem:[%s4667_s5 + $0x20] sm:$0xff]   ;;  %v3197_v10 = vld [vmem:[%s4667_s5 + $0x18] sm:$0xff]   ;;  %v550_v13 = vld [vmem:[#allocation2 + $0x8] sm:$0xff] }
  0x34   : > { %v549_v12 = vld [vmem:[#allocation2] sm:$0xff]  ;;  %v551_v14 = vld [vmem:[#allocation2 + $0x10] sm:$0x3]  ;;  %v653_v16 = vrot.slane %v550_v13, 1  ;;  %v766_v20 = vrot.slane %v550_v13, 2  ;;  %v3200_v28 = vld [vmem:[%s4667_s5 + $0x48] sm:$0xff]  }
  0x35   : > { %v652_v15 = vrot.slane %v549_v12, 1  ;;  %v655_v17 = vrot.slane %v551_v14, 1  ;;  %v765_v18 = vrot.slane %v549_v12, 2  ;;  %v362_v19 = vld [vmem:[%s4663_s1] sm:$0x1]  ;;  %v768_v21 = vrot.slane %v551_v14, 2 }
  0x36   : > { %2646 = vmatpush3.bf16.msra.mxu0 %v3191_v4  ;;  %3172 = vmatpush3.bf16.msra.mxu1 %v3191_v4  ;;  %v3376_v22 = vmul.f32 0.001953125, %v362_v19  ;;  %v364_v23 = vld [vmem:[%s4664_s2] sm:$0x1]  ;;  %v3199_v24 = vld [vmem:[%s4667_s5 + $0x10] sm:$0xff]   ;;  %v3201_v35 = vld [vmem:[%s4667_s5 + $0x8] sm:$0xff]   ;;  %v911_v42 = vpack.c.bf16 %v550_v13, %v549_v12  ;;  %v411_v49 = vsub.s32 0, %v410_v47 }
  0x37   : > { %2647 = vmatprep.subr.bf16.mxu0 %v3192_v5  ;;  %3165 = vmatprep.subr.bf16.mxu1 %v3192_v5  ;;  %v654_v25 = vsel %vm651_vm0, %v652_v15, %v653_v16  ;;  %v656_v26 = vsel %vm651_vm0, %v653_v16, %v655_v17  ;;  %v365_v27 = vmul.f32 0.001953125, %v364_v23  ;;  %v3390_v29 = vsel %vm764_vm1, %v766_v20, %v768_v21  ;;  %v3202_v36 = vld [vmem:[%s4667_s5 + $0x40] sm:$0xff]   ;;  %v3204_v40 = vld [vmem:[%s4667_s5 + $0xf8] sm:$0xff]   ;;  %v3213_v45 = vld [vmem:[%s4667_s5 + $0x170] sm:$0xff]  }
  0x38   : > { %v912_v30 = vpack.c.bf16 %v656_v26, %v654_v25  ;;  %v366_v31 = vmul.f32 %v3376_v22, %v3376_v22  ;;  %v3395_v32 = vsel %vm764_vm1, %v765_v18, %v766_v20  ;;  %v3203_v39 = vld [vmem:[%s4667_s5] sm:$0xff]   ;;  %v3205_v41 = vld [vmem:[%s4667_s5 + $0x178] sm:$0xff]   ;;  %v3215_v46 = vld [vmem:[%s4667_s5 + $0x130] sm:$0xff]  }
  0x39   : > { %v3207_v43 = vld [vmem:[%s4667_s5 + $0x138] sm:$0xff]   ;;  %v369_v48 = vld [vmem:[%s4665_s3] sm:$0x1]  ;;  %v377_v53 = vld [vmem:[%s3327_s11 + $0x8] sm:$0xff] }
  0x3a   : > { %2648 = vmatpush3.bf16.msra.mxu0 %v3193_v6  ;;  %3173 = vmatpush3.bf16.msra.mxu1 %v3193_v6  ;;  %v367_v33 = vsub.f32 %v365_v27, %v366_v31  ;;  %v373_v51 = vld [vmem:[%s4666_s4] sm:$0x1]  ;;  %v398_v54 = vld [vmem:[%s3327_s11 + $0xb0] sm:$0xff]  ;;  %v399_v56 = vld [vmem:[%s3327_s11 + $0xb8] sm:$0xff] }
  0x3b   : > { %2649 = vmatprep.subr.bf16.mxu0 %v3194_v7  ;;  %3166 = vmatprep.subr.bf16.mxu1 %v3194_v7  ;;  %v376_v52 = vld [vmem:[%s3327_s11] sm:$0xff]  ;;  %v378_v57 = vld [vmem:[%s3327_s11 + $0x10] sm:$0xff]  ;;  %v379_v58 = vld [vmem:[%s3327_s11 + $0x18] sm:$0xff] }
  0x3c   : > { %1573 = vmatprep.mubr.bf16.mxu0 %v912_v30  ;;  %v368_v37 = vmax.f32 %v367_v33, 0.0  ;;  %v400_v59 = vld [vmem:[%s3327_s11 + $0xc0] sm:$0xff]  ;;  %v3221_v60 = vld [vmem:[%s4667_s5 + $0x168] sm:$0xff]   ;;  %v402_v2 = vld [vmem:[%s3327_s11 + $0xd0] sm:$0xff] }
  0x3d   : > { %v401_v61 = vld [vmem:[%s3327_s11 + $0xc8] sm:$0xff]  ;;  %v380_v62 = vld [vmem:[%s3327_s11 + $0x20] sm:$0xff]  ;;  %v403_v4 = vld [vmem:[%s3327_s11 + $0xd8] sm:$0xff] }
  0x3e   : > { %2650 = vmatpush3.bf16.msra.mxu0 %v3195_v8  ;;  %3174 = vmatpush3.bf16.msra.mxu1 %v3195_v8  ;;  %v370_v38 = vadd.f32 1e-05, %v368_v37  ;;  %v381_v63 = vld [vmem:[%s3327_s11 + $0x28] sm:$0xff]  ;;  %v3228_v27 = vld [vmem:[%s4667_s5 + $0x160] sm:$0xff]  }
  0x3f   : > { %2651 = vmatprep.subr.bf16.mxu0 %v3196_v9  ;;  %3167 = vmatprep.subr.bf16.mxu1 %v3196_v9  ;;  %v3223_v3 = vld [vmem:[%s4667_s5 + $0x128] sm:$0xff]   ;;  %v382_v9 = vld [vmem:[%s3327_s11 + $0x30] sm:$0xff] }
  0x40   : > { %3260 = vrsqrt.f32 %v370_v38 }
  0x42   : > { %2652 = vmatpush3.bf16.msra.mxu0 %v3197_v10  ;;  %3175 = vmatpush3.bf16.msra.mxu1 %v3197_v10  ;;  %v383_v10 = vld [vmem:[%s3327_s11 + $0x38] sm:$0xff] }
  0x43   : > { %2653 = vmatprep.subr.bf16.mxu0 %v3198_v11  ;;  %3168 = vmatprep.subr.bf16.mxu1 %v3198_v11 }
  0x46   : > { %2654 = vmatpush3.bf16.msra.mxu0 %v3199_v24  ;;  %3176 = vmatpush3.bf16.msra.mxu1 %v3199_v24 }
  0x47   : > { %2655 = vmatprep.subr.bf16.mxu0 %v3200_v28  ;;  %3169 = vmatprep.subr.bf16.mxu1 %v3200_v28 }
  0x4a   : > { %2656 = vmatpush3.bf16.msra.mxu0 %v3201_v35  ;;  %3177 = vmatpush3.bf16.msra.mxu1 %v3201_v35  ;;  %v3229_v35 = vld [vmem:[%s4667_s5 + $0x120] sm:$0xff]  }
  0x4b   : > { %2657 = vmatprep.subr.bf16.mxu0 %v3202_v36  ;;  %3170 = vmatprep.subr.bf16.mxu1 %v3202_v36 }
  0x4d   : > { %v3261_v50 = vpop.eup %3260 }
  0x4e   : > { %2658 = vmatpush3.bf16.msra.mxu0 %v3203_v39  ;;  %3178 = vmatpush3.bf16.msra.mxu1 %v3203_v39  ;;  %v372_v55 = vmul.f32 %v3261_v50, %v369_v48  ;;  %v3230_v50 = vld [vmem:[%s4667_s5 + $0x158] sm:$0xff]  }
  0x4f   : > { %2755 = vmatprep.subr.bf16.mxu1 %v3204_v40  ;;  %2867 = vmatprep.subr.bf16.mxu0 %v3205_v41  ;;  %v404_v40 = vld [vmem:[%s3327_s11 + $0xe0] sm:$0xff]  ;;  %v405_v41 = vld [vmem:[%s3327_s11 + $0xe8] sm:$0xff] }
  0x50   : > { %v374_v0 = vmul.f32 %v372_v55, %v3376_v22  ;;  %v3443_v1 = vrot.slane %v372_v55, %v411_v49  ;;  %v384_v55 = vld [vmem:[%s3327_s11 + $0x40] sm:$0xff] }
  0x51   : > { %1574 = vmatmul.mubr.bf16.vlgmr.msra.gmra.mxu0 %v911_v42 }
  0x52   : > { %2868 = vmatpush3.bf16.msra.mxu0 %v3207_v43  ;;  %v375_v5 = vsub.f32 %v373_v51, %v374_v0  ;;  %v414_v6 = vmul.f32 %v3443_v1, %v376_v52  ;;  %v415_v7 = vmul.f32 %v3443_v1, %v377_v53  ;;  %v436_v8 = vmul.f32 %v3443_v1, %v398_v54 }
  0x53   : > { %2869 = vmatprep.subr.bf16.mxu0 %v3213_v45  ;;  %v437_v11 = vmul.f32 %v3443_v1, %v399_v56  ;;  %v416_v12 = vmul.f32 %v3443_v1, %v378_v57  ;;  %v417_v13 = vmul.f32 %v3443_v1, %v379_v58  ;;  %v438_v14 = vmul.f32 %v3443_v1, %v400_v59  ;;  %v385_v56 = vld [vmem:[%s3327_s11 + $0x48] sm:$0xff] }
  0x54   : > { %v3459_v15 = vrot.slane %v375_v5, %v411_v49  ;;  %v439_v16 = vmul.f32 %v3443_v1, %v401_v61  ;;  %v418_v17 = vmul.f32 %v3443_v1, %v380_v62  ;;  %v419_v18 = vmul.f32 %v3443_v1, %v381_v63  ;;  %v386_v61 = vld [vmem:[%s3327_s11 + $0x50] sm:$0xff]  ;;  %v388_v5 = vld [vmem:[%s3327_s11 + $0x60] sm:$0xff] }
  0x55   : > { %v440_v19 = vmul.f32 %v3443_v1, %v402_v2  ;;  %v441_v20 = vmul.f32 %v3443_v1, %v403_v4  ;;  %v420_v21 = vmul.f32 %v3443_v1, %v382_v9  ;;  %v421_v22 = vmul.f32 %v3443_v1, %v383_v10  ;;  %v3232_v4 = vld [vmem:[%s4667_s5 + $0x118] sm:$0xff]  }
  0x56   : > { %2870 = vmatpush3.bf16.msra.mxu0 %v3215_v46  ;;  %v452_v23 = vadd.f32 %v3459_v15, %v414_v6  ;;  %v453_v24 = vadd.f32 %v3459_v15, %v415_v7  ;;  %v474_v25 = vadd.f32 %v3459_v15, %v436_v8  ;;  %v475_v26 = vadd.f32 %v3459_v15, %v437_v11  ;;  %v389_v6 = vld [vmem:[%s3327_s11 + $0x68] sm:$0xff]  ;;  %v3234_v11 = vld [vmem:[%s4667_s5 + $0x150] sm:$0xff]  }
  0x57   : > { %2871 = vmatprep.subr.bf16.mxu0 %v3221_v60  ;;  %v454_v28 = vadd.f32 %v3459_v15, %v416_v12  ;;  %v455_v30 = vadd.f32 %v3459_v15, %v417_v13  ;;  %v476_v31 = vadd.f32 %v3459_v15, %v438_v14  ;;  %v477_v33 = vadd.f32 %v3459_v15, %v439_v16 }
  0x58   : > { %v484_v36 = vmax.f32 %v452_v23, 0.0  ;;  %v485_v37 = vmax.f32 %v453_v24, 0.0  ;;  %v506_v38 = vmax.f32 %v474_v25, 0.0  ;;  %v507_v39 = vmax.f32 %v475_v26, 0.0 }
  0x59   : > { %v486_v42 = vmax.f32 %v454_v28, 0.0  ;;  %v487_v43 = vmax.f32 %v455_v30, 0.0  ;;  %v508_v44 = vmax.f32 %v476_v31, 0.0  ;;  %v509_v45 = vmax.f32 %v477_v33, 0.0 }
  0x5a   : > { %2872 = vmatpush3.bf16.msra.mxu0 %v3223_v3  ;;  %517 = vst [vmem:[#allocation2 + $0x19] sm:$0xff] %v484_v36  ;;  %518 = vst [vmem:[#allocation2 + $0x21] sm:$0xff] %v485_v37  ;;  %v456_v46 = vadd.f32 %v3459_v15, %v418_v17  ;;  %v457_v47 = vadd.f32 %v3459_v15, %v419_v18  ;;  %v478_v48 = vadd.f32 %v3459_v15, %v440_v19  ;;  %v387_v3 = vld [vmem:[%s3327_s11 + $0x58] sm:$0xff] }
  0x5b   : > { %2873 = vmatprep.subr.bf16.mxu0 %v3228_v27  ;;  %539 = vst [vmem:[#allocation2 + $0x121] sm:$0xff] %v506_v38  ;;  %540 = vst [vmem:[#allocation2 + $0x129] sm:$0xff] %v507_v39  ;;  %v479_v49 = vadd.f32 %v3459_v15, %v441_v20  ;;  %v458_v51 = vadd.f32 %v3459_v15, %v420_v21  ;;  %v459_v52 = vadd.f32 %v3459_v15, %v421_v22 }
  0x5c   : > { %519 = vst [vmem:[#allocation2 + $0x31] sm:$0xff] %v486_v42  ;;  %520 = vst [vmem:[#allocation2 + $0x39] sm:$0xff] %v487_v43  ;;  %v442_v53 = vmul.f32 %v3443_v1, %v404_v40  ;;  %v443_v54 = vmul.f32 %v3443_v1, %v405_v41  ;;  %v488_v57 = vmax.f32 %v456_v46, 0.0  ;;  %v489_v58 = vmax.f32 %v457_v47, 0.0 }
  0x5d   : > { %541 = vst [vmem:[#allocation2 + $0x139] sm:$0xff] %v508_v44  ;;  %542 = vst [vmem:[#allocation2 + $0x141] sm:$0xff] %v509_v45  ;;  %v510_v59 = vmax.f32 %v478_v48, 0.0  ;;  %v511_v60 = vmax.f32 %v479_v49, 0.0  ;;  %v490_v62 = vmax.f32 %v458_v51, 0.0  ;;  %v491_v63 = vmax.f32 %v459_v52, 0.0 }
  0x5e   : > { %2874 = vmatpush3.bf16.msra.mxu0 %v3229_v35  ;;  %v480_v0 = vadd.f32 %v3459_v15, %v442_v53  ;;  %v481_v2 = vadd.f32 %v3459_v15, %v443_v54  ;;  %521 = vst [vmem:[#allocation2 + $0x49] sm:$0xff] %v488_v57  ;;  %522 = vst [vmem:[#allocation2 + $0x51] sm:$0xff] %v489_v58  ;;  %v422_v9 = vmul.f32 %v3443_v1, %v384_v55  ;;  %v3206_v57 = vld [vmem:[%s4667_s5 + $0xb8] sm:$0xff]  }
  0x5f   : > { %2875 = vmatprep.subr.bf16.mxu0 %v3230_v50  ;;  %543 = vst [vmem:[#allocation2 + $0x151] sm:$0xff] %v510_v59  ;;  %544 = vst [vmem:[#allocation2 + $0x159] sm:$0xff] %v511_v60  ;;  %v423_v10 = vmul.f32 %v3443_v1, %v385_v56  ;;  %v3518_v16 = vmul.f32 %v3443_v1, %v386_v61  ;;  %v3521_v17 = vmul.f32 %v3443_v1, %v387_v3 }
  0x60   : > { %523 = vst [vmem:[#allocation2 + $0x61] sm:$0xff] %v490_v62  ;;  %524 = vst [vmem:[#allocation2 + $0x69] sm:$0xff] %v491_v63  ;;  %v512_v7 = vmax.f32 %v480_v0, 0.0  ;;  %v513_v8 = vmax.f32 %v481_v2, 0.0  ;;  %v3524_v18 = vmul.f32 %v3443_v1, %v388_v5  ;;  %v3527_v19 = vmul.f32 %v3443_v1, %v389_v6  ;;  %v3208_v63 = vld [vmem:[%s4667_s5 + $0xf0] sm:$0xff]  }
  0x61   : > { %v3511_v12 = vld [vmem:[#allocation2 + $0x18] sm:$0xff]  ;;  %v3513_v13 = vld [vmem:[#allocation2 + $0x20] sm:$0xff]  ;;  %v3515_v14 = vld [vmem:[#allocation2 + $0x28] sm:$0x3]  ;;  %v3594_v61 = vadd.f32 %v3459_v15, %v422_v9  ;;  %v3597_v62 = vadd.f32 %v3459_v15, %v423_v10 }
  0x62   : > { %2876 = vmatpush3.bf16.msra.mxu0 %v3232_v4  ;;  %545 = vst [vmem:[#allocation2 + $0x169] sm:$0xff] %v512_v7  ;;  %546 = vst [vmem:[#allocation2 + $0x171] sm:$0xff] %v513_v8  ;;  %v657_v20 = vrot.slane %v3511_v12, 1  ;;  %v658_v21 = vrot.slane %v3513_v13, 1  ;;  %v660_v22 = vrot.slane %v3515_v14, 1  ;;  %v3532_v23 = vld [vmem:[#allocation2 + $0x120] sm:$0xff]  ;;  %v3538_v25 = vpack.c.bf16 %v3513_v13, %v3511_v12 }
  0x63   : > { %v3534_v24 = vld [vmem:[#allocation2 + $0x128] sm:$0xff]  ;;  %v3540_v26 = vld [vmem:[#allocation2 + $0x30] sm:$0xff]  ;;  %2877 = vmatprep.subr.bf16.mxu0 %v3234_v11  ;;  %v712_v28 = vrot.slane %v3532_v23, 1  ;;  %v3550_v33 = vld [vmem:[#allocation2 + $0x38] sm:$0xff] }
  0x64   : > { %v3542_v27 = vld [vmem:[#allocation2 + $0x130] sm:$0x3]  ;;  %v713_v30 = vrot.slane %v3534_v24, 1  ;;  %v3548_v31 = vpack.c.bf16 %v3534_v24, %v3532_v23  ;;  %v662_v35 = vrot.slane %v3540_v26, 1  ;;  %v659_v36 = vsel %vm651_vm0, %v657_v20, %v658_v21  ;;  %v3556_v39 = vld [vmem:[#allocation2 + $0x40] sm:$0x3] }
  0x65   : > { %v661_v37 = vsel %vm651_vm0, %v658_v21, %v660_v22  ;;  %v715_v38 = vrot.slane %v3542_v27, 1  ;;  %v663_v40 = vrot.slane %v3550_v33, 1  ;;  %v3559_v41 = vld [vmem:[#allocation2 + $0x138] sm:$0xff]  ;;  %v3561_v42 = vld [vmem:[#allocation2 + $0x140] sm:$0xff]  ;;  %v665_v45 = vrot.slane %v3556_v39, 1  ;;  %v3570_v48 = vld [vmem:[#allocation2 + $0x48] sm:$0xff] }
  0x66   : > { %v3563_v43 = vpack.c.bf16 %v661_v37, %v659_v36  ;;  %v714_v44 = vsel %vm651_vm0, %v712_v28, %v713_v30  ;;  %v3567_v46 = vld [vmem:[#allocation2 + $0x148] sm:$0x3]  ;;  %v717_v47 = vrot.slane %v3559_v41, 1  ;;  %v718_v51 = vrot.slane %v3561_v42, 1  ;;  %v3576_v53 = vld [vmem:[#allocation2 + $0x50] sm:$0xff]  ;;  %v3589_v59 = vld [vmem:[#allocation2 + $0x158] sm:$0xff] }
  0x67   : > { %v716_v49 = vsel %vm651_vm0, %v713_v30, %v715_v38  ;;  %v664_v50 = vsel %vm651_vm0, %v662_v35, %v663_v40  ;;  %v720_v52 = vrot.slane %v3567_v46, 1  ;;  %v3578_v54 = vld [vmem:[#allocation2 + $0x58] sm:$0x3]  ;;  %v3580_v55 = vld [vmem:[#allocation2 + $0x150] sm:$0xff]  ;;  %v666_v58 = vsel %vm651_vm0, %v663_v40, %v665_v45  ;;  %v3591_v60 = vld [vmem:[#allocation2 + $0x160] sm:$0x3] }
  0x68   : > { %1581 = vmatprep.mubr.bf16.mxu0 %v3563_v43  ;;  %v3583_v56 = vpack.c.bf16 %v716_v49, %v714_v44  ;;  %v3603_v0 = vpack.c.bf16 %v666_v58, %v664_v50  ;;  %v719_v2 = vsel %vm651_vm0, %v717_v47, %v718_v51  ;;  %v667_v4 = vrot.slane %v3570_v48, 1  ;;  %v3209_v5 = vld [vmem:[%s4667_s5 + $0xb0] sm:$0xff]   ;;  %v391_v11 = vld [vmem:[%s3327_s11 + $0x78] sm:$0xff]  ;;  %v3210_v21 = vld [vmem:[%s4667_s5 + $0xe8] sm:$0xff]  }
  0x69   : > { %1582 = vmatmul.mubr.bf16.gmra.mxu0 %v3538_v25  ;;  %v721_v3 = vsel %vm651_vm0, %v718_v51, %v720_v52  ;;  %v668_v7 = vrot.slane %v3576_v53, 1  ;;  %v670_v8 = vrot.slane %v3578_v54, 1  ;;  %v722_v9 = vrot.slane %v3580_v55, 1  ;;  %v390_v10 = vld [vmem:[%s3327_s11 + $0x70] sm:$0xff]  ;;  %v3629_v30 = vld [vmem:[#allocation2 + $0x60] sm:$0xff]  ;;  %v3631_v35 = vld [vmem:[#allocation2 + $0x68] sm:$0xff] }
  0x6a   : > { %4688 = vst [vmem:[#allocation3_spill] sm:$0xff] %v3583_v56  ;;  %1669 = vmatprep.mubr.bf16.mxu1 %v3583_v56  ;;  %v3612_v6 = vpack.c.bf16 %v721_v3, %v719_v2  ;;  %v3235_v20 = vld [vmem:[%s4667_s5 + $0x110] sm:$0xff]   ;;  %1589 = vmatprep.mubr.bf16.mxu0 %v3603_v0  ;;  %v723_v22 = vrot.slane %v3589_v59, 1  ;;  %v725_v28 = vrot.slane %v3591_v60, 1  ;;  %v462_v36 = vadd.f32 %v3459_v15, %v3518_v16  ;;  %v3642_v45 = vld [vmem:[#allocation2 + $0x168] sm:$0xff] }
  0x6b   : > { %1670 = vmatmul.mubr.bf16.vlgmr.msra.gmra.mxu1 %v3548_v31  ;;  %v463_v37 = vadd.f32 %v3459_v15, %v3521_v17  ;;  %v669_v38 = vsel %vm651_vm0, %v667_v4, %v668_v7  ;;  %v671_v40 = vsel %vm651_vm0, %v668_v7, %v670_v8  ;;  %v3640_v44 = vld [vmem:[#allocation2 + $0x70] sm:$0x3]  ;;  %v464_v47 = vadd.f32 %v3459_v15, %v3524_v18  ;;  %v3652_v50 = vld [vmem:[#allocation2 + $0x178] sm:$0x3]  ;;  %v3211_v51 = vld [vmem:[%s4667_s5 + $0xa8] sm:$0xff]  }
  0x6c   : > { %4689 = vst [vmem:[#allocation4_spill] sm:$0xff] %v3612_v6  ;;  %2756 = vmatpush3.bf16.msra.mxu1 %v3206_v57  ;;  %1677 = vmatprep.mubr.bf16.mxu1 %v3612_v6  ;;  %v3648_v16 = vpack.c.bf16 %v3550_v33, %v3540_v26  ;;  %v724_v17 = vsel %vm651_vm0, %v722_v9, %v723_v22  ;;  %v672_v18 = vrot.slane %v3629_v30, 1  ;;  %v673_v57 = vrot.slane %v3631_v35, 1  ;;  %v3661_v58 = vld [vmem:[#allocation2 + $0x170] sm:$0xff]  ;;  %v3238_v2 = vld [vmem:[%s4667_s5 + $0x148] sm:$0xff]  }
  0x6d   : > { %2757 = vmatprep.subr.bf16.mxu1 %v3208_v63  ;;  %v726_v49 = vsel %vm651_vm0, %v723_v22, %v725_v28  ;;  %2878 = vmatpush3.bf16.msra.mxu0 %v3235_v20  ;;  %v3657_v52 = vpack.c.bf16 %v671_v40, %v669_v38  ;;  %v465_v63 = vadd.f32 %v3459_v15, %v3527_v19  ;;  %v675_v4 = vrot.slane %v3640_v44, 1  ;;  %v3239_v9 = vld [vmem:[%s4667_s5 + $0x108] sm:$0xff]   ;;  %v3212_v19 = vld [vmem:[%s4667_s5 + $0xe0] sm:$0xff]  }
  0x6e   : > { %v3670_v3 = vpack.c.bf16 %v3561_v42, %v3559_v41  ;;  %v428_v7 = vmul.f32 %v3443_v1, %v390_v10  ;;  %v429_v8 = vmul.f32 %v3443_v1, %v391_v11  ;;  %v3681_v20 = vpack.c.bf16 %v726_v49, %v724_v17  ;;  %2879 = vmatprep.subr.bf16.mxu0 %v3238_v2  ;;  %v3214_v17 = vld [vmem:[%s4667_s5 + $0xa0] sm:$0xff]   ;;  %v393_v2 = vld [vmem:[%s3327_s11 + $0x88] sm:$0xff] }
  0x6f   : > { %v727_v22 = vrot.slane %v3642_v45, 1  ;;  %v492_v28 = vmax.f32 %v3594_v61, 0.0  ;;  %v493_v38 = vmax.f32 %v3597_v62, 0.0  ;;  %v728_v10 = vrot.slane %v3661_v58, 1  ;;  %v3216_v62 = vld [vmem:[%s4667_s5 + $0xd8] sm:$0xff]   ;;  %v392_v49 = vld [vmem:[%s3327_s11 + $0x80] sm:$0xff] }
  0x70   : > { %4690 = vst [vmem:[#allocation5_spill] sm:$0xff] %v3670_v3  ;;  %2758 = vmatpush3.bf16.msra.mxu1 %v3209_v5  ;;  %4691 = vst [vmem:[#allocation6_spill] sm:$0xff] %v3681_v20  ;;  %v730_v5 = vrot.slane %v3652_v50, 1  ;;  %v494_v11 = vmax.f32 %v462_v36, 0.0  ;;  %v495_v40 = vmax.f32 %v463_v37, 0.0  ;;  %v496_v61 = vmax.f32 %v464_v47, 0.0 }
  0x71   : > { %2759 = vmatprep.subr.bf16.mxu1 %v3210_v21  ;;  %1590 = vmatmul.mubr.bf16.gmra.mxu0 %v3648_v16  ;;  %525 = vst [vmem:[#allocation2 + $0x79] sm:$0xff] %v492_v28  ;;  %526 = vst [vmem:[#allocation2 + $0x81] sm:$0xff] %v493_v38  ;;  %v674_v21 = vsel %vm651_vm0, %v672_v18, %v673_v57  ;;  %v676_v36 = vsel %vm651_vm0, %v673_v57, %v675_v4  ;;  %v497_v37 = vmax.f32 %v465_v63, 0.0 }
  0x72   : > { %1597 = vmatprep.mubr.bf16.mxu0 %v3657_v52  ;;  %2880 = vmatpush3.bf16.msra.mxu0 %v3239_v9  ;;  %527 = vst [vmem:[#allocation2 + $0x91] sm:$0xff] %v494_v11  ;;  %528 = vst [vmem:[#allocation2 + $0x99] sm:$0xff] %v495_v40  ;;  %v466_v47 = vadd.f32 %v3459_v15, %v428_v7  ;;  %v3242_v9 = vld [vmem:[%s4667_s5 + $0x140] sm:$0xff]   ;;  %v3708_v18 = vpack.c.bf16 %v3576_v53, %v3570_v48  ;;  %v3218_v11 = vld [vmem:[%s4667_s5 + $0xd0] sm:$0xff]  }
  0x73   : > { %1678 = vmatmul.mubr.bf16.gmra.mxu1 %v3670_v3  ;;  %529 = vst [vmem:[#allocation2 + $0xa9] sm:$0xff] %v496_v61  ;;  %v729_v57 = vsel %vm651_vm0, %v727_v22, %v728_v10  ;;  %v731_v63 = vsel %vm651_vm0, %v728_v10, %v730_v5  ;;  %530 = vst [vmem:[#allocation2 + $0xb1] sm:$0xff] %v497_v37  ;;  %v3713_v4 = vpack.c.bf16 %v676_v36, %v674_v21  ;;  %v3243_v7 = vld [vmem:[%s4667_s5 + $0x100] sm:$0xff]   ;;  %v3217_v22 = vld [vmem:[%s4667_s5 + $0x98] sm:$0xff]  }
  0x74   : > { %2760 = vmatpush3.bf16.msra.mxu1 %v3211_v51  ;;  %1685 = vmatprep.mubr.bf16.mxu1 %v3681_v20  ;;  %4692 = vst [vmem:[#allocation7_spill] sm:$0xff] %v3708_v18  ;;  %v467_v51 = vadd.f32 %v3459_v15, %v429_v8  ;;  %v498_v28 = vmax.f32 %v466_v47, 0.0  ;;  %v430_v10 = vmul.f32 %v3443_v1, %v392_v49  ;;  %v3730_v5 = vld [vmem:[%s4667_s5 + $0x238] sm:$0xff]   ;;  %v3219_v47 = vld [vmem:[%s4667_s5 + $0x90] sm:$0xff]   ;;  %v397_v20 = vld [vmem:[%s3327_s11 + $0xa8] sm:$0xff] }
  0x75   : > { %2761 = vmatprep.subr.bf16.mxu1 %v3212_v19  ;;  %2881 = vmatprep.subr.bf16.mxu0 %v3242_v9  ;;  %v3720_v19 = vpack.c.bf16 %v3589_v59, %v3580_v55  ;;  %v431_v8 = vmul.f32 %v3443_v1, %v393_v2  ;;  %v3735_v40 = vpack.c.bf16 %v731_v63, %v729_v57  ;;  %v3220_v9 = vld [vmem:[%s4667_s5 + $0xc8] sm:$0xff]  }
  0x76   : > { %v499_v38 = vmax.f32 %v467_v51, 0.0  ;;  %531 = vst [vmem:[#allocation2 + $0xc1] sm:$0xff] %v498_v28  ;;  %2882 = vmatpush3.bf16.msra.mxu0 %v3243_v7 }
  0x77   : > { %4693 = vst [vmem:[#allocation8_spill] sm:$0xff] %v3720_v19  ;;  %4694 = vst [vmem:[#allocation9_spill] sm:$0xff] %v3735_v40  ;;  %v469_v2 = vadd.f32 %v3459_v15, %v431_v8  ;;  %3115 = vmatprep.subr.bf16.mxu0 %v3730_v5  ;;  %v3770_v8 = vpack.c.bf16 %v3631_v35, %v3629_v30 }
  0x78   : > { %2762 = vmatpush3.bf16.msra.mxu1 %v3214_v17  ;;  %v3738_v61 = vld [vmem:[#allocation2 + $0x78] sm:$0xff]  ;;  %v3740_v21 = vld [vmem:[#allocation2 + $0x80] sm:$0xff]  ;;  %v3742_v36 = vld [vmem:[#allocation2 + $0x88] sm:$0x3]  ;;  %532 = vst [vmem:[#allocation2 + $0xc9] sm:$0xff] %v499_v38  ;;  %v468_v17 = vadd.f32 %v3459_v15, %v430_v10 }
  0x79   : > { %2763 = vmatprep.subr.bf16.mxu1 %v3216_v62  ;;  %1598 = vmatmul.mubr.bf16.gmra.mxu0 %v3708_v18  ;;  %v677_v37 = vrot.slane %v3738_v61, 1  ;;  %v678_v49 = vrot.slane %v3740_v21, 1  ;;  %v680_v62 = vrot.slane %v3742_v36, 1  ;;  %v3758_v57 = vld [vmem:[#allocation2 + $0x90] sm:$0xff]  ;;  %v3763_v7 = vld [vmem:[#allocation2 + $0x98] sm:$0xff]  ;;  %v501_v34 = vmax.f32 %v469_v2, 0.0 }
  0x7a   : > { %1605 = vmatprep.mubr.bf16.mxu0 %v3713_v4  ;;  %v500_v63 = vmax.f32 %v468_v17, 0.0  ;;  %v3765_v38 = vld [vmem:[#allocation2 + $0xa0] sm:$0x3]  ;;  %v394_v10 = vld [vmem:[%s3327_s11 + $0x90] sm:$0xff]  ;;  %v395_v17 = vld [vmem:[%s3327_s11 + $0x98] sm:$0xff] }
  0x7b   : > { %1686 = vmatmul.mubr.bf16.gmra.mxu1 %v3720_v19  ;;  %v679_v51 = vsel %vm651_vm0, %v677_v37, %v678_v49  ;;  %v681_v28 = vsel %vm651_vm0, %v678_v49, %v680_v62  ;;  %v682_v37 = vrot.slane %v3758_v57, 1  ;;  %v3778_v49 = vpack.c.bf16 %v3661_v58, %v3642_v45  ;;  %534 = vst [vmem:[#allocation2 + $0xe1] sm:$0xff] %v501_v34  ;;  %v3224_v2 = vld [vmem:[%s4667_s5 + $0xc0] sm:$0xff]   ;;  %v3797_v34 = vld [vmem:[#allocation2 + $0xa8] sm:$0xff]  ;;  %v3808_v3 = vld [vmem:[#allocation2 + $0xb0] sm:$0xff] }
  0x7c   : > { %2764 = vmatpush3.bf16.msra.mxu1 %v3217_v22  ;;  %1693 = vmatprep.mubr.bf16.mxu1 %v3735_v40  ;;  %533 = vst [vmem:[#allocation2 + $0xd9] sm:$0xff] %v500_v63  ;;  %v3773_v22 = vpack.c.bf16 %v681_v28, %v679_v51  ;;  %v683_v62 = vrot.slane %v3763_v7, 1  ;;  %v3222_v63 = vld [vmem:[%s4667_s5 + $0x88] sm:$0xff]   ;;  %v432_v51 = vmul.f32 %v3443_v1, %v394_v10  ;;  %v396_v28 = vld [vmem:[%s3327_s11 + $0xa0] sm:$0xff]  ;;  %v3799_v10 = vld [vmem:[#allocation2 + $0xb8] sm:$0x3] }
  0x7d   : > { %2765 = vmatprep.subr.bf16.mxu1 %v3218_v11  ;;  %4696 = vst [vmem:[#allocation11_spill] sm:$0xff] %v3778_v49  ;;  %v685_v11 = vrot.slane %v3765_v38, 1  ;;  %v433_v40 = vmul.f32 %v3443_v1, %v395_v17  ;;  %v434_v19 = vmul.f32 %v3443_v1, %v396_v28  ;;  %v687_v28 = vrot.slane %v3797_v34, 1 }
  0x7e   : > { %4695 = vst [vmem:[#allocation10_spill] sm:$0xff] %v3773_v22  ;;  %v684_v6 = vsel %vm651_vm0, %v682_v37, %v683_v62  ;;  %v3815_v37 = vpack.c.bf16 %v3740_v21, %v3738_v61 }
  0x7f   : > { %v686_v56 = vsel %vm651_vm0, %v683_v62, %v685_v11  ;;  %v471_v17 = vadd.f32 %v3459_v15, %v433_v40  ;;  %v435_v40 = vmul.f32 %v3443_v1, %v397_v20  ;;  %v773_v20 = vrot.slane %v3515_v14, 2 }
  0x80   : > { %2766 = vmatpush3.bf16.msra.mxu1 %v3219_v47  ;;  %v3225_v47 = vld [vmem:[%s4667_s5 + $0x80] sm:$0xff]   ;;  %v3818_v11 = vpack.c.bf16 %v686_v56, %v684_v6  ;;  %v770_v56 = vrot.slane %v3511_v12, 2  ;;  %v771_v6 = vrot.slane %v3513_v13, 2  ;;  %v775_v14 = vrot.slane %v3540_v26, 2 }
  0x81   : > { %2767 = vmatprep.subr.bf16.mxu1 %v3220_v9  ;;  %1606 = vmatmul.mubr.bf16.gmra.mxu0 %v3770_v8  ;;  %v470_v9 = vadd.f32 %v3459_v15, %v432_v51  ;;  %v3226_v51 = vld [vmem:[%s4667_s5 + $0x1f8] sm:$0xff]   ;;  %v503_v62 = vmax.f32 %v471_v17, 0.0  ;;  %v473_v17 = vadd.f32 %v3459_v15, %v435_v40  ;;  %v3857_v26 = vpack.c.bf16 %v3763_v7, %v3758_v57 }
  0x82   : > { %1613 = vmatprep.mubr.bf16.mxu0 %v3773_v22  ;;  %v772_v40 = vsel %vm764_vm1, %v770_v56, %v771_v6 }
  0x83   : > { %1694 = vmatmul.mubr.bf16.gmra.mxu1 %v3778_v49  ;;  %v502_v22 = vmax.f32 %v470_v9, 0.0  ;;  %v690_v9 = vrot.slane %v3799_v10, 1  ;;  %536 = vst [vmem:[#allocation2 + $0xf9] sm:$0xff] %v503_v62  ;;  %v505_v49 = vmax.f32 %v473_v17, 0.0  ;;  %v3845_v62 = vld [vmem:[#allocation2 + $0xc0] sm:$0xff] }
  0x84   : > { %2768 = vmatpush3.bf16.msra.mxu1 %v3222_v63  ;;  %1734 = vmatprep.mubr.bf16.mxu1 %v3538_v25  ;;  %v472_v25 = vadd.f32 %v3459_v15, %v434_v19  ;;  %v3227_v63 = vld [vmem:[%s4667_s5 + $0x1b8] sm:$0xff]   ;;  %v692_v17 = vrot.slane %v3845_v62, 1 }
  0x85   : > { %2769 = vmatprep.subr.bf16.mxu1 %v3224_v2  ;;  %535 = vst [vmem:[#allocation2 + $0xf1] sm:$0xff] %v502_v22  ;;  %v688_v2 = vrot.slane %v3808_v3, 1  ;;  %v3231_v22 = vld [vmem:[%s4667_s5 + $0x1f0] sm:$0xff]   ;;  %538 = vst [vmem:[#allocation2 + $0x111] sm:$0xff] %v505_v49  ;;  %v778_v49 = vrot.slane %v3556_v39, 2 }
  0x86   : > { %v504_v19 = vmax.f32 %v472_v25, 0.0  ;;  %v3851_v25 = vld [vmem:[#allocation2 + $0xc8] sm:$0xff] }
  0x87   : > { %v689_v12 = vsel %vm651_vm0, %v687_v28, %v688_v2  ;;  %v691_v13 = vsel %vm651_vm0, %v688_v2, %v690_v9  ;;  %v3853_v28 = vld [vmem:[#allocation2 + $0xd0] sm:$0x3]  ;;  %v825_v2 = vrot.slane %v3532_v23, 2  ;;  %v826_v9 = vrot.slane %v3534_v24, 2 }
  0x88   : > { %2770 = vmatpush3.bf16.msra.mxu1 %v3225_v47  ;;  %537 = vst [vmem:[#allocation2 + $0x109] sm:$0xff] %v504_v19  ;;  %v4697_v47 = vpack.c.bf16 %v3390_v29, %v3395_v32  ;;  %v774_v29 = vsel %vm764_vm1, %v771_v6, %v773_v20  ;;  %v776_v32 = vrot.slane %v3550_v33, 2  ;;  %v3865_v33 = vpack.c.bf16 %v691_v13, %v689_v12  ;;  %v3237_v19 = vld [vmem:[%s4667_s5 + $0x1a8] sm:$0xff]  }
  0x89   : > { %2979 = vmatprep.subr.bf16.mxu1 %v3226_v51  ;;  %1614 = vmatmul.mubr.bf16.gmra.mxu0 %v3815_v37  ;;  %v3233_v51 = vld [vmem:[%s4667_s5 + $0x1b0] sm:$0xff]   ;;  %v3868_v56 = vpack.c.bf16 %v774_v29, %v772_v40  ;;  %v693_v6 = vrot.slane %v3851_v25, 1  ;;  %v695_v20 = vrot.slane %v3853_v28, 1  ;;  %v828_v23 = vrot.slane %v3542_v27, 2  ;;  %v3891_v40 = vld [vmem:[#allocation2 + $0xe0] sm:$0xff] }
  0x8a   : > { %1621 = vmatprep.mubr.bf16.mxu0 %v3818_v11  ;;  %v777_v39 = vsel %vm764_vm1, %v775_v14, %v776_v32  ;;  %v779_v24 = vsel %vm764_vm1, %v776_v32, %v778_v49  ;;  %v830_v12 = vrot.slane %v3559_v41, 2  ;;  %v831_v13 = vrot.slane %v3561_v42, 2  ;;  %v3898_v32 = vld [vmem:[#allocation2 + $0xe8] sm:$0x3]  ;;  %v3241_v49 = vld [vmem:[%s4667_s5 + $0x1a0] sm:$0xff]  }
  0x8b   : > { %1735 = vmatmul.mubr.bf16.vlgmr.msra.gmra.mxu1 %v4697_v47  ;;  %v827_v47 = vsel %vm764_vm1, %v825_v2, %v826_v9  ;;  %v694_v27 = vsel %vm651_vm0, %v692_v17, %v693_v6  ;;  %v696_v14 = vsel %vm651_vm0, %v693_v6, %v695_v20  ;;  %v3894_v29 = vpack.c.bf16 %v779_v24, %v777_v39  ;;  %v406_v20 = vld [vmem:[%s3327_s11 + $0xf0] sm:$0xff]  ;;  %v407_v39 = vld [vmem:[%s3327_s11 + $0xf8] sm:$0xff] }
  0x8c   : > { %2980 = vmatpush3.bf16.msra.mxu1 %v3227_v63  ;;  %1742 = vmatprep.mubr.bf16.mxu1 %v3648_v16  ;;  %v3236_v63 = vld [vmem:[%s4667_s5 + $0x1e8] sm:$0xff]   ;;  %v780_v41 = vrot.slane %v3570_v48, 2  ;;  %v781_v42 = vrot.slane %v3576_v53, 2  ;;  %v3906_v2 = vpack.c.bf16 %v3808_v3, %v3797_v34  ;;  %v783_v17 = vrot.slane %v3578_v54, 2  ;;  %v3244_v48 = vld [vmem:[%s4667_s5 + $0x1d8] sm:$0xff]  }
  0x8d   : > { %2981 = vmatprep.subr.bf16.mxu1 %v3231_v22  ;;  %v3240_v22 = vld [vmem:[%s4667_s5 + $0x1e0] sm:$0xff]   ;;  %v832_v6 = vsel %vm764_vm1, %v830_v12, %v831_v13  ;;  %v833_v24 = vrot.slane %v3567_v46, 2  ;;  %v700_v54 = vrot.slane %v3898_v32, 1  ;;  %v3246_v12 = vld [vmem:[%s4667_s5 + $0x198] sm:$0xff]   ;;  %v840_v46 = vrot.slane %v3642_v45, 2 }
  0x90   : > { %2982 = vmatpush3.bf16.msra.mxu1 %v3233_v51  ;;  %v3889_v51 = vld [vmem:[#allocation2 + $0xd8] sm:$0xff] }
  0x91   : > { %1622 = vmatmul.mubr.bf16.gmra.mxu0 %v3857_v26  ;;  %2983 = vmatprep.subr.bf16.mxu1 %v3236_v63  ;;  %v829_v63 = vsel %vm764_vm1, %v826_v9, %v828_v23  ;;  %v697_v9 = vrot.slane %v3889_v51, 1  ;;  %v698_v23 = vrot.slane %v3891_v40, 1 }
  0x92   : > { %1629 = vmatprep.mubr.bf16.mxu0 %v3865_v33  ;;  %v3912_v53 = vpack.c.bf16 %v829_v63, %v827_v47  ;;  %v838_v47 = vrot.slane %v3591_v60, 2  ;;  %v445_v63 = vmul.f32 %v3443_v1, %v407_v39 }
  0x93   : > { %1743 = vmatmul.mubr.bf16.gmra.mxu1 %v3868_v56  ;;  %v699_v39 = vsel %vm651_vm0, %v697_v9, %v698_v23 }
  0x94   : > { %1750 = vmatprep.mubr.bf16.mxu1 %v3708_v18  ;;  %2984 = vmatpush3.bf16.msra.mxu1 %v3237_v19  ;;  %v3917_v19 = vpack.c.bf16 %v696_v14, %v694_v27  ;;  %v836_v18 = vrot.slane %v3589_v59, 2  ;;  %v834_v27 = vsel %vm764_vm1, %v831_v13, %v833_v24  ;;  %v444_v14 = vmul.f32 %v3443_v1, %v406_v20 }
  0x95   : > { %2985 = vmatprep.subr.bf16.mxu1 %v3240_v22  ;;  %v835_v22 = vrot.slane %v3580_v55, 2  ;;  %v3247_v55 = vld [vmem:[%s4667_s5 + $0x1d0] sm:$0xff]   ;;  %v3937_v59 = vpack.c.bf16 %v834_v27, %v832_v6  ;;  %v841_v13 = vrot.slane %v3661_v58, 2  ;;  %v843_v20 = vrot.slane %v3652_v50, 2  ;;  %v3960_v50 = vld [vmem:[#allocation2 + $0xf8] sm:$0xff] }
  0x96   : > { %v482_v45 = vadd.f32 %v3459_v15, %v444_v14  ;;  %v782_v6 = vsel %vm764_vm1, %v780_v41, %v781_v42  ;;  %v3249_v58 = vld [vmem:[%s4667_s5 + $0x190] sm:$0xff]  }
  0x97   : > { %v837_v60 = vsel %vm764_vm1, %v835_v22, %v836_v18  ;;  %v842_v24 = vsel %vm764_vm1, %v840_v46, %v841_v13  ;;  %v3958_v22 = vld [vmem:[#allocation2 + $0xf0] sm:$0xff] }
  0x98   : > { %2986 = vmatpush3.bf16.msra.mxu1 %v3241_v49  ;;  %v839_v49 = vsel %vm764_vm1, %v836_v18, %v838_v47  ;;  %v701_v18 = vsel %vm651_vm0, %v698_v23, %v700_v54  ;;  %v3962_v47 = vld [vmem:[#allocation2 + $0x100] sm:$0x3]  ;;  %v514_v41 = vmax.f32 %v482_v45, 0.0  ;;  %v844_v23 = vsel %vm764_vm1, %v841_v13, %v843_v20  ;;  %v3252_v13 = vld [vmem:[%s4667_s5 + $0x188] sm:$0xff]  }
  0x99   : > { %1630 = vmatmul.mubr.bf16.gmra.mxu0 %v3906_v2  ;;  %2987 = vmatprep.subr.bf16.mxu1 %v3244_v48  ;;  %v3943_v1 = vpack.c.bf16 %v839_v49, %v837_v60  ;;  %v483_v48 = vadd.f32 %v3459_v15, %v445_v63  ;;  %v784_v15 = vsel %vm764_vm1, %v781_v42, %v783_v17  ;;  %v3250_v42 = vld [vmem:[%s4667_s5 + $0x1c8] sm:$0xff]   ;;  %v702_v14 = vrot.slane %v3958_v22, 1  ;;  %v3253_v45 = vld [vmem:[%s4667_s5 + $0x1c0] sm:$0xff]  }
  0x9a   : > { %1637 = vmatprep.mubr.bf16.mxu0 %v3917_v19  ;;  %v3967_v54 = vpack.c.bf16 %v3851_v25, %v3845_v62  ;;  %v3972_v17 = vpack.c.bf16 %v844_v23, %v842_v24  ;;  %v3974_v27 = vpack.c.bf16 %v701_v18, %v699_v39  ;;  %547 = vst [vmem:[#allocation2 + $0x181] sm:$0xff] %v514_v41  ;;  %v703_v63 = vrot.slane %v3960_v50, 1  ;;  %v4003_v39 = vld [vmem:[#allocation2 + $0x110] sm:$0xff]  ;;  %v4005_v18 = vld [vmem:[#allocation2 + $0x118] sm:$0x3] }
  0x9b   : > { %1751 = vmatmul.mubr.bf16.gmra.mxu1 %v3894_v29  ;;  %v515_v9 = vmax.f32 %v483_v48, 0.0  ;;  %v705_v46 = vrot.slane %v3962_v47, 1  ;;  %v786_v60 = vrot.slane %v3631_v35, 2  ;;  %v788_v49 = vrot.slane %v3640_v44, 2  ;;  %v3255_v44 = vld [vmem:[%s4667_s5 + $0x180] sm:$0xff]  }
  0x9c   : > { %1758 = vmatprep.mubr.bf16.mxu1 %v3770_v8  ;;  %2988 = vmatpush3.bf16.msra.mxu1 %v3246_v12  ;;  %v3976_v12 = vpack.c.bf16 %v784_v15, %v782_v6  ;;  %v4001_v6 = vld [vmem:[#allocation2 + $0x108] sm:$0xff]  ;;  %v710_v23 = vrot.slane %v4005_v18, 1 }
  0x9d   : > { %2989 = vmatprep.subr.bf16.mxu1 %v3247_v55  ;;  %548 = vst [vmem:[#allocation2 + $0x189] sm:$0xff] %v515_v9  ;;  %v785_v55 = vrot.slane %v3629_v30, 2  ;;  %v704_v30 = vsel %vm651_vm0, %v702_v14, %v703_v63  ;;  %v706_v35 = vsel %vm651_vm0, %v703_v63, %v705_v46  ;;  %v789_v20 = vsel %vm764_vm1, %v786_v60, %v788_v49 }
  0x9e   : > { %v4011_v24 = vpack.c.bf16 %v706_v35, %v704_v30  ;;  %v707_v41 = vrot.slane %v4001_v6, 1  ;;  %v708_v9 = vrot.slane %v4003_v39, 1  ;;  %v791_v14 = vrot.slane %v3740_v21, 2 }
  0x9f   : > { %v787_v48 = vsel %vm764_vm1, %v785_v55, %v786_v60  ;;  %v793_v63 = vrot.slane %v3742_v36, 2  ;;  %v4031_v21 = vpack.c.bf16 %v3960_v50, %v3958_v22  ;;  %v798_v30 = vrot.slane %v3765_v38, 2 }
  0xa0   : > { %2990 = vmatpush3.bf16.msra.mxu1 %v3249_v58  ;;  %v4009_v58 = vpack.c.bf16 %v3891_v40, %v3889_v51  ;;  %v4013_v15 = vpack.c.bf16 %v789_v20, %v787_v48  ;;  %v709_v46 = vsel %vm651_vm0, %v707_v41, %v708_v9  ;;  %v711_v55 = vsel %vm651_vm0, %v708_v9, %v710_v23 }
  0xa1   : > { %1638 = vmatmul.mubr.bf16.gmra.mxu0 %v3967_v54  ;;  %2991 = vmatprep.subr.bf16.mxu1 %v3250_v42  ;;  %v790_v42 = vrot.slane %v3738_v61, 2  ;;  %v794_v61 = vsel %vm764_vm1, %v791_v14, %v793_v63  ;;  %v4033_v36 = vpack.c.bf16 %v711_v55, %v709_v46  ;;  %v4048_v48 = vpack.c.bf16 %v4003_v39, %v4001_v6  ;;  %v3256_v46 = vld [vmem:[%s4667_s5 + $0x218] sm:$0xff]   ;;  %v3257_v55 = vld [vmem:[%s4667_s5 + $0x210] sm:$0xff]  }
  0xa2   : > { %1645 = vmatprep.mubr.bf16.mxu0 %v3974_v27  ;;  %v801_v38 = vrot.slane %v3808_v3, 2  ;;  %v803_v20 = vrot.slane %v3799_v10, 2  ;;  %v3248_v3 = vld [vmem:[%s4667_s5 + $0x230] sm:$0xff]   ;;  %v806_v10 = vrot.slane %v3851_v25, 2  ;;  %v813_v63 = vrot.slane %v3898_v32, 2 }
  0xa3   : > { %1759 = vmatmul.mubr.bf16.gmra.mxu1 %v3976_v12  ;;  %v792_v60 = vsel %vm764_vm1, %v790_v42, %v791_v14  ;;  %v3251_v42 = vld [vmem:[%s4667_s5 + $0x228] sm:$0xff]   ;;  %v811_v14 = vrot.slane %v3891_v40, 2 }
  0xa4   : > { %1766 = vmatprep.mubr.bf16.mxu1 %v3815_v37  ;;  %2992 = vmatpush3.bf16.msra.mxu1 %v3252_v13  ;;  %v4035_v49 = vpack.c.bf16 %v794_v61, %v792_v60  ;;  %v795_v13 = vrot.slane %v3758_v57, 2  ;;  %v804_v9 = vsel %vm764_vm1, %v801_v38, %v803_v20  ;;  %v815_v60 = vrot.slane %v3958_v22, 2 }
  0xa5   : > { %2993 = vmatprep.subr.bf16.mxu1 %v3253_v45  ;;  %v796_v45 = vrot.slane %v3763_v7, 2  ;;  %v800_v7 = vrot.slane %v3797_v34, 2  ;;  %v805_v34 = vrot.slane %v3845_v62, 2  ;;  %v814_v40 = vsel %vm764_vm1, %v811_v14, %v813_v63 }
  0xa6   : > { %v816_v61 = vrot.slane %v3960_v50, 2 }
  0xa7   : > { %v797_v35 = vsel %vm764_vm1, %v795_v13, %v796_v45  ;;  %v802_v41 = vsel %vm764_vm1, %v800_v7, %v801_v38  ;;  %v807_v62 = vsel %vm764_vm1, %v805_v34, %v806_v10  ;;  %v818_v13 = vrot.slane %v3962_v47, 2  ;;  %v4143_v34 = vld [vmem:[#allocation2 + $0x188] sm:$0xff] }
  0xa8   : > { %2994 = vmatpush3.bf16.msra.mxu1 %v3255_v44  ;;  %v799_v44 = vsel %vm764_vm1, %v796_v45, %v798_v30  ;;  %v4061_v23 = vpack.c.bf16 %v804_v9, %v802_v41  ;;  %v3258_v45 = vld [vmem:[%s4667_s5 + $0x208] sm:$0xff]   ;;  %v817_v22 = vsel %vm764_vm1, %v815_v60, %v816_v61  ;;  %v3259_v30 = vld [vmem:[%s4667_s5 + $0x200] sm:$0xff]   ;;  %v823_v7 = vrot.slane %v4005_v18, 2  ;;  %v4700_v41 = vld [vmem:[#allocation8_spill] sm:$0xff] }
  0xa9   : > { %1646 = vmatmul.mubr.bf16.gmra.mxu0 %v4009_v58  ;;  %v4050_v57 = vpack.c.bf16 %v799_v44, %v797_v35  ;;  %v819_v50 = vsel %vm764_vm1, %v816_v61, %v818_v13  ;;  %v820_v35 = vrot.slane %v4001_v6, 2  ;;  %v821_v44 = vrot.slane %v4003_v39, 2  ;;  %v4698_v39 = vld [vmem:[#allocation10_spill] sm:$0xff]  ;;  %v4699_v18 = vld [vmem:[#allocation5_spill] sm:$0xff]  ;;  %v4701_v9 = vld [vmem:[#allocation11_spill] sm:$0xff] }
  0xaa   : > { %1653 = vmatprep.mubr.bf16.mxu0 %v4011_v24  ;;  %v4113_v47 = vpack.c.bf16 %v819_v50, %v817_v22  ;;  %v881_v22 = vrot.slane %v4143_v34, 1 }
  0xab   : > { %1767 = vmatmul.mubr.bf16.gmra.mxu1 %v4013_v15  ;;  %v822_v38 = vsel %vm764_vm1, %v820_v35, %v821_v44  ;;  %v824_v20 = vsel %vm764_vm1, %v821_v44, %v823_v7 }
  0xac   : > { %1774 = vmatprep.mubr.bf16.mxu1 %v3857_v26  ;;  %v4127_v6 = vpack.c.bf16 %v824_v20, %v822_v38 }
  0xb1   : > { %1654 = vmatmul.mubr.bf16.gmra.mxu0 %v4031_v21 }
  0xb2   : > { %1661 = vmatprep.mubr.bf16.mxu0 %v4033_v36 }
  0xb3   : > { %1775 = vmatmul.mubr.bf16.gmra.mxu1 %v4035_v49 }
  0xb4   : > { %1782 = vmatprep.mubr.bf16.mxu1 %v3906_v2 }
  0xb9   : > { %1662 = vmatmul.mubr.bf16.gmra.mxu0 %v4048_v48 }
  0xba   : > { %1895 = vmatprep.mubr.bf16.mxu0 %v3868_v56  ;;  %v808_v56 = vrot.slane %v3853_v28, 2 }
  0xbb   : > { %1783 = vmatmul.mubr.bf16.gmra.mxu1 %v4050_v57 }
  0xbc   : > { %1790 = vmatprep.mubr.bf16.mxu1 %v3967_v54  ;;  %v809_v25 = vsel %vm764_vm1, %v806_v10, %v808_v56 }
  0xbd   : > { %v4079_v28 = vpack.c.bf16 %v809_v25, %v807_v62 }
  0xc1   : > { %1896 = vmatmul.mubr.bf16.vlgmr.msra.gmra.mxu0 %v3563_v43  ;;  %v3254_v43 = vld [vmem:[%s4667_s5 + $0x220] sm:$0xff]  }
  0xc2   : > { %1903 = vmatprep.mubr.bf16.mxu0 %v3894_v29  ;;  %3116 = vmatpush3.bf16.msra.mxu0 %v3730_v5  ;;  %v810_v5 = vrot.slane %v3889_v51, 2 }
  0xc3   : > { %1791 = vmatmul.mubr.bf16.gmra.mxu1 %v4061_v23  ;;  %3117 = vmatprep.subr.bf16.mxu0 %v3248_v3 }
  0xc4   : > { %1798 = vmatprep.mubr.bf16.mxu1 %v4009_v58  ;;  %v812_v51 = vsel %vm764_vm1, %v810_v5, %v811_v14  ;;  %v4703_v14 = vld [vmem:[#allocation3_spill] sm:$0xff] }
  0xc5   : > { %v4096_v32 = vpack.c.bf16 %v814_v40, %v812_v51  ;;  %v4705_v40 = vld [vmem:[#allocation6_spill] sm:$0xff] }
  0xc6   : > { %3118 = vmatpush3.bf16.msra.mxu0 %v3248_v3  ;;  %v4141_v3 = vld [vmem:[#allocation2 + $0x180] sm:$0xff] }
  0xc7   : > { %3119 = vmatprep.subr.bf16.mxu0 %v3251_v42  ;;  %v4147_v10 = vpack.c.bf16 %v4143_v34, %v4141_v3  ;;  %v887_v63 = vrot.slane %v4141_v3, 2  ;;  %v880_v61 = vrot.slane %v4141_v3, 1 }
  0xc9   : > { %1904 = vmatmul.mubr.bf16.gmra.mxu0 %v3603_v0  ;;  %v882_v3 = vsel %vm651_vm0, %v880_v61, %v881_v22 }
  0xca   : > { %1911 = vmatprep.mubr.bf16.mxu0 %v3976_v12  ;;  %3120 = vmatpush3.bf16.msra.mxu0 %v3251_v42 }
  0xcb   : > { %1799 = vmatmul.mubr.bf16.gmra.mxu1 %v4079_v28  ;;  %3121 = vmatprep.subr.bf16.mxu0 %v3254_v43 }
  0xcc   : > { %1806 = vmatprep.mubr.bf16.mxu1 %v4031_v21 }
  0xce   : > { %3122 = vmatpush3.bf16.msra.mxu0 %v3254_v43 }
  0xcf   : > { %3123 = vmatprep.subr.bf16.mxu0 %v3256_v46 }
  0xd1   : > { %1912 = vmatmul.mubr.bf16.gmra.mxu0 %v3657_v52 }
  0xd2   : > { %1919 = vmatprep.mubr.bf16.mxu0 %v4013_v15  ;;  %3124 = vmatpush3.bf16.msra.mxu0 %v3256_v46 }
  0xd3   : > { %1807 = vmatmul.mubr.bf16.gmra.mxu1 %v4096_v32  ;;  %3125 = vmatprep.subr.bf16.mxu0 %v3257_v55 }
  0xd4   : > { %1814 = vmatprep.mubr.bf16.mxu1 %v4048_v48 }
  0xd6   : > { %3126 = vmatpush3.bf16.msra.mxu0 %v3257_v55 }
  0xd7   : > { %3127 = vmatprep.subr.bf16.mxu0 %v3258_v45 }
  0xd9   : > { %1920 = vmatmul.mubr.bf16.gmra.mxu0 %v3713_v4 }
  0xda   : > { %1927 = vmatprep.mubr.bf16.mxu0 %v4035_v49  ;;  %3128 = vmatpush3.bf16.msra.mxu0 %v3258_v45 }
  0xdb   : > { %1815 = vmatmul.mubr.bf16.gmra.mxu1 %v4113_v47  ;;  %3129 = vmatprep.subr.bf16.mxu0 %v3259_v30 }
  0xdc   : > { %1822 = vmatprep.mubr.bf16.mxu1 %v3548_v31 }
  0xde   : > { %3130 = vmatpush3.bf16.msra.mxu0 %v3259_v30 }
  0xe1   : > { %1928 = vmatmul.mubr.bf16.gmra.mxu0 %v4698_v39 }
  0xe2   : > { %1935 = vmatprep.mubr.bf16.mxu0 %v4050_v57 }
  0xe3   : > { %1823 = vmatmul.mubr.bf16.gmra.mxu1 %v4127_v6 }
  0xe4   : > { %1830 = vmatprep.mubr.bf16.mxu1 %v4699_v18 }
  0xe9   : > { %1936 = vmatmul.mubr.bf16.gmra.mxu0 %v3818_v11 }
  0xea   : > { %1943 = vmatprep.mubr.bf16.mxu0 %v4061_v23 }
  0xeb   : > { %1831 = vmatmul.mubr.bf16.gmra.mxu1 %v3912_v53 }
  0xec   : > { %1838 = vmatprep.mubr.bf16.mxu1 %v4700_v41 }
  0xf1   : > { %1944 = vmatmul.mubr.bf16.gmra.mxu0 %v3865_v33 }
  0xf2   : > { %1951 = vmatprep.mubr.bf16.mxu0 %v4079_v28 }
  0xf3   : > { %1839 = vmatmul.mubr.bf16.gmra.mxu1 %v3937_v59 }
  0xf4   : > { %1846 = vmatprep.mubr.bf16.mxu1 %v4701_v9 }
  0xf9   : > { %1952 = vmatmul.mubr.bf16.gmra.mxu0 %v3917_v19 }
  0xfa   : > { %1959 = vmatprep.mubr.bf16.mxu0 %v4096_v32 }
  0xfb   : > { %1847 = vmatmul.mubr.bf16.gmra.mxu1 %v3943_v1 }
  0xfc   : > { %1854 = vmatprep.mubr.bf16.mxu1 %v4147_v10 }
 0x101   : > { %1960 = vmatmul.mubr.bf16.gmra.mxu0 %v3974_v27 }
 0x102   : > { %1967 = vmatprep.mubr.bf16.mxu0 %v4113_v47 }
 0x103   : > { %1855 = vmatmul.mubr.bf16.gmra.mxu1 %v3972_v17 }
 0x104   : > { %2056 = vmatprep.mubr.bf16.mxu1 %v3603_v0  ;;  %v4702_v0 = vld [vmem:[#allocation7_spill] sm:$0xff] }
 0x109   : > { %1968 = vmatmul.mubr.bf16.gmra.mxu0 %v4011_v24 }
 0x10a   : > { %1975 = vmatprep.mubr.bf16.mxu0 %v4127_v6 }
 0x10b   : > { %2057 = vmatmul.mubr.bf16.vlgmr.msra.gmra.mxu1 %v3648_v16  ;;  %v4704_v16 = vld [vmem:[#allocation4_spill] sm:$0xff] }
 0x10c   : > { %2064 = vmatprep.mubr.bf16.mxu1 %v3657_v52  ;;  %v599_v52 = vld [vmem:[#allocation2 + $0x190] sm:$0x3] }
 0x10d   : > { %v890_v46 = vrot.slane %v599_v52, 2 }
 0x111   : > { %v2659_v56 = vpop.f32.mrf.mxu0  ;;  %1976 = vmatmul.mubr.bf16.gmra.mxu0 %v4033_v36 }
 0x112   : > { %1983 = vmatprep.mubr.bf16.mxu0 %v3912_v53 }
 0x113   : > { %v2660_v42 = vpop.f32.mrf.mxu0  ;;  %2065 = vmatmul.mubr.bf16.gmra.mxu1 %v4702_v0 }
 0x114   : > { %v4159_v62 = vadd.f32 %v2660_v42, %v2659_v56  ;;  %2072 = vmatprep.mubr.bf16.mxu1 %v3713_v4  ;;  %v888_v4 = vrot.slane %v4143_v34, 2 }
 0x115   : > { %v2662_v25 = vpop.f32.mrf.mxu0 }
 0x116   : > { %v889_v60 = vsel %vm764_vm1, %v887_v63, %v888_v4 }
 0x117   : > { %v2663_v43 = vpop.f32.mrf.mxu0 }
 0x118   : > { %v4163_v5 = vadd.f32 %v2663_v43, %v2662_v25 }
 0x119   : > { %1984 = vmatmul.mubr.bf16.gmra.mxu0 %v4703_v14 }
 0x11a   : > { %1991 = vmatprep.mubr.bf16.mxu0 %v3937_v59 }
 0x11b   : > { %2073 = vmatmul.mubr.bf16.gmra.mxu1 %v3770_v8 }
 0x11c   : > { %2080 = vmatprep.mubr.bf16.mxu1 %v4698_v39  ;;  %v4706_v39 = vld [vmem:[#allocation9_spill] sm:$0xff] }
 0x121   : > { %1992 = vmatmul.mubr.bf16.gmra.mxu0 %v4704_v16 }
 0x122   : > { %1999 = vmatprep.mubr.bf16.mxu0 %v3943_v1 }
 0x123   : > { %2081 = vmatmul.mubr.bf16.gmra.mxu1 %v3815_v37  ;;  %v891_v37 = vsel %vm764_vm1, %v888_v4, %v890_v46 }
 0x124   : > { %2088 = vmatprep.mubr.bf16.mxu1 %v3818_v11  ;;  %v4191_v30 = vpack.c.bf16 %v891_v37, %v889_v60 }
 0x129   : > { %v2665_v51 = vpop.f32.mrf.mxu0  ;;  %2000 = vmatmul.mubr.bf16.gmra.mxu0 %v4705_v40 }
 0x12a   : > { %2007 = vmatprep.mubr.bf16.mxu0 %v3972_v17 }
 0x12b   : > { %v2731_v8 = vpop.f32.mrf.mxu1  ;;  %2089 = vmatmul.mubr.bf16.gmra.mxu1 %v3857_v26  ;;  %v2666_v55 = vpop.f32.mrf.mxu0  ;;  %v883_v26 = vrot.slane %v599_v52, 1 }
 0x12c   : > { %v4184_v11 = vadd.f32 %v2666_v55, %v2665_v51  ;;  %2096 = vmatprep.mubr.bf16.mxu1 %v3865_v33 }
 0x12d   : > { %v2732_v13 = vpop.f32.mrf.mxu1  ;;  %v2668_v45 = vpop.f32.mrf.mxu0  ;;  %v884_v34 = vsel %vm651_vm0, %v881_v22, %v883_v26 }
 0x12e   : > { %v4189_v50 = vadd.f32 %v2732_v13, %v2731_v8  ;;  %v4205_v52 = vpack.c.bf16 %v884_v34, %v882_v3 }
 0x12f   : > { %v2734_v35 = vpop.f32.mrf.mxu1  ;;  %v2669_v44 = vpop.f32.mrf.mxu0 }
 0x130   : > { %v4193_v7 = vadd.f32 %v2669_v44, %v2668_v45 }
 0x131   : > { %v2735_v38 = vpop.f32.mrf.mxu1  ;;  %v2671_v20 = vpop.f32.mrf.mxu0  ;;  %2008 = vmatmul.mubr.bf16.gmra.mxu0 %v4706_v39 }
 0x132   : > { %v4196_v33 = vadd.f32 %v2735_v38, %v2734_v35  ;;  %2015 = vmatprep.mubr.bf16.mxu0 %v4191_v30 }
 0x133   : > { %v2737_v56 = vpop.f32.mrf.mxu1  ;;  %2097 = vmatmul.mubr.bf16.gmra.mxu1 %v3906_v2  ;;  %v2672_v42 = vpop.f32.mrf.mxu0 }
 0x134   : > { %v4202_v25 = vadd.f32 %v2672_v42, %v2671_v20  ;;  %2104 = vmatprep.mubr.bf16.mxu1 %v3917_v19 }
 0x135   : > { %v2738_v43 = vpop.f32.mrf.mxu1  ;;  %v2674_v0 = vpop.f32.mrf.mxu0 }
 0x136   : > { %v4207_v63 = vadd.f32 %v2738_v43, %v2737_v56 }
 0x137   : > { %v2740_v4 = vpop.f32.mrf.mxu1  ;;  %v2675_v46 = vpop.f32.mrf.mxu0 }
 0x138   : > { %v4209_v51 = vadd.f32 %v2675_v46, %v2674_v0 }
 0x139   : > { %v2741_v8 = vpop.f32.mrf.mxu1  ;;  %v2677_v55 = vpop.f32.mrf.mxu0  ;;  %2016 = vmatmul.mubr.bf16.gmra.mxu0 %v4205_v52 }
 0x13a   : > { %v4212_v2 = vadd.f32 %v2741_v8, %v2740_v4  ;;  %3131 = vmatprep.mubr.bf16.mxu0 %v3894_v29 }
 0x13b   : > { %v2743_v60 = vpop.f32.mrf.mxu1  ;;  %2105 = vmatmul.mubr.bf16.gmra.mxu1 %v3967_v54  ;;  %v2678_v19 = vpop.f32.mrf.mxu0 }
 0x13c   : > { %v4216_v37 = vadd.f32 %v2678_v19, %v2677_v55  ;;  %2112 = vmatprep.mubr.bf16.mxu1 %v3974_v27 }
 0x13d   : > { %v2744_v61 = vpop.f32.mrf.mxu1  ;;  %v2680_v13 = vpop.f32.mrf.mxu0 }
 0x13e   : > { %v4219_v45 = vadd.f32 %v2744_v61, %v2743_v60 }
 0x13f   : > { %v2746_v22 = vpop.f32.mrf.mxu1  ;;  %v2681_v26 = vpop.f32.mrf.mxu0 }
 0x140   : > { %v4221_v35 = vadd.f32 %v2681_v26, %v2680_v13 }
 0x141   : > { %v2747_v44 = vpop.f32.mrf.mxu1  ;;  %v2683_v38 = vpop.f32.mrf.mxu0  ;;  %3132 = vmatmul.mubr.bf16.vlgmr.msra.gmra.mxu0 %v3976_v12 }
 0x142   : > { %v4224_v29 = vadd.f32 %v2747_v44, %v2746_v22  ;;  %3135 = vmatprep.mubr.bf16.mxu0 %v4013_v15 }
 0x143   : > { %v2749_v54 = vpop.f32.mrf.mxu1  ;;  %2113 = vmatmul.mubr.bf16.gmra.mxu1 %v4009_v58  ;;  %v2684_v27 = vpop.f32.mrf.mxu0 }
 0x144   : > { %v4228_v20 = vadd.f32 %v2684_v27, %v2683_v38  ;;  %2120 = vmatprep.mubr.bf16.mxu1 %v4011_v24 }
 0x145   : > { %v2750_v3 = vpop.f32.mrf.mxu1  ;;  %v2686_v34 = vpop.f32.mrf.mxu0 }
 0x146   : > { %v4231_v56 = vadd.f32 %v2750_v3, %v2749_v54 }
 0x147   : > { %v2752_v42 = vpop.f32.mrf.mxu1  ;;  %v2687_v43 = vpop.f32.mrf.mxu0 }
 0x148   : > { %v4233_v0 = vadd.f32 %v2687_v43, %v2686_v34 }
 0x149   : > { %v2753_v12 = vpop.f32.mrf.mxu1  ;;  %v2689_v4 = vpop.f32.mrf.mxu0  ;;  %3136 = vmatmul.mubr.bf16.gmra.mxu0 %v4035_v49 }
 0x14a   : > { %v4236_v15 = vadd.f32 %v2753_v12, %v2752_v42  ;;  %3139 = vmatprep.mubr.bf16.mxu0 %v4050_v57 }
 0x14b   : > { %v2771_v58 = vpop.f32.mrf.mxu1  ;;  %2121 = vmatmul.mubr.bf16.gmra.mxu1 %v4031_v21  ;;  %v2690_v24 = vpop.f32.mrf.mxu0 }
 0x14c   : > { %v4240_v46 = vadd.f32 %v2690_v24, %v2689_v4  ;;  %2128 = vmatprep.mubr.bf16.mxu1 %v4033_v36 }
 0x14d   : > { %v2772_v8 = vpop.f32.mrf.mxu1  ;;  %v2692_v55 = vpop.f32.mrf.mxu0 }
 0x14e   : > { %v2773_v60 = vadd.f32 %v2772_v8, %v2771_v58 }
 0x14f   : > { %v2774_v19 = vpop.f32.mrf.mxu1  ;;  %v2693_v61 = vpop.f32.mrf.mxu0 }
 0x150   : > { %v4244_v13 = vadd.f32 %v2773_v60, %v4159_v62  ;;  %v4246_v49 = vadd.f32 %v2693_v61, %v2692_v55 }
 0x151   : > { %v2775_v22 = vpop.f32.mrf.mxu1  ;;  %v2695_v57 = vpop.f32.mrf.mxu0  ;;  %3140 = vmatmul.mubr.bf16.gmra.mxu0 %v4061_v23 }
 0x152   : > { %v2776_v21 = vadd.f32 %v2775_v22, %v2774_v19  ;;  %3143 = vmatprep.mubr.bf16.mxu0 %v4079_v28 }
 0x153   : > { %v2777_v26 = vpop.f32.mrf.mxu1  ;;  %2129 = vmatmul.mubr.bf16.gmra.mxu1 %v4048_v48  ;;  %v2696_v36 = vpop.f32.mrf.mxu0 }
 0x154   : > { %v4252_v44 = vadd.f32 %v2776_v21, %v4163_v5  ;;  %v4254_v38 = vadd.f32 %v2696_v36, %v2695_v57  ;;  %2136 = vmatprep.mubr.bf16.mxu1 %v4703_v14 }
 0x155   : > { %v2778_v62 = vpop.f32.mrf.mxu1  ;;  %v2698_v54 = vpop.f32.mrf.mxu0 }
 0x156   : > { %v2779_v27 = vadd.f32 %v2778_v62, %v2777_v26 }
 0x157   : > { %v2780_v3 = vpop.f32.mrf.mxu1  ;;  %v2699_v34 = vpop.f32.mrf.mxu0 }
 0x158   : > { %v4258_v23 = vadd.f32 %v2779_v27, %v4184_v11  ;;  %v4260_v28 = vadd.f32 %v2699_v34, %v2698_v54  ;;  %v4293_v27 = vld [vmem:[#allocation2 + $0x198] sm:$0xff]  ;;  %v602_v34 = vld [vmem:[#allocation2 + $0x1a8] sm:$0x3] }
 0x159   : > { %v2781_v42 = vpop.f32.mrf.mxu1  ;;  %v2701_v48 = vpop.f32.mrf.mxu0  ;;  %3144 = vmatmul.mubr.bf16.gmra.mxu0 %v4096_v32 }
 0x15a   : > { %v2782_v5 = vadd.f32 %v2781_v42, %v2780_v3  ;;  %3147 = vmatprep.mubr.bf16.mxu0 %v4113_v47  ;;  %v4295_v3 = vld [vmem:[#allocation2 + $0x1a0] sm:$0xff] }
 0x15b   : > { %v2783_v43 = vpop.f32.mrf.mxu1  ;;  %2137 = vmatmul.mubr.bf16.gmra.mxu1 %v3548_v31  ;;  %v2702_v14 = vpop.f32.mrf.mxu0 }
 0x15c   : > { %v4266_v12 = vadd.f32 %v2782_v5, %v4193_v7  ;;  %v4268_v4 = vadd.f32 %v2702_v14, %v2701_v48  ;;  %2144 = vmatprep.mubr.bf16.mxu1 %v4704_v16 }
 0x15d   : > { %v2784_v11 = vpop.f32.mrf.mxu1  ;;  %v2704_v58 = vpop.f32.mrf.mxu0 }
 0x15e   : > { %v2785_v24 = vadd.f32 %v2784_v11, %v2783_v43  ;;  %v907_v43 = vrot.slane %v602_v34, 2 }
 0x15f   : > { %v2786_v8 = vpop.f32.mrf.mxu1  ;;  %v2705_v55 = vpop.f32.mrf.mxu0 }
 0x160   : > { %v4272_v32 = vadd.f32 %v2785_v24, %v4202_v25  ;;  %v4274_v47 = vadd.f32 %v2705_v55, %v2704_v58  ;;  %v898_v55 = vrot.slane %v4295_v3, 1 }
 0x161   : > { %v2787_v60 = vpop.f32.mrf.mxu1  ;;  %v2707_v31 = vpop.f32.mrf.mxu0  ;;  %3148 = vmatmul.mubr.bf16.gmra.mxu0 %v4127_v6 }
 0x162   : > { %v2788_v7 = vadd.f32 %v2787_v60, %v2786_v8  ;;  %3151 = vmatprep.mubr.bf16.mxu0 %v3912_v53  ;;  %v900_v60 = vrot.slane %v602_v34, 1 }
 0x163   : > { %v2789_v19 = vpop.f32.mrf.mxu1  ;;  %2145 = vmatmul.mubr.bf16.gmra.mxu1 %v4699_v18  ;;  %v2708_v16 = vpop.f32.mrf.mxu0 }
 0x164   : > { %v4280_v61 = vadd.f32 %v2788_v7, %v4209_v51  ;;  %v4282_v22 = vadd.f32 %v2708_v16, %v2707_v31  ;;  %2152 = vmatprep.mubr.bf16.mxu1 %v4705_v40 }
 0x165   : > { %v2790_v25 = vpop.f32.mrf.mxu1  ;;  %v2710_v57 = vpop.f32.mrf.mxu0 }
 0x166   : > { %v2791_v21 = vadd.f32 %v2790_v25, %v2789_v19 }
 0x167   : > { %v2792_v26 = vpop.f32.mrf.mxu1  ;;  %v2711_v36 = vpop.f32.mrf.mxu0 }
 0x168   : > { %v4286_v6 = vadd.f32 %v2791_v21, %v4216_v37  ;;  %v4288_v53 = vadd.f32 %v2711_v36, %v2710_v57  ;;  %v901_v36 = vsel %vm651_vm0, %v898_v55, %v900_v60 }
 0x169   : > { %v2793_v62 = vpop.f32.mrf.mxu1  ;;  %v2713_v18 = vpop.f32.mrf.mxu0  ;;  %3152 = vmatmul.mubr.bf16.gmra.mxu0 %v3937_v59 }
 0x16a   : > { %v2794_v51 = vadd.f32 %v2793_v62, %v2792_v26  ;;  %3155 = vmatprep.mubr.bf16.mxu0 %v3943_v1  ;;  %v904_v1 = vrot.slane %v4293_v27, 2 }
 0x16b   : > { %v2795_v54 = vpop.f32.mrf.mxu1  ;;  %2153 = vmatmul.mubr.bf16.gmra.mxu1 %v4700_v41  ;;  %v2714_v40 = vpop.f32.mrf.mxu0  ;;  %v905_v41 = vrot.slane %v4295_v3, 2 }
 0x16c   : > { %v4298_v37 = vadd.f32 %v2794_v51, %v4221_v35  ;;  %v4300_v42 = vadd.f32 %v2714_v40, %v2713_v18  ;;  %2160 = vmatprep.mubr.bf16.mxu1 %v4706_v39  ;;  %v897_v39 = vrot.slane %v4293_v27, 1 }
 0x16d   : > { %v2796_v59 = vpop.f32.mrf.mxu1  ;;  %v2716_v48 = vpop.f32.mrf.mxu0  ;;  %v906_v7 = vsel %vm764_vm1, %v904_v1, %v905_v41  ;;  %v908_v19 = vsel %vm764_vm1, %v905_v41, %v907_v43 }
 0x16e   : > { %v2797_v5 = vadd.f32 %v2796_v59, %v2795_v54  ;;  %v964_v26 = vpack.c.bf16 %v908_v19, %v906_v7 }
 0x16f   : > { %v2798_v14 = vpop.f32.mrf.mxu1  ;;  %v2717_v11 = vpop.f32.mrf.mxu0 }
 0x170   : > { %v4306_v58 = vadd.f32 %v2797_v5, %v4228_v20  ;;  %v4308_v24 = vadd.f32 %v2717_v11, %v2716_v48 }
 0x171   : > { %v2799_v35 = vpop.f32.mrf.mxu1  ;;  %v2719_v8 = vpop.f32.mrf.mxu0  ;;  %3156 = vmatmul.mubr.bf16.gmra.mxu0 %v3972_v17 }
 0x172   : > { %v2800_v31 = vadd.f32 %v2799_v35, %v2798_v14  ;;  %3159 = vmatprep.mubr.bf16.mxu0 %v4191_v30  ;;  %v899_v30 = vsel %vm651_vm0, %v897_v39, %v898_v55  ;;  %v962_v35 = vpack.c.bf16 %v4295_v3, %v4293_v27 }
 0x173   : > { %v2801_v20 = vpop.f32.mrf.mxu1  ;;  %2161 = vmatmul.mubr.bf16.gmra.mxu1 %v4701_v9  ;;  %v2720_v16 = vpop.f32.mrf.mxu0 }
 0x174   : > { %v4318_v25 = vadd.f32 %v2800_v31, %v4233_v0  ;;  %v4320_v17 = vadd.f32 %v2720_v16, %v2719_v8  ;;  %2168 = vmatprep.mubr.bf16.mxu1 %v4205_v52  ;;  %v963_v0 = vpack.c.bf16 %v901_v36, %v899_v30 }
 0x175   : > { %v2802_v57 = vpop.f32.mrf.mxu1  ;;  %v2722_v21 = vpop.f32.mrf.mxu0 }
 0x176   : > { %v2803_v62 = vadd.f32 %v2802_v57, %v2801_v20 }
 0x177   : > { %v2804_v18 = vpop.f32.mrf.mxu1  ;;  %v2723_v51 = vpop.f32.mrf.mxu0 }
 0x178   : > { %v4326_v9 = vadd.f32 %v2803_v62, %v4240_v46  ;;  %v4328_v54 = vadd.f32 %v2723_v51, %v2722_v21 }
 0x179   : > { %v2805_v40 = vpop.f32.mrf.mxu1  ;;  %v2725_v34 = vpop.f32.mrf.mxu0  ;;  %3160 = vmatmul.mubr.bf16.gmra.mxu0 %v964_v26 }
 0x17a   : > { %v2806_v52 = vadd.f32 %v2805_v40, %v2804_v18 }
 0x17b   : > { %v2807_v59 = vpop.f32.mrf.mxu1  ;;  %2169 = vmatmul.mubr.bf16.gmra.mxu1 %v4147_v10  ;;  %v2726_v48 = vpop.f32.mrf.mxu0 }
 0x17c   : > { %v4332_v5 = vadd.f32 %v2806_v52, %v4246_v49  ;;  %v4334_v1 = vadd.f32 %v2726_v48, %v2725_v34  ;;  %2176 = vmatprep.mubr.bf16.mxu1 %v963_v0 }
 0x17d   : > { %v2808_v41 = vpop.f32.mrf.mxu1  ;;  %v2728_v46 = vpop.f32.mrf.mxu0 }
 0x17e   : > { %v2809_v43 = vadd.f32 %v2808_v41, %v2807_v59 }
 0x17f   : > { %v2810_v14 = vpop.f32.mrf.mxu1  ;;  %v2729_v11 = vpop.f32.mrf.mxu0 }
 0x180   : > { %v4339_v8 = vadd.f32 %v2809_v43, %v4254_v38  ;;  %v4341_v39 = vadd.f32 %v2729_v11, %v2728_v46 }
 0x181   : > { %v2811_v10 = vpop.f32.mrf.mxu1  ;;  %v2883_v55 = vpop.f32.mrf.mxu0 }
 0x182   : > { %v2812_v49 = vadd.f32 %v2811_v10, %v2810_v14 }
 0x183   : > { %v2813_v60 = vpop.f32.mrf.mxu1  ;;  %2177 = vmatmul.mubr.bf16.gmra.mxu1 %v962_v35  ;;  %v2884_v31 = vpop.f32.mrf.mxu0 }
 0x184   : > { %v4344_v7 = vadd.f32 %v2812_v49, %v4260_v28  ;;  %v2885_v19 = vadd.f32 %v2884_v31, %v2883_v55 }
 0x185   : > { %v2814_v20 = vpop.f32.mrf.mxu1  ;;  %v2886_v16 = vpop.f32.mrf.mxu0 }
 0x186   : > { %v2815_v57 = vadd.f32 %v2814_v20, %v2813_v60  ;;  %v4347_v27 = vadd.f32 %v2885_v19, %v4244_v13 }
 0x187   : > { %v2816_v38 = vpop.f32.mrf.mxu1  ;;  %v2887_v3 = vpop.f32.mrf.mxu0 }
 0x188   : > { %v4350_v21 = vadd.f32 %v2815_v57, %v4268_v4  ;;  %v2888_v26 = vadd.f32 %v2887_v3, %v2886_v16 }
 0x189   : > { %v2817_v30 = vpop.f32.mrf.mxu1  ;;  %v2889_v36 = vpop.f32.mrf.mxu0 }
 0x18a   : > { %v2818_v62 = vadd.f32 %v2817_v30, %v2816_v38  ;;  %v4353_v18 = vadd.f32 %v2888_v26, %v4252_v44 }
 0x18b   : > { %v2819_v28 = vpop.f32.mrf.mxu1  ;;  %v2890_v51 = vpop.f32.mrf.mxu0 }
 0x18c   : > { %v4356_v0 = vadd.f32 %v2818_v62, %v4274_v47  ;;  %v2891_v40 = vadd.f32 %v2890_v51, %v2889_v36 }
 0x18d   : > { %v2820_v13 = vpop.f32.mrf.mxu1  ;;  %v2892_v34 = vpop.f32.mrf.mxu0 }
 0x18e   : > { %v2821_v52 = vadd.f32 %v2820_v13, %v2819_v28  ;;  %v4359_v59 = vadd.f32 %v2891_v40, %v4258_v23 }
 0x18f   : > { %v2822_v4 = vpop.f32.mrf.mxu1  ;;  %v2893_v48 = vpop.f32.mrf.mxu0 }
 0x190   : > { %v4362_v41 = vadd.f32 %v2821_v52, %v4282_v22  ;;  %v2894_v46 = vadd.f32 %v2893_v48, %v2892_v34 }
 0x191   : > { %v2823_v44 = vpop.f32.mrf.mxu1  ;;  %v2895_v43 = vpop.f32.mrf.mxu0 }
 0x192   : > { %v2824_v14 = vadd.f32 %v2823_v44, %v2822_v4  ;;  %v4365_v11 = vadd.f32 %v2894_v46, %v4266_v12 }
 0x193   : > { %v2825_v47 = vpop.f32.mrf.mxu1  ;;  %v2896_v35 = vpop.f32.mrf.mxu0 }
 0x194   : > { %v4368_v10 = vadd.f32 %v2824_v14, %v4288_v53  ;;  %v2897_v55 = vadd.f32 %v2896_v35, %v2895_v43 }
 0x195   : > { %v2826_v23 = vpop.f32.mrf.mxu1  ;;  %v2898_v49 = vpop.f32.mrf.mxu0 }
 0x196   : > { %v2827_v60 = vadd.f32 %v2826_v23, %v2825_v47  ;;  %v4371_v31 = vadd.f32 %v2897_v55, %v4272_v32 }
 0x197   : > { %v2828_v22 = vpop.f32.mrf.mxu1  ;;  %v2899_v19 = vpop.f32.mrf.mxu0 }
 0x198   : > { %v4374_v20 = vadd.f32 %v2827_v60, %v4300_v42  ;;  %v2900_v16 = vadd.f32 %v2899_v19, %v2898_v49 }
 0x199   : > { %v2829_v12 = vpop.f32.mrf.mxu1  ;;  %v2901_v57 = vpop.f32.mrf.mxu0 }
 0x19a   : > { %v2830_v38 = vadd.f32 %v2829_v12, %v2828_v22  ;;  %v4377_v3 = vadd.f32 %v2900_v16, %v4280_v61 }
 0x19b   : > { %v2831_v53 = vpop.f32.mrf.mxu1  ;;  %v2902_v26 = vpop.f32.mrf.mxu0 }
 0x19c   : > { %v4380_v30 = vadd.f32 %v2830_v38, %v4308_v24  ;;  %v2903_v36 = vadd.f32 %v2902_v26, %v2901_v57 }
 0x19d   : > { %v2832_v32 = vpop.f32.mrf.mxu1  ;;  %v2904_v62 = vpop.f32.mrf.mxu0 }
 0x19e   : > { %v2833_v28 = vadd.f32 %v2832_v32, %v2831_v53  ;;  %v4383_v51 = vadd.f32 %v2903_v36, %v4286_v6 }
 0x19f   : > { %v2834_v42 = vpop.f32.mrf.mxu1  ;;  %v2905_v40 = vpop.f32.mrf.mxu0 }
 0x1a0   : > { %v4386_v13 = vadd.f32 %v2833_v28, %v4320_v17  ;;  %v2906_v34 = vadd.f32 %v2905_v40, %v2904_v62 }
 0x1a1   : > { %v2835_v61 = vpop.f32.mrf.mxu1  ;;  %v2907_v52 = vpop.f32.mrf.mxu0 }
 0x1a2   : > { %v2836_v4 = vadd.f32 %v2835_v61, %v2834_v42  ;;  %v4389_v48 = vadd.f32 %v2906_v34, %v4298_v37 }
 0x1a3   : > { %v2837_v24 = vpop.f32.mrf.mxu1  ;;  %v2908_v46 = vpop.f32.mrf.mxu0 }
 0x1a4   : > { %v4392_v44 = vadd.f32 %v2836_v4, %v4328_v54  ;;  %v2909_v43 = vadd.f32 %v2908_v46, %v2907_v52 }
 0x1a5   : > { %v2838_v6 = vpop.f32.mrf.mxu1  ;;  %v2910_v14 = vpop.f32.mrf.mxu0 }
 0x1a6   : > { %v2839_v47 = vadd.f32 %v2838_v6, %v2837_v24  ;;  %v4395_v35 = vadd.f32 %v2909_v43, %v4306_v58 }
 0x1a7   : > { %v2840_v17 = vpop.f32.mrf.mxu1  ;;  %v2911_v55 = vpop.f32.mrf.mxu0 }
 0x1a8   : > { %v4398_v23 = vadd.f32 %v2839_v47, %v4334_v1  ;;  %v2912_v49 = vadd.f32 %v2911_v55, %v2910_v14 }
 0x1a9   : > { %v2841_v37 = vpop.f32.mrf.mxu1  ;;  %v2913_v60 = vpop.f32.mrf.mxu0 }
 0x1aa   : > { %v2842_v22 = vadd.f32 %v2841_v37, %v2840_v17  ;;  %v4401_v19 = vadd.f32 %v2912_v49, %v4318_v25 }
 0x1ab   : > { %v2843_v54 = vpop.f32.mrf.mxu1  ;;  %v2914_v16 = vpop.f32.mrf.mxu0 }
 0x1ac   : > { %v4404_v12 = vadd.f32 %v2842_v22, %v4341_v39  ;;  %v2915_v57 = vadd.f32 %v2914_v16, %v2913_v60 }
 0x1ad   : > { %v2844_v58 = vpop.f32.mrf.mxu1  ;;  %v2916_v38 = vpop.f32.mrf.mxu0 }
 0x1ae   : > { %v2845_v53 = vadd.f32 %v2844_v58, %v2843_v54  ;;  %v4407_v26 = vadd.f32 %v2915_v57, %v4326_v9 }
 0x1af   : > { %v2846_v1 = vpop.f32.mrf.mxu1  ;;  %v2917_v36 = vpop.f32.mrf.mxu0 }
 0x1b0   : > { %v4410_v32 = vadd.f32 %v2845_v53, %v4189_v50  ;;  %v2918_v62 = vadd.f32 %v2917_v36, %v2916_v38 }
 0x1b1   : > { %v2847_v25 = vpop.f32.mrf.mxu1  ;;  %v2919_v28 = vpop.f32.mrf.mxu0 }
 0x1b2   : > { %v2848_v42 = vadd.f32 %v2847_v25, %v2846_v1  ;;  %v4413_v40 = vadd.f32 %v2918_v62, %v4332_v5 }
 0x1b3   : > { %v2849_v39 = vpop.f32.mrf.mxu1  ;;  %v2920_v34 = vpop.f32.mrf.mxu0 }
 0x1b4   : > { %v4416_v61 = vadd.f32 %v2848_v42, %v4196_v33  ;;  %v2921_v52 = vadd.f32 %v2920_v34, %v2919_v28 }
 0x1b5   : > { %v2850_v9 = vpop.f32.mrf.mxu1  ;;  %v2922_v4 = vpop.f32.mrf.mxu0 }
 0x1b6   : > { %v2851_v24 = vadd.f32 %v2850_v9, %v2849_v39  ;;  %v4419_v46 = vadd.f32 %v2921_v52, %v4339_v8 }
 0x1b7   : > { %v2852_v50 = vpop.f32.mrf.mxu1  ;;  %v2923_v43 = vpop.f32.mrf.mxu0 }
 0x1b8   : > { %v4422_v6 = vadd.f32 %v2851_v24, %v4207_v63  ;;  %v2924_v14 = vadd.f32 %v2923_v43, %v2922_v4 }
 0x1b9   : > { %v2853_v5 = vpop.f32.mrf.mxu1  ;;  %v2925_v47 = vpop.f32.mrf.mxu0 }
 0x1ba   : > { %v2854_v17 = vadd.f32 %v2853_v5, %v2852_v50  ;;  %v4425_v55 = vadd.f32 %v2924_v14, %v4344_v7 }
 0x1bb   : > { %v2855_v33 = vpop.f32.mrf.mxu1  ;;  %v2926_v49 = vpop.f32.mrf.mxu0 }
 0x1bc   : > { %v4428_v37 = vadd.f32 %v2854_v17, %v4212_v2  ;;  %v2927_v60 = vadd.f32 %v2926_v49, %v2925_v47 }
 0x1bd   : > { %v2856_v8 = vpop.f32.mrf.mxu1  ;;  %v2928_v22 = vpop.f32.mrf.mxu0 }
 0x1be   : > { %v2857_v54 = vadd.f32 %v2856_v8, %v2855_v33  ;;  %v4431_v16 = vadd.f32 %v2927_v60, %v4350_v21 }
 0x1bf   : > { %v2858_v63 = vpop.f32.mrf.mxu1  ;;  %v2929_v57 = vpop.f32.mrf.mxu0 }
 0x1c0   : > { %v4434_v58 = vadd.f32 %v2857_v54, %v4219_v45  ;;  %v2930_v38 = vadd.f32 %v2929_v57, %v2928_v22 }
 0x1c1   : > { %v2859_v7 = vpop.f32.mrf.mxu1  ;;  %v2931_v53 = vpop.f32.mrf.mxu0 }
 0x1c2   : > { %v2860_v1 = vadd.f32 %v2859_v7, %v2858_v63  ;;  %v4437_v36 = vadd.f32 %v2930_v38, %v4356_v0 }
 0x1c3   : > { %v2861_v2 = vpop.f32.mrf.mxu1  ;;  %v2932_v62 = vpop.f32.mrf.mxu0 }
 0x1c4   : > { %v4440_v25 = vadd.f32 %v2860_v1, %v4224_v29  ;;  %v2933_v28 = vadd.f32 %v2932_v62, %v2931_v53 }
 0x1c5   : > { %v2862_v21 = vpop.f32.mrf.mxu1  ;;  %v2934_v42 = vpop.f32.mrf.mxu0 }
 0x1c6   : > { %v2863_v39 = vadd.f32 %v2862_v21, %v2861_v2  ;;  %v4443_v34 = vadd.f32 %v2933_v28, %v4362_v41 }
 0x1c7   : > { %v2864_v45 = vpop.f32.mrf.mxu1  ;;  %v2935_v52 = vpop.f32.mrf.mxu0 }
 0x1c8   : > { %v4446_v9 = vadd.f32 %v2863_v39, %v4231_v56  ;;  %v2936_v4 = vadd.f32 %v2935_v52, %v2934_v42 }
 0x1c9   : > { %v2865_v0 = vpop.f32.mrf.mxu1  ;;  %v2937_v24 = vpop.f32.mrf.mxu0 }
 0x1ca   : > { %v2866_v50 = vadd.f32 %v2865_v0, %v2864_v45  ;;  %v4449_v43 = vadd.f32 %v2936_v4, %v4368_v10 }
 0x1cb   : > { %v4451_v29 = vpop.f32.mrf.mxu1  ;;  %v2938_v14 = vpop.f32.mrf.mxu0 }
 0x1cc   : > { %v4454_v5 = vadd.f32 %v2866_v50, %v4236_v15  ;;  %v2939_v41 = vadd.f32 %v2938_v14, %v2937_v24 }
 0x1cd   : > { %v4456_v47 = vpop.f32.mrf.mxu1  ;;  %v2940_v17 = vpop.f32.mrf.mxu0 }
 0x1ce   : > { %v4459_v56 = vadd.f32 %v2939_v41, %v4374_v20 }
 0x1cf   : > { %v4461_v33 = vpop.f32.mrf.mxu1  ;;  %v2941_v49 = vpop.f32.mrf.mxu0 }
 0x1d0   : > { %v2942_v60 = vadd.f32 %v2941_v49, %v2940_v17 }
 0x1d1   : > { %v4463_v8 = vpop.f32.mrf.mxu1  ;;  %v2943_v10 = vpop.f32.mrf.mxu0 }
 0x1d2   : > { %v4466_v22 = vadd.f32 %v2942_v60, %v4380_v30 }
 0x1d3   : > { %v3001_v54 = vpop.f32.mrf.mxu1  ;;  %v2944_v15 = vpop.f32.mrf.mxu0 }
 0x1d4   : > { %v2945_v63 = vadd.f32 %v2944_v15, %v2943_v10 }
 0x1d5   : > { %v3002_v57 = vpop.f32.mrf.mxu1  ;;  %v2946_v38 = vpop.f32.mrf.mxu0 }
 0x1d6   : > { %v4469_v7 = vadd.f32 %v2945_v63, %v4386_v13 }
 0x1d7   : > { %v4471_v20 = vpop.f32.mrf.mxu1  ;;  %v2947_v53 = vpop.f32.mrf.mxu0 }
 0x1d8   : > { %v2948_v1 = vadd.f32 %v2947_v53, %v2946_v38 }
 0x1d9   : > { %v3005_v2 = vpop.f32.mrf.mxu1  ;;  %v2949_v62 = vpop.f32.mrf.mxu0 }
 0x1da   : > { %v4474_v28 = vadd.f32 %v2948_v1, %v4392_v44 }
 0x1db   : > { %v4476_v21 = vpop.f32.mrf.mxu1  ;;  %v2950_v30 = vpop.f32.mrf.mxu0 }
 0x1dc   : > { %4707 = vst [vmem:[#allocation10_spill] sm:$0xff] %v4474_v28  ;;  %v2951_v42 = vadd.f32 %v2950_v30, %v2949_v62 }
 0x1dd   : > { %v4478_v39 = vpop.f32.mrf.mxu1  ;;  %v2952_v45 = vpop.f32.mrf.mxu0 }
 0x1de   : > { %v4481_v52 = vadd.f32 %v2951_v42, %v4398_v23 }
 0x1df   : > { %v4483_v13 = vpop.f32.mrf.mxu1  ;;  %v2953_v4 = vpop.f32.mrf.mxu0 }
 0x1e0   : > { %v2954_v0 = vadd.f32 %v2953_v4, %v2952_v45 }
 0x1e1   : > { %v4485_v24 = vpop.f32.mrf.mxu1  ;;  %v2955_v50 = vpop.f32.mrf.mxu0 }
 0x1e2   : > { %v4488_v44 = vadd.f32 %v2954_v0, %v4404_v12 }
 0x1e3   : > { %v3013_v14 = vpop.f32.mrf.mxu1  ;;  %v2956_v41 = vpop.f32.mrf.mxu0 }
 0x1e4   : > { %v2957_v17 = vadd.f32 %v2956_v41, %v2955_v50 }
 0x1e5   : > { %v3014_v49 = vpop.f32.mrf.mxu1  ;;  %v2958_v60 = vpop.f32.mrf.mxu0 }
 0x1e6   : > { %v4491_v10 = vadd.f32 %v2957_v17, %v4410_v32 }
 0x1e7   : > { %v4493_v23 = vpop.f32.mrf.mxu1  ;;  %v2959_v15 = vpop.f32.mrf.mxu0 }
 0x1e8   : > { %4708 = vst [vmem:[#allocation5_spill] sm:$0xff] %v4491_v10  ;;  %v2960_v63 = vadd.f32 %v2959_v15, %v2958_v60 }
 0x1e9   : > { %v4495_v38 = vpop.f32.mrf.mxu1  ;;  %v2961_v53 = vpop.f32.mrf.mxu0 }
 0x1ea   : > { %v4498_v1 = vadd.f32 %v2960_v63, %v4416_v61 }
 0x1eb   : > { %v4500_v12 = vpop.f32.mrf.mxu1  ;;  %v2962_v62 = vpop.f32.mrf.mxu0 }
 0x1ec   : > { %4709 = vst [vmem:[#allocation8_spill] sm:$0xff] %v4498_v1  ;;  %v2963_v30 = vadd.f32 %v2962_v62, %v2961_v53 }
 0x1ed   : > { %v4502_v42 = vpop.f32.mrf.mxu1  ;;  %v2964_v45 = vpop.f32.mrf.mxu0 }
 0x1ee   : > { %v4505_v32 = vadd.f32 %v2963_v30, %v4422_v6 }
 0x1ef   : > { %v4507_v4 = vpop.f32.mrf.mxu1  ;;  %v2965_v0 = vpop.f32.mrf.mxu0 }
 0x1f0   : > { %4710 = vst [vmem:[#allocation11_spill] sm:$0xff] %v4505_v32  ;;  %v2966_v50 = vadd.f32 %v2965_v0, %v2964_v45 }
 0x1f1   : > { %v4509_v41 = vpop.f32.mrf.mxu1  ;;  %v2967_v17 = vpop.f32.mrf.mxu0 }
 0x1f2   : > { %v4512_v61 = vadd.f32 %v2966_v50, %v4428_v37 }
 0x1f3   : > { %v4514_v60 = vpop.f32.mrf.mxu1  ;;  %v2968_v15 = vpop.f32.mrf.mxu0 }
 0x1f4   : > { %4711 = vst [vmem:[#allocation7_spill] sm:$0xff] %v4512_v61  ;;  %v2969_v63 = vadd.f32 %v2968_v15, %v2967_v17  ;;  %v3003_v61 = vadd.f32 %v3002_v57, %v3001_v54 }
 0x1f5   : > { %v3026_v53 = vpop.f32.mrf.mxu1  ;;  %v2970_v62 = vpop.f32.mrf.mxu0 }
 0x1f6   : > { %v4517_v1 = vadd.f32 %v2969_v63, %v4434_v58  ;;  %v2997_v58 = vadd.f32 %v4456_v47, %v4451_v29 }
 0x1f7   : > { %v4519_v6 = vpop.f32.mrf.mxu1  ;;  %v2971_v30 = vpop.f32.mrf.mxu0 }
 0x1f8   : > { %v2972_v32 = vadd.f32 %v2971_v30, %v2970_v62  ;;  %v2059_v47 = vadd.f32 %v2997_v58, %v4347_v27 }
 0x1f9   : > { %v4521_v45 = vpop.f32.mrf.mxu1  ;;  %v2973_v0 = vpop.f32.mrf.mxu0 }
 0x1fa   : > { %v4524_v10 = vadd.f32 %v2972_v32, %v4440_v25  ;;  %v3006_v25 = vadd.f32 %v3005_v2, %v4471_v20  ;;  %v3015_v2 = vadd.f32 %v3014_v49, %v3013_v14 }
 0x1fb   : > { %v4526_v37 = vpop.f32.mrf.mxu1  ;;  %v2974_v50 = vpop.f32.mrf.mxu0 }
 0x1fc   : > { %4712 = vst [vmem:[#allocation3_spill] sm:$0xff] %v4524_v10  ;;  %v2975_v17 = vadd.f32 %v2974_v50, %v2973_v0  ;;  %v2067_v10 = vadd.f32 %v3003_v61, %v4359_v59  ;;  %v3000_v0 = vadd.f32 %v4463_v8, %v4461_v33  ;;  %v3009_v61 = vadd.f32 %v4478_v39, %v4476_v21 }
 0x1fd   : > { %v4528_v15 = vpop.f32.mrf.mxu1  ;;  %v2976_v28 = vpop.f32.mrf.mxu0  ;;  %v2083_v14 = vadd.f32 %v3015_v2, %v4383_v51  ;;  %v3018_v21 = vadd.f32 %v4495_v38, %v4493_v23  ;;  %v3027_v23 = vadd.f32 %v3026_v53, %v4514_v60 }
 0x1fe   : > { %v4533_v63 = vadd.f32 %v2975_v17, %v4446_v9  ;;  %v2062_v8 = vadd.f32 %v3000_v0, %v4353_v18 }
 0x1ff   : > { %v4535_v62 = vpop.f32.mrf.mxu1  ;;  %v2977_v30 = vpop.f32.mrf.mxu0 }
 0x200   : > { %v2978_v32 = vadd.f32 %v2977_v30, %v2976_v28  ;;  %v2070_v28 = vadd.f32 %v3006_v25, %v4365_v11  ;;  %v3012_v11 = vadd.f32 %v4485_v24, %v4483_v13  ;;  %v2075_v30 = vadd.f32 %v3009_v61, %v4371_v31 }
 0x201   : > { %v4539_v54 = vpop.f32.mrf.mxu1  ;;  %v3133_v57 = vpop.f32.mrf.mxu0  ;;  %v2086_v31 = vadd.f32 %v3018_v21, %v4389_v48  ;;  %v3024_v21 = vadd.f32 %v4509_v41, %v4507_v4 }
 0x202   : > { %v4544_v29 = vadd.f32 %v2978_v32, %v4454_v5  ;;  %v2228_v9 = vadd.f32 %v3133_v57, %v2067_v10 }
 0x203   : > { %v4547_v50 = vpop.f32.mrf.mxu1  ;;  %v2219_v20 = vpop.f32.mrf.mxu0 }
 0x204   : > { %2348 = vst [vmem:[%s3332_s14 + $0x10] sm:$0xff] %v2228_v9  ;;  %v2220_v59 = vadd.f32 %v2219_v20, %v2059_v47  ;;  %v2421_v47 = vmul.f32 %v2228_v9, %v2228_v9 }
 0x205   : > { %v3038_v17 = vpop.f32.mrf.mxu1  ;;  %v3134_v33 = vpop.f32.mrf.mxu0 }
 0x206   : > { %2346 = vst [vmem:[%s3332_s14] sm:$0xff] %v2220_v59  ;;  %v2231_v5 = vadd.f32 %v3134_v33, %v2070_v28  ;;  %v2419_v18 = vmul.f32 %v2220_v59, %v2220_v59  ;;  %v3021_v28 = vadd.f32 %v4502_v42, %v4500_v12  ;;  %v2099_v42 = vadd.f32 %v3027_v23, %v4407_v26 }
 0x207   : > { %v4555_v10 = vpop.f32.mrf.mxu1  ;;  %v2222_v27 = vpop.f32.mrf.mxu0 }
 0x208   : > { %2349 = vst [vmem:[%s3332_s14 + $0x18] sm:$0xff] %v2231_v5  ;;  %v2223_v58 = vadd.f32 %v2222_v27, %v2062_v8  ;;  %v2422_v61 = vmul.f32 %v2231_v5, %v2231_v5 }
 0x209   : > { %v4563_v39 = vpop.f32.mrf.mxu1  ;;  %v3137_v49 = vpop.f32.mrf.mxu0 }
 0x20a   : > { %2347 = vst [vmem:[%s3332_s14 + $0x8] sm:$0xff] %v2223_v58  ;;  %v2379_v25 = vadd.f32 %v2223_v58, %v2220_v59  ;;  %v2420_v32 = vmul.f32 %v2223_v58, %v2223_v58  ;;  %v2244_v57 = vadd.f32 %v3137_v49, %v2083_v14  ;;  %v2078_v59 = vadd.f32 %v3012_v11, %v4377_v3 }
 0x20b   : > { %v4567_v0 = vpop.f32.mrf.mxu1  ;;  %v2235_v51 = vpop.f32.mrf.mxu0  ;;  %v3030_v3 = vadd.f32 %v4521_v45, %v4519_v6 }
 0x20c   : > { %v2380_v20 = vadd.f32 %v2379_v25, %v2228_v9  ;;  %v2451_v13 = vadd.f32 %v2420_v32, %v2419_v18  ;;  %2352 = vst [vmem:[%s3332_s14 + $0x30] sm:$0xff] %v2244_v57  ;;  %v2236_v24 = vadd.f32 %v2235_v51, %v2075_v30  ;;  %v2091_v18 = vadd.f32 %v3021_v28, %v4395_v35 }
 0x20d   : > { %v4571_v38 = vpop.f32.mrf.mxu1  ;;  %v3138_v2 = vpop.f32.mrf.mxu0  ;;  %v2425_v41 = vmul.f32 %v2244_v57, %v2244_v57  ;;  %v2102_v26 = vadd.f32 %v3030_v3, %v4413_v40  ;;  %v3033_v35 = vadd.f32 %v4528_v15, %v4526_v37  ;;  %v3036_v40 = vadd.f32 %v4539_v54, %v4535_v62 }
 0x20e   : > { %v2452_v33 = vadd.f32 %v2451_v13, %v2421_v47  ;;  %2350 = vst [vmem:[%s3332_s14 + $0x20] sm:$0xff] %v2236_v24  ;;  %v2381_v9 = vadd.f32 %v2380_v20, %v2231_v5  ;;  %v2247_v27 = vadd.f32 %v3138_v2, %v2086_v31  ;;  %v2423_v58 = vmul.f32 %v2236_v24, %v2236_v24 }
 0x20f   : > { %v4578_v8 = vpop.f32.mrf.mxu1  ;;  %v2238_v60 = vpop.f32.mrf.mxu0  ;;  %v3039_v47 = vadd.f32 %v3038_v17, %v4547_v50 }
 0x210   : > { %v2382_v53 = vadd.f32 %v2381_v9, %v2236_v24  ;;  %v2453_v14 = vadd.f32 %v2452_v33, %v2422_v61  ;;  %v2239_v48 = vadd.f32 %v2238_v60, %v2078_v59  ;;  %2353 = vst [vmem:[%s3332_s14 + $0x38] sm:$0xff] %v2247_v27  ;;  %v2094_v24 = vadd.f32 %v3024_v21, %v4401_v19 }
 0x211   : > { %v4585_v12 = vpop.f32.mrf.mxu1  ;;  %v3141_v5 = vpop.f32.mrf.mxu0  ;;  %v2426_v23 = vmul.f32 %v2247_v27, %v2247_v27  ;;  %v3042_v19 = vadd.f32 %v4563_v39, %v4555_v10  ;;  %v2115_v15 = vadd.f32 %v3039_v47, %v4431_v16 }
 0x212   : > { %v2454_v11 = vadd.f32 %v2453_v14, %v2423_v58  ;;  %2351 = vst [vmem:[%s3332_s14 + $0x28] sm:$0xff] %v2239_v48  ;;  %v2383_v49 = vadd.f32 %v2382_v53, %v2239_v48  ;;  %v2424_v30 = vmul.f32 %v2239_v48, %v2239_v48  ;;  %v2260_v32 = vadd.f32 %v3141_v5, %v2099_v42 }
 0x213   : > { %v3049_v25 = vpop.f32.mrf.mxu1  ;;  %v2251_v4 = vpop.f32.mrf.mxu0  ;;  %v2107_v58 = vadd.f32 %v3033_v35, %v4419_v46  ;;  %v2118_v16 = vadd.f32 %v3042_v19, %v4437_v36  ;;  %v3045_v46 = vadd.f32 %v4571_v38, %v4567_v0  ;;  %v3048_v36 = vadd.f32 %v4585_v12, %v4578_v8 }
 0x214   : > { %v2384_v51 = vadd.f32 %v2383_v49, %v2244_v57  ;;  %v2455_v6 = vadd.f32 %v2454_v11, %v2424_v30  ;;  %v2252_v45 = vadd.f32 %v2251_v4, %v2091_v18  ;;  %2356 = vst [vmem:[%s3332_s14 + $0x50] sm:$0xff] %v2260_v32  ;;  %v2429_v62 = vmul.f32 %v2260_v32, %v2260_v32 }
 0x215   : > { %v3050_v20 = vpop.f32.mrf.mxu1  ;;  %v3142_v13 = vpop.f32.mrf.mxu0  ;;  %v2110_v11 = vadd.f32 %v3036_v40, %v4425_v55 }
 0x216   : > { %v2456_v31 = vadd.f32 %v2455_v6, %v2425_v41  ;;  %2354 = vst [vmem:[%s3332_s14 + $0x40] sm:$0xff] %v2252_v45  ;;  %v2385_v57 = vadd.f32 %v2384_v51, %v2247_v27  ;;  %v2263_v59 = vadd.f32 %v3142_v13, %v2102_v26  ;;  %v2427_v17 = vmul.f32 %v2252_v45, %v2252_v45 }
 0x217   : > { %v3052_v2 = vpop.f32.mrf.mxu1  ;;  %v2254_v28 = vpop.f32.mrf.mxu0  ;;  %v3051_v39 = vadd.f32 %v3050_v20, %v3049_v25 }
 0x218   : > { %v2386_v50 = vadd.f32 %v2385_v57, %v2252_v45  ;;  %v2457_v61 = vadd.f32 %v2456_v31, %v2426_v23  ;;  %v2255_v33 = vadd.f32 %v2254_v28, %v2094_v24  ;;  %2357 = vst [vmem:[%s3332_s14 + $0x58] sm:$0xff] %v2263_v59  ;;  %v2430_v49 = vmul.f32 %v2263_v59, %v2263_v59 }
 0x219   : > { %v3053_v37 = vpop.f32.mrf.mxu1  ;;  %v3145_v9 = vpop.f32.mrf.mxu0  ;;  %v2131_v0 = vadd.f32 %v3051_v39, %v4459_v56  ;;  %v2123_v24 = vadd.f32 %v3045_v46, %v4443_v34 }
 0x21a   : > { %v2458_v27 = vadd.f32 %v2457_v61, %v2427_v17  ;;  %2355 = vst [vmem:[%s3332_s14 + $0x48] sm:$0xff] %v2255_v33  ;;  %v2387_v60 = vadd.f32 %v2386_v50, %v2255_v33  ;;  %v2428_v53 = vmul.f32 %v2255_v33, %v2255_v33  ;;  %v2276_v48 = vadd.f32 %v3145_v9, %v2115_v15 }
 0x21b   : > { %v3055_v14 = vpop.f32.mrf.mxu1  ;;  %v2267_v21 = vpop.f32.mrf.mxu0  ;;  %v3054_v47 = vadd.f32 %v3053_v37, %v3052_v2  ;;  %v2126_v17 = vadd.f32 %v3048_v36, %v4449_v43 }
 0x21c   : > { %v2388_v54 = vadd.f32 %v2387_v60, %v2260_v32  ;;  %v2459_v3 = vadd.f32 %v2458_v27, %v2428_v53  ;;  %v2268_v10 = vadd.f32 %v2267_v21, %v2107_v58  ;;  %2360 = vst [vmem:[%s3332_s14 + $0x70] sm:$0xff] %v2276_v48  ;;  %v2433_v57 = vmul.f32 %v2276_v48, %v2276_v48 }
 0x21d   : > { %v3056_v42 = vpop.f32.mrf.mxu1  ;;  %v3146_v5 = vpop.f32.mrf.mxu0  ;;  %v2134_v56 = vadd.f32 %v3054_v47, %v4466_v22 }
 0x21e   : > { %v2460_v30 = vadd.f32 %v2459_v3, %v2429_v62  ;;  %2358 = vst [vmem:[%s3332_s14 + $0x60] sm:$0xff] %v2268_v10  ;;  %v2389_v18 = vadd.f32 %v2388_v54, %v2263_v59  ;;  %v2279_v4 = vadd.f32 %v3146_v5, %v2118_v16  ;;  %v2431_v51 = vmul.f32 %v2268_v10, %v2268_v10 }
 0x21f   : > { %v3058_v32 = vpop.f32.mrf.mxu1  ;;  %v2270_v41 = vpop.f32.mrf.mxu0  ;;  %v3057_v2 = vadd.f32 %v3056_v42, %v3055_v14 }
 0x220   : > { %v2390_v25 = vadd.f32 %v2389_v18, %v2268_v10  ;;  %v2461_v6 = vadd.f32 %v2460_v30, %v2430_v49  ;;  %v2271_v45 = vadd.f32 %v2270_v41, %v2110_v11  ;;  %2361 = vst [vmem:[%s3332_s14 + $0x78] sm:$0xff] %v2279_v4  ;;  %v2434_v61 = vmul.f32 %v2279_v4, %v2279_v4 }
 0x221   : > { %v3059_v55 = vpop.f32.mrf.mxu1  ;;  %v3149_v38 = vpop.f32.mrf.mxu0 }
 0x222   : > { %v2462_v20 = vadd.f32 %v2461_v6, %v2431_v51  ;;  %2359 = vst [vmem:[%s3332_s14 + $0x68] sm:$0xff] %v2271_v45  ;;  %v2391_v26 = vadd.f32 %v2390_v25, %v2271_v45  ;;  %v2432_v13 = vmul.f32 %v2271_v45, %v2271_v45  ;;  %v2292_v23 = vadd.f32 %v3149_v38, %v2131_v0 }
 0x223   : > { %v3061_v35 = vpop.f32.mrf.mxu1  ;;  %v2283_v31 = vpop.f32.mrf.mxu0  ;;  %v3060_v58 = vadd.f32 %v3059_v55, %v3058_v32 }
 0x224   : > { %v2392_v59 = vadd.f32 %v2391_v26, %v2276_v48  ;;  %v2463_v8 = vadd.f32 %v2462_v20, %v2432_v13  ;;  %v2284_v12 = vadd.f32 %v2283_v31, %v2123_v24  ;;  %2364 = vst [vmem:[%s3332_s14 + $0x90] sm:$0xff] %v2292_v23  ;;  %v2139_v48 = vadd.f32 %v3057_v2, %v4469_v7  ;;  %v4713_v7 = vld [vmem:[#allocation10_spill] sm:$0xff] }
 0x225   : > { %v3062_v28 = vpop.f32.mrf.mxu1  ;;  %v3150_v50 = vpop.f32.mrf.mxu0  ;;  %v2437_v16 = vmul.f32 %v2292_v23, %v2292_v23  ;;  %v2142_v18 = vadd.f32 %v3060_v58, %v4713_v7 }
 0x226   : > { %v2464_v33 = vadd.f32 %v2463_v8, %v2433_v57  ;;  %v3063_v34 = vadd.f32 %v3062_v28, %v3061_v35  ;;  %2362 = vst [vmem:[%s3332_s14 + $0x80] sm:$0xff] %v2284_v12  ;;  %v2393_v40 = vadd.f32 %v2392_v59, %v2279_v4  ;;  %v2295_v37 = vadd.f32 %v3150_v50, %v2134_v56 }
 0x227   : > { %v3064_v19 = vpop.f32.mrf.mxu1  ;;  %v2286_v15 = vpop.f32.mrf.mxu0  ;;  %v2435_v27 = vmul.f32 %v2284_v12, %v2284_v12 }
 0x228   : > { %v2394_v9 = vadd.f32 %v2393_v40, %v2284_v12  ;;  %v2465_v60 = vadd.f32 %v2464_v33, %v2434_v61  ;;  %v2287_v53 = vadd.f32 %v2286_v15, %v2126_v17  ;;  %2365 = vst [vmem:[%s3332_s14 + $0x98] sm:$0xff] %v2295_v37  ;;  %v2147_v14 = vadd.f32 %v3063_v34, %v4481_v52  ;;  %v4715_v34 = vld [vmem:[#allocation8_spill] sm:$0xff] }
 0x229   : > { %v3065_v22 = vpop.f32.mrf.mxu1  ;;  %v3153_v43 = vpop.f32.mrf.mxu0  ;;  %v2438_v32 = vmul.f32 %v2295_v37, %v2295_v37 }
 0x22a   : > { %v2466_v21 = vadd.f32 %v2465_v60, %v2435_v27  ;;  %v3066_v62 = vadd.f32 %v3065_v22, %v3064_v19  ;;  %2363 = vst [vmem:[%s3332_s14 + $0x88] sm:$0xff] %v2287_v53  ;;  %v2395_v54 = vadd.f32 %v2394_v9, %v2287_v53  ;;  %v2436_v3 = vmul.f32 %v2287_v53, %v2287_v53  ;;  %v4716_v9 = vld [vmem:[#allocation11_spill] sm:$0xff] }
 0x22b   : > { %v3067_v10 = vpop.f32.mrf.mxu1  ;;  %v2308_v39 = vadd.f32 %v3153_v43, %v2147_v14  ;;  %v2299_v42 = vpop.f32.mrf.mxu0 }
 0x22c   : > { %v2396_v5 = vadd.f32 %v2395_v54, %v2292_v23  ;;  %v2467_v11 = vadd.f32 %v2466_v21, %v2436_v3  ;;  %v2300_v46 = vadd.f32 %v2299_v42, %v2139_v48  ;;  %v2150_v52 = vadd.f32 %v3066_v62, %v4488_v44  ;;  %v4714_v44 = vld [vmem:[#allocation5_spill] sm:$0xff] }
 0x22d   : > { %2368 = vst [vmem:[%s3332_s14 + $0xb0] sm:$0xff] %v2308_v39  ;;  %v3068_v49 = vpop.f32.mrf.mxu1  ;;  %v3154_v30 = vpop.f32.mrf.mxu0  ;;  %v2441_v59 = vmul.f32 %v2308_v39, %v2308_v39 }
 0x22e   : > { %v2468_v4 = vadd.f32 %v2467_v11, %v2437_v16  ;;  %v3069_v41 = vadd.f32 %v3068_v49, %v3067_v10  ;;  %2366 = vst [vmem:[%s3332_s14 + $0xa0] sm:$0xff] %v2300_v46  ;;  %v2397_v25 = vadd.f32 %v2396_v5, %v2295_v37  ;;  %v2311_v6 = vadd.f32 %v3154_v30, %v2150_v52  ;;  %v4717_v10 = vld [vmem:[#allocation7_spill] sm:$0xff] }
 0x22f   : > { %v3070_v51 = vpop.f32.mrf.mxu1  ;;  %v2302_v45 = vpop.f32.mrf.mxu0  ;;  %v2439_v47 = vmul.f32 %v2300_v46, %v2300_v46 }
 0x230   : > { %v2398_v36 = vadd.f32 %v2397_v25, %v2300_v46  ;;  %v2469_v55 = vadd.f32 %v2468_v4, %v2438_v32  ;;  %v2303_v0 = vadd.f32 %v2302_v45, %v2142_v18  ;;  %2369 = vst [vmem:[%s3332_s14 + $0xb8] sm:$0xff] %v2311_v6  ;;  %v2155_v26 = vadd.f32 %v3069_v41, %v4714_v44 }
 0x231   : > { %v3071_v38 = vpop.f32.mrf.mxu1  ;;  %v3157_v20 = vpop.f32.mrf.mxu0  ;;  %v2442_v28 = vmul.f32 %v2311_v6, %v2311_v6 }
 0x232   : > { %v2470_v13 = vadd.f32 %v2469_v55, %v2439_v47  ;;  %v3072_v24 = vadd.f32 %v3071_v38, %v3070_v51  ;;  %2367 = vst [vmem:[%s3332_s14 + $0xa8] sm:$0xff] %v2303_v0  ;;  %v2399_v35 = vadd.f32 %v2398_v36, %v2303_v0  ;;  %v2440_v23 = vmul.f32 %v2303_v0, %v2303_v0  ;;  %v4718_v0 = vld [vmem:[#allocation3_spill] sm:$0xff] }
 0x233   : > { %v3073_v31 = vpop.f32.mrf.mxu1  ;;  %v2315_v57 = vpop.f32.mrf.mxu0 }
 0x234   : > { %v2400_v8 = vadd.f32 %v2399_v35, %v2308_v39  ;;  %v2471_v12 = vadd.f32 %v2470_v13, %v2440_v23  ;;  %v2316_v2 = vadd.f32 %v2315_v57, %v2155_v26  ;;  %v2158_v40 = vadd.f32 %v3072_v24, %v4715_v34 }
 0x235   : > { %v3074_v56 = vpop.f32.mrf.mxu1  ;;  %v3158_v50 = vpop.f32.mrf.mxu0 }
 0x236   : > { %v2472_v17 = vadd.f32 %v2471_v12, %v2441_v59  ;;  %v3075_v61 = vadd.f32 %v3074_v56, %v3073_v31  ;;  %2370 = vst [vmem:[%s3332_s14 + $0xc0] sm:$0xff] %v2316_v2  ;;  %v2401_v33 = vadd.f32 %v2400_v8, %v2311_v6  ;;  %v2443_v19 = vmul.f32 %v2316_v2, %v2316_v2 }
 0x237   : > { %v3076_v37 = vpop.f32.mrf.mxu1  ;;  %v2318_v15 = vpop.f32.mrf.mxu0 }
 0x238   : > { %v2163_v27 = vadd.f32 %v3075_v61, %v4716_v9  ;;  %v2402_v60 = vadd.f32 %v2401_v33, %v2316_v2  ;;  %v2473_v53 = vadd.f32 %v2472_v17, %v2442_v28  ;;  %v2319_v58 = vadd.f32 %v2318_v15, %v2158_v40 }
 0x239   : > { %v3077_v22 = vpop.f32.mrf.mxu1  ;;  %v3161_v14 = vpop.f32.mrf.mxu0 }
 0x23a   : > { %v2324_v43 = vadd.f32 %v3157_v20, %v2163_v27  ;;  %v2474_v48 = vadd.f32 %v2473_v53, %v2443_v19  ;;  %v3078_v21 = vadd.f32 %v3077_v22, %v3076_v37  ;;  %2371 = vst [vmem:[%s3332_s14 + $0xc8] sm:$0xff] %v2319_v58  ;;  %v2403_v62 = vadd.f32 %v2402_v60, %v2319_v58 }
 0x23b   : > { %v2444_v54 = vmul.f32 %v2319_v58, %v2319_v58  ;;  %v3079_v3 = vpop.f32.mrf.mxu1  ;;  %v2331_v46 = vpop.f32.mrf.mxu0  ;;  %v2378_v58 = vld [vmem:[%s4669_s7] sm:$0x1] }
 0x23c   : > { %2372 = vst [vmem:[%s3332_s14 + $0xd0] sm:$0xff] %v2324_v43  ;;  %v2166_v39 = vadd.f32 %v3078_v21, %v4717_v10  ;;  %v2404_v42 = vadd.f32 %v2403_v62, %v2324_v43  ;;  %v2445_v16 = vmul.f32 %v2324_v43, %v2324_v43 }
 0x23d   : > { %v2475_v5 = vadd.f32 %v2474_v48, %v2444_v54  ;;  %v3080_v11 = vpop.f32.mrf.mxu1  ;;  %v3162_v25 = vpop.f32.mrf.mxu0 }
 0x23e   : > { %v2327_v49 = vadd.f32 %v3158_v50, %v2166_v39  ;;  %v3081_v52 = vadd.f32 %v3080_v11, %v3079_v3 }
 0x23f   : > { %v2476_v30 = vadd.f32 %v2475_v5, %v2445_v16  ;;  %v3082_v7 = vpop.f32.mrf.mxu1  ;;  %v2334_v20 = vpop.f32.mrf.mxu0 }
 0x240   : > { %2373 = vst [vmem:[%s3332_s14 + $0xd8] sm:$0xff] %v2327_v49  ;;  %v2446_v18 = vmul.f32 %v2327_v49, %v2327_v49  ;;  %v2171_v32 = vadd.f32 %v3081_v52, %v4517_v1  ;;  %v2405_v4 = vadd.f32 %v2404_v42, %v2327_v49 }
 0x241   : > { %v3083_v41 = vpop.f32.mrf.mxu1 }
 0x242   : > { %v2332_v51 = vadd.f32 %v2331_v46, %v2171_v32  ;;  %v2477_v6 = vadd.f32 %v2476_v30, %v2446_v18  ;;  %v3084_v45 = vadd.f32 %v3083_v41, %v3082_v7 }
 0x243   : > { %v3085_v36 = vpop.f32.mrf.mxu1 }
 0x244   : > { %2374 = vst [vmem:[%s3332_s14 + $0xe0] sm:$0xff] %v2332_v51  ;;  %v2406_v47 = vadd.f32 %v2405_v4, %v2332_v51  ;;  %v2447_v55 = vmul.f32 %v2332_v51, %v2332_v51  ;;  %v2174_v38 = vadd.f32 %v3084_v45, %v4718_v0 }
 0x245   : > { %v3086_v44 = vpop.f32.mrf.mxu1 }
 0x246   : > { %v2478_v26 = vadd.f32 %v2477_v6, %v2447_v55  ;;  %v2335_v13 = vadd.f32 %v2334_v20, %v2174_v38  ;;  %v3087_v24 = vadd.f32 %v3086_v44, %v3085_v36 }
 0x247   : > { %v3088_v1 = vpop.f32.mrf.mxu1 }
 0x248   : > { %2375 = vst [vmem:[%s3332_s14 + $0xe8] sm:$0xff] %v2335_v13  ;;  %v2407_v35 = vadd.f32 %v2406_v47, %v2335_v13  ;;  %v2448_v23 = vmul.f32 %v2335_v13, %v2335_v13  ;;  %v2179_v31 = vadd.f32 %v3087_v24, %v4533_v63 }
 0x249   : > { %v3089_v57 = vpop.f32.mrf.mxu1 }
 0x24a   : > { %v2479_v59 = vadd.f32 %v2478_v26, %v2448_v23  ;;  %v2340_v8 = vadd.f32 %v3161_v14, %v2179_v31  ;;  %v3090_v12 = vadd.f32 %v3089_v57, %v3088_v1  ;;  %v2418_v14 = vld [vmem:[%s4670_s8] sm:$0x1] }
 0x24c   : > { %2376 = vst [vmem:[%s3332_s14 + $0xf0] sm:$0xff] %v2340_v8  ;;  %v2408_v2 = vadd.f32 %v2407_v35, %v2340_v8  ;;  %v2449_v28 = vmul.f32 %v2340_v8, %v2340_v8  ;;  %v2182_v56 = vadd.f32 %v3090_v12, %v4544_v29 }
 0x24e   : > { %v2480_v50 = vadd.f32 %v2479_v59, %v2449_v28  ;;  %v2343_v17 = vadd.f32 %v3162_v25, %v2182_v56 }
 0x250   : > { %2377 = vst [vmem:[%s3332_s14 + $0xf8] sm:$0xff] %v2343_v17  ;;  %v2409_v61 = vadd.f32 %v2408_v2, %v2343_v17  ;;  %v2450_v33 = vmul.f32 %v2343_v17, %v2343_v17 }
 0x252   : > { %v2410_v34 = vrot.slane %v2409_v61, 4  ;;  %v2481_v40 = vadd.f32 %v2480_v50, %v2450_v33 }
 0x254   : > { %v2411_v19 = vadd.f32 %v2410_v34, %v2409_v61  ;;  %v2482_v37 = vrot.slane %v2481_v40, 4 }
 0x256   : > { %v2412_v15 = vrot.slane %v2411_v19, 2  ;;  %v2483_v63 = vadd.f32 %v2482_v37, %v2481_v40 }
 0x258   : > { %v2413_v9 = vadd.f32 %v2412_v15, %v2411_v19  ;;  %v2484_v27 = vrot.slane %v2483_v63, 2 }
 0x25a   : > { %v2414_v60 = vrot.slane %v2413_v9, 1  ;;  %v2485_v53 = vadd.f32 %v2484_v27, %v2483_v63 }
 0x25c   : > { %v2415_v29 = vadd.f32 %v2414_v60, %v2413_v9  ;;  %v2486_v22 = vrot.slane %v2485_v53, 1 }
 0x25e   : > { %v2416_v43 = vadd.f32 %v2415_v29, %v2378_v58  ;;  %v2487_v48 = vadd.f32 %v2486_v22, %v2485_v53 }
 0x260   : > { %2417 = vst [vmem:[%s4669_s7] sm:$0x1] %v2416_v43  ;;  %v2488_v21 = vadd.f32 %v2487_v48, %v2418_v14 }
 0x262   : > { %2489 = vst [vmem:[%s4670_s8] sm:$0x1] %v2488_v21 }
 0x263 PF: > { %s19_s27 = sadd.s32 1, %s3268_s27  }
 0x264   : > { %p16_p5 = scmp.ge.s32.totalorder %s19_s27, 4  }
 0x266   :  { %18 = sbr.rel (!%p16_p5) target bundleno = 1 (0x1), region = 95 }

// kernel: double_conv.3
= control target key start
LH: loop header
LB: loop body
LE: loop exit
PB: predicated region body
PF: predicated region fallthrough
CT: control target
= control target key end

     0   :  { %s2928_s15 = smov 0   ;;  %s4284_s0 = inlined_call_operand.vmem [shape: f32[2,16,16,4], index: 0, kind: input, shape index: {}]   ;;  %s4285_s1 = inlined_call_operand.vmem [shape: bf16[36,128], index: 1, kind: input, shape index: {}]   ;;  %s4286_s2 = inlined_call_operand.vmem [shape: f32[2,16,16,128], index: 2, kind: output, shape index: {0}]   ;;  %s4287_s3 = inlined_call_operand.vmem [shape: f32[1,128], index: 3, kind: output, shape index: {1}]   ;;  %s4288_s4 = inlined_call_operand.vmem [shape: f32[1,128], index: 4, kind: output, shape index: {2}]  }
   0x1 LB: > { %s2104_s16 = sadd.s32 4294967295, %s2892_s15   ;;  %p2108_p0 = scmp.ge.s32.totalorder %s2892_s15, 1  ;;  %s2892_s15 = sphi %s2928_s15, %s15_s15  }
   0x2   : > { %p157_p1 = scmp.lt.s32.totalorder %s2892_s15, 3 }
   0x4   : > { %p158_p2 = pnand %p2108_p0, %p157_p1 }
   0x6   : > { %161 = sbr.rel (%p158_p2) target bundleno = 662 (0x296), region = 28 }
   0xb   : > { %p183_p3 = scmp.lt.s32.totalorder %s2104_s16, 1  ;;  %p2113_p4 = scmp.ne.s32.totalorder %s2104_s16, 0 }
   0xd   : > { %s184_s17 = scalar_select %p183_p3, %s2104_s16, 1 }
   0xe   : > { %197 = sbr.rel (%p2113_p4) target bundleno = 48 (0x30), region = 32 }
   0xf   : > { %s2135_s18 = sshll.u32 %s184_s17, 8 }
  0x10   : > { %s2939_s21 = scalar_lea.vmem %s4284_s0, %s2135_s18  ;;  %s2944_s24 = scalar_lea.vmem %s4286_s2, %s2135_s18 }
  0x13   : > { %vm200_vm0 = vcmask 31744   ;;  %vm203_vm1 = vcmask 25600   ;;  %v2894_v0 = vmov 0.0  }
  0x14   : > { %198 = vst [vmem:[%s4287_s3] sm:$0x1] %v2894_v0  ;;  %199 = vst [vmem:[%s4288_s4] sm:$0x1] %v2894_v0 }
  0x15   : > { %201 = vst.msk [vmem:[#allocation2] sm:$0xff] %vm200_vm0, %v2894_v0  ;;  %202 = vst.msk [vmem:[#allocation2 + $0x8] sm:$0xff] %vm200_vm0, %v2894_v0 }
  0x16   : > { %205 = vst.msk [vmem:[#allocation2 + $0x18] sm:$0xff] %vm200_vm0, %v2894_v0  ;;  %206 = vst.msk [vmem:[#allocation2 + $0x20] sm:$0xff] %vm200_vm0, %v2894_v0 }
  0x17   : > { %208 = vst.msk [vmem:[#allocation2 + $0x30] sm:$0xff] %vm200_vm0, %v2894_v0  ;;  %209 = vst.msk [vmem:[#allocation2 + $0x38] sm:$0xff] %vm200_vm0, %v2894_v0 }
  0x18   : > { %211 = vst.msk [vmem:[#allocation2 + $0x48] sm:$0xff] %vm200_vm0, %v2894_v0  ;;  %212 = vst.msk [vmem:[#allocation2 + $0x50] sm:$0xff] %vm200_vm0, %v2894_v0 }
  0x19   : > { %214 = vst.msk [vmem:[#allocation2 + $0x60] sm:$0xff] %vm200_vm0, %v2894_v0  ;;  %215 = vst.msk [vmem:[#allocation2 + $0x68] sm:$0xff] %vm200_vm0, %v2894_v0 }
  0x1a   : > { %217 = vst.msk [vmem:[#allocation2 + $0x78] sm:$0xff] %vm200_vm0, %v2894_v0  ;;  %218 = vst.msk [vmem:[#allocation2 + $0x80] sm:$0xff] %vm200_vm0, %v2894_v0 }
  0x1b   : > { %220 = vst.msk [vmem:[#allocation2 + $0x90] sm:$0xff] %vm200_vm0, %v2894_v0  ;;  %221 = vst.msk [vmem:[#allocation2 + $0x98] sm:$0xff] %vm200_vm0, %v2894_v0 }
  0x1c   : > { %223 = vst.msk [vmem:[#allocation2 + $0xa8] sm:$0xff] %vm200_vm0, %v2894_v0  ;;  %224 = vst.msk [vmem:[#allocation2 + $0xb0] sm:$0xff] %vm200_vm0, %v2894_v0 }
  0x1d   : > { %226 = vst.msk [vmem:[#allocation2 + $0xc0] sm:$0xff] %vm200_vm0, %v2894_v0  ;;  %227 = vst.msk [vmem:[#allocation2 + $0xc8] sm:$0xff] %vm200_vm0, %v2894_v0 }
  0x1e   : > { %229 = vst.msk [vmem:[#allocation2 + $0xd8] sm:$0xff] %vm200_vm0, %v2894_v0  ;;  %230 = vst.msk [vmem:[#allocation2 + $0xe0] sm:$0xff] %vm200_vm0, %v2894_v0 }
  0x1f   : > { %232 = vst.msk [vmem:[#allocation2 + $0xf0] sm:$0xff] %vm200_vm0, %v2894_v0  ;;  %233 = vst.msk [vmem:[#allocation2 + $0xf8] sm:$0xff] %vm200_vm0, %v2894_v0 }
  0x20   : > { %235 = vst.msk [vmem:[#allocation2 + $0x108] sm:$0xff] %vm200_vm0, %v2894_v0  ;;  %236 = vst.msk [vmem:[#allocation2 + $0x110] sm:$0xff] %vm200_vm0, %v2894_v0 }
  0x21   : > { %238 = vst.msk [vmem:[#allocation2 + $0x120] sm:$0xff] %vm200_vm0, %v2894_v0  ;;  %239 = vst.msk [vmem:[#allocation2 + $0x128] sm:$0xff] %vm200_vm0, %v2894_v0 }
  0x22   : > { %241 = vst.msk [vmem:[#allocation2 + $0x138] sm:$0xff] %vm200_vm0, %v2894_v0  ;;  %242 = vst.msk [vmem:[#allocation2 + $0x140] sm:$0xff] %vm200_vm0, %v2894_v0 }
  0x23   : > { %244 = vst.msk [vmem:[#allocation2 + $0x150] sm:$0xff] %vm200_vm0, %v2894_v0  ;;  %245 = vst.msk [vmem:[#allocation2 + $0x158] sm:$0xff] %vm200_vm0, %v2894_v0 }
  0x24   : > { %247 = vst.msk [vmem:[#allocation2 + $0x168] sm:$0xff] %vm200_vm0, %v2894_v0  ;;  %248 = vst.msk [vmem:[#allocation2 + $0x170] sm:$0xff] %vm200_vm0, %v2894_v0 }
  0x25   : > { %250 = vst.msk [vmem:[#allocation2 + $0x180] sm:$0xff] %vm200_vm0, %v2894_v0  ;;  %251 = vst.msk [vmem:[#allocation2 + $0x188] sm:$0xff] %vm200_vm0, %v2894_v0 }
  0x26   : > { %253 = vst.msk [vmem:[#allocation2 + $0x198] sm:$0xff] %vm200_vm0, %v2894_v0  ;;  %254 = vst.msk [vmem:[#allocation2 + $0x1a0] sm:$0xff] %vm200_vm0, %v2894_v0 }
  0x27   : > { %204 = vst.msk [vmem:[#allocation2 + $0x10] sm:$0x3] %vm203_vm1, %v2894_v0  ;;  %207 = vst.msk [vmem:[#allocation2 + $0x28] sm:$0x3] %vm203_vm1, %v2894_v0 }
  0x28   : > { %210 = vst.msk [vmem:[#allocation2 + $0x40] sm:$0x3] %vm203_vm1, %v2894_v0  ;;  %213 = vst.msk [vmem:[#allocation2 + $0x58] sm:$0x3] %vm203_vm1, %v2894_v0 }
  0x29   : > { %216 = vst.msk [vmem:[#allocation2 + $0x70] sm:$0x3] %vm203_vm1, %v2894_v0  ;;  %219 = vst.msk [vmem:[#allocation2 + $0x88] sm:$0x3] %vm203_vm1, %v2894_v0 }
  0x2a   : > { %222 = vst.msk [vmem:[#allocation2 + $0xa0] sm:$0x3] %vm203_vm1, %v2894_v0  ;;  %225 = vst.msk [vmem:[#allocation2 + $0xb8] sm:$0x3] %vm203_vm1, %v2894_v0 }
  0x2b   : > { %228 = vst.msk [vmem:[#allocation2 + $0xd0] sm:$0x3] %vm203_vm1, %v2894_v0  ;;  %231 = vst.msk [vmem:[#allocation2 + $0xe8] sm:$0x3] %vm203_vm1, %v2894_v0 }
  0x2c   : > { %234 = vst.msk [vmem:[#allocation2 + $0x100] sm:$0x3] %vm203_vm1, %v2894_v0  ;;  %237 = vst.msk [vmem:[#allocation2 + $0x118] sm:$0x3] %vm203_vm1, %v2894_v0 }
  0x2d   : > { %240 = vst.msk [vmem:[#allocation2 + $0x130] sm:$0x3] %vm203_vm1, %v2894_v0  ;;  %243 = vst.msk [vmem:[#allocation2 + $0x148] sm:$0x3] %vm203_vm1, %v2894_v0 }
  0x2e   : > { %246 = vst.msk [vmem:[#allocation2 + $0x160] sm:$0x3] %vm203_vm1, %v2894_v0  ;;  %249 = vst.msk [vmem:[#allocation2 + $0x178] sm:$0x3] %vm203_vm1, %v2894_v0 }
  0x2f   : > { %252 = vst.msk [vmem:[#allocation2 + $0x190] sm:$0x3] %vm203_vm1, %v2894_v0  ;;  %255 = vst.msk [vmem:[#allocation2 + $0x1a8] sm:$0x3] %vm203_vm1, %v2894_v0 }
  0x30 PF: > { %v3006_v1 = vld [vmem:[#allocation2] sm:$0xff]  ;;  %v3008_v2 = vld [vmem:[#allocation2 + $0x8] sm:$0xff]  ;;  %v3010_v3 = vld [vmem:[#allocation2 + $0x10] sm:$0x3]  ;;  %vm424_vm2 = vcmask 1046528   ;;  %vm289_vm3 = vcmask 31744  }
  0x31   : > { %v425_v4 = vrot.slane %v3006_v1, 1  ;;  %v426_v5 = vrot.slane %v3008_v2, 1  ;;  %v428_v6 = vrot.slane %v3010_v3, 1  ;;  %v258_v7 = vld [vmem:[%s2939_s21 + $0x10] sm:$0xff]  ;;  %v259_v8 = vld [vmem:[%s2939_s21 + $0x18] sm:$0xff]  ;;  %v256_v9 = vld [vmem:[%s2939_s21] sm:$0xff] }
  0x32   : > { %v257_v10 = vld [vmem:[%s2939_s21 + $0x8] sm:$0xff]  ;;  %v260_v11 = vld [vmem:[%s2939_s21 + $0x20] sm:$0xff]  ;;  %292 = vst.msk [vmem:[#allocation2 + $0x31] sm:$0xff] %vm289_vm3, %v258_v7  ;;  %293 = vst.msk [vmem:[#allocation2 + $0x39] sm:$0xff] %vm289_vm3, %v259_v8  ;;  %s2895_s29 = smov 4   ;;  %vm601_vm4 = vcmask 1045504  }
  0x33   : > { %v427_v12 = vsel %vm424_vm2, %v425_v4, %v426_v5  ;;  %v429_v13 = vsel %vm424_vm2, %v426_v5, %v428_v6  ;;  %290 = vst.msk [vmem:[#allocation2 + $0x19] sm:$0xff] %vm289_vm3, %v256_v9  ;;  %291 = vst.msk [vmem:[#allocation2 + $0x21] sm:$0xff] %vm289_vm3, %v257_v10  ;;  %v261_v14 = vld [vmem:[%s2939_s21 + $0x28] sm:$0xff]  ;;  %v262_v15 = vld [vmem:[%s2939_s21 + $0x30] sm:$0xff]  ;;  %s2896_s30 = smov 8   ;;  %s2897_s5 = smov 12  }
  0x34   : > { %294 = vst.msk [vmem:[#allocation2 + $0x49] sm:$0xff] %vm289_vm3, %v260_v11  ;;  %v263_v16 = vld [vmem:[%s2939_s21 + $0x38] sm:$0xff]  ;;  %v2219_v17 = vpack.i.bf16 %v429_v13, %v427_v12  ;;  %295 = vst.msk [vmem:[#allocation2 + $0x51] sm:$0xff] %vm289_vm3, %v261_v14  ;;  %v264_v18 = vld [vmem:[%s2939_s21 + $0x40] sm:$0xff]  ;;  %vm1728_vm5 = vcmask 1041408   ;;  %s2898_s8 = smov 16  }
  0x35   : > { %296 = vst.msk [vmem:[#allocation2 + $0x61] sm:$0xff] %vm289_vm3, %v262_v15  ;;  %297 = vst.msk [vmem:[#allocation2 + $0x69] sm:$0xff] %vm289_vm3, %v263_v16  ;;  %v265_v19 = vld [vmem:[%s2939_s21 + $0x48] sm:$0xff]  ;;  %v266_v20 = vld [vmem:[%s2939_s21 + $0x50] sm:$0xff]  ;;  %s2899_s11 = smov 20   ;;  %s2900_s14 = smov 24  }
  0x36   : > { %298 = vst.msk [vmem:[#allocation2 + $0x79] sm:$0xff] %vm289_vm3, %v264_v18  ;;  %299 = vst.msk [vmem:[#allocation2 + $0x81] sm:$0xff] %vm289_vm3, %v265_v19  ;;  %v267_v21 = vld [vmem:[%s2939_s21 + $0x58] sm:$0xff]  ;;  %v268_v22 = vld [vmem:[%s2939_s21 + $0x60] sm:$0xff]  ;;  %2220 = vrot.lane.b32.xlu0 %v2219_v17, %s2895_s29  ;;  %s2901_s16 = smov 28   ;;  %s2902_s17 = smov 32  }
  0x37   : > { %300 = vst.msk [vmem:[#allocation2 + $0x91] sm:$0xff] %vm289_vm3, %v266_v20  ;;  %v269_v23 = vld [vmem:[%s2939_s21 + $0x68] sm:$0xff]  ;;  %301 = vst.msk [vmem:[#allocation2 + $0x99] sm:$0xff] %vm289_vm3, %v267_v21  ;;  %v270_v24 = vld [vmem:[%s2939_s21 + $0x70] sm:$0xff]  ;;  %vm1412_vm6 = vcmask 64512   ;;  %vm1445_vm7 = vcmask 97280  }
  0x38   : > { %302 = vst.msk [vmem:[#allocation2 + $0xa9] sm:$0xff] %vm289_vm3, %v268_v22  ;;  %303 = vst.msk [vmem:[#allocation2 + $0xb1] sm:$0xff] %vm289_vm3, %v269_v23  ;;  %v271_v25 = vld [vmem:[%s2939_s21 + $0x78] sm:$0xff]  ;;  %v272_v26 = vld [vmem:[%s2939_s21 + $0x80] sm:$0xff]  ;;  %vm1478_vm8 = vcmask 130048   ;;  %vm1511_vm9 = vcmask 162816  }
  0x39   : > { %304 = vst.msk [vmem:[#allocation2 + $0xc1] sm:$0xff] %vm289_vm3, %v270_v24  ;;  %305 = vst.msk [vmem:[#allocation2 + $0xc9] sm:$0xff] %vm289_vm3, %v271_v25  ;;  %v273_v27 = vld [vmem:[%s2939_s21 + $0x88] sm:$0xff]  ;;  %v274_v28 = vld [vmem:[%s2939_s21 + $0x90] sm:$0xff]  ;;  %vm1544_vm10 = vcmask 195584   ;;  %vm1577_vm11 = vcmask 228352  }
  0x3a   : > { %306 = vst.msk [vmem:[#allocation2 + $0xd9] sm:$0xff] %vm289_vm3, %v272_v26  ;;  %v275_v29 = vld [vmem:[%s2939_s21 + $0x98] sm:$0xff]  ;;  %307 = vst.msk [vmem:[#allocation2 + $0xe1] sm:$0xff] %vm289_vm3, %v273_v27  ;;  %v276_v30 = vld [vmem:[%s2939_s21 + $0xa0] sm:$0xff]  ;;  %vm1610_vm12 = vcmask 261120   ;;  %vm1679_vm13 = vcmask 293888  }
  0x3b   : > { %308 = vst.msk [vmem:[#allocation2 + $0xf1] sm:$0xff] %vm289_vm3, %v274_v28  ;;  %309 = vst.msk [vmem:[#allocation2 + $0xf9] sm:$0xff] %vm289_vm3, %v275_v29  ;;  %v277_v31 = vld [vmem:[%s2939_s21 + $0xa8] sm:$0xff]  ;;  %v278_v32 = vld [vmem:[%s2939_s21 + $0xb0] sm:$0xff] }
  0x3c   : > { %310 = vst.msk [vmem:[#allocation2 + $0x109] sm:$0xff] %vm289_vm3, %v276_v30  ;;  %311 = vst.msk [vmem:[#allocation2 + $0x111] sm:$0xff] %vm289_vm3, %v277_v31  ;;  %v279_v33 = vld [vmem:[%s2939_s21 + $0xb8] sm:$0xff]  ;;  %v280_v34 = vld [vmem:[%s2939_s21 + $0xc0] sm:$0xff] }
  0x3d   : > { %312 = vst.msk [vmem:[#allocation2 + $0x121] sm:$0xff] %vm289_vm3, %v278_v32  ;;  %v281_v35 = vld [vmem:[%s2939_s21 + $0xc8] sm:$0xff]  ;;  %v3068_v37 = vld [vmem:[#allocation2 + $0x30] sm:$0xff]  ;;  %v3070_v38 = vld [vmem:[#allocation2 + $0x38] sm:$0xff] }
  0x3e   : > { %v3072_v39 = vld [vmem:[#allocation2 + $0x40] sm:$0x3]  ;;  %313 = vst.msk [vmem:[#allocation2 + $0x129] sm:$0xff] %vm289_vm3, %v279_v33  ;;  %314 = vst.msk [vmem:[#allocation2 + $0x139] sm:$0xff] %vm289_vm3, %v280_v34  ;;  %v435_v40 = vrot.slane %v3068_v37, 1  ;;  %v436_v41 = vrot.slane %v3070_v38, 1 }
  0x3f   : > { %315 = vst.msk [vmem:[#allocation2 + $0x141] sm:$0xff] %vm289_vm3, %v281_v35  ;;  %v438_v42 = vrot.slane %v3072_v39, 1  ;;  %v3080_v43 = vld [vmem:[#allocation2 + $0x18] sm:$0xff]  ;;  %v3082_v44 = vld [vmem:[#allocation2 + $0x20] sm:$0xff]  ;;  %v3085_v46 = vld [vmem:[#allocation2 + $0x28] sm:$0x3] }
  0x40   : > { %4327 = vst [vmem:[#allocation3_spill] sm:$0xff] %v3080_v43  ;;  %4328 = vst [vmem:[#allocation4_spill] sm:$0xff] %v3082_v44  ;;  %v430_v47 = vrot.slane %v3080_v43, 1  ;;  %v431_v48 = vrot.slane %v3082_v44, 1  ;;  %v3089_v49 = vld [vmem:[#allocation2 + $0x48] sm:$0xff]  ;;  %v3091_v50 = vld [vmem:[#allocation2 + $0x50] sm:$0xff]  ;;  %v437_v51 = vsel %vm424_vm2, %v435_v40, %v436_v41 }
  0x41   : > { %4329 = vst [vmem:[#allocation5_spill] sm:$0xff] %v3089_v49  ;;  %v439_v52 = vsel %vm424_vm2, %v436_v41, %v438_v42  ;;  %v433_v53 = vrot.slane %v3085_v46, 1  ;;  %v3096_v54 = vld [vmem:[#allocation2 + $0x58] sm:$0x3]  ;;  %v440_v55 = vrot.slane %v3089_v49, 1  ;;  %v3099_v56 = vld [vmem:[#allocation2 + $0x60] sm:$0xff] }
  0x42   : > { %v3101_v57 = vld [vmem:[#allocation2 + $0x68] sm:$0xff]  ;;  %v3103_v58 = vpack.i.bf16 %v439_v52, %v437_v51  ;;  %v432_v59 = vsel %vm424_vm2, %v430_v47, %v431_v48  ;;  %v441_v60 = vrot.slane %v3091_v50, 1  ;;  %v443_v61 = vrot.slane %v3096_v54, 1  ;;  %v3108_v62 = vld [vmem:[#allocation2 + $0x70] sm:$0x3]  ;;  %v3110_v63 = vld [vmem:[#allocation2 + $0x78] sm:$0xff] }
  0x43   : > { %v3112_v0 = vld [vmem:[#allocation2 + $0x80] sm:$0xff]  ;;  %v434_v4 = vsel %vm424_vm2, %v431_v48, %v433_v53  ;;  %v445_v5 = vrot.slane %v3099_v56, 1  ;;  %v446_v6 = vrot.slane %v3101_v57, 1  ;;  %v448_v7 = vrot.slane %v3108_v62, 1  ;;  %v3118_v8 = vld [vmem:[#allocation2 + $0x88] sm:$0x3] }
  0x44   : > { %4330 = vst [vmem:[#allocation6_spill] sm:$0xff] %v3103_v58  ;;  %v3120_v9 = vld [vmem:[#allocation2 + $0x90] sm:$0xff]  ;;  %2230 = vrot.lane.b32.xlu1 %v3103_v58, %s2895_s29  ;;  %v3124_v10 = vpack.i.bf16 %v434_v4, %v432_v59  ;;  %v442_v11 = vsel %vm424_vm2, %v440_v55, %v441_v60  ;;  %v444_v12 = vsel %vm424_vm2, %v441_v60, %v443_v61  ;;  %v450_v13 = vrot.slane %v3110_v63, 1  ;;  %v3129_v14 = vld [vmem:[#allocation2 + $0x98] sm:$0xff]  ;;  %v3131_v15 = vld [vmem:[#allocation2 + $0xa0] sm:$0x3] }
  0x45   : > { %v3133_v16 = vld [vmem:[#allocation2 + $0xa8] sm:$0xff]  ;;  %v3135_v17 = vpack.i.bf16 %v444_v12, %v442_v11  ;;  %v447_v18 = vsel %vm424_vm2, %v445_v5, %v446_v6  ;;  %v449_v19 = vsel %vm424_vm2, %v446_v6, %v448_v7  ;;  %v451_v20 = vrot.slane %v3112_v0, 1  ;;  %v3140_v21 = vld [vmem:[#allocation2 + $0xb0] sm:$0xff]  ;;  %v3142_v22 = vld [vmem:[#allocation2 + $0xb8] sm:$0x3] }
  0x46   : > { %4331 = vst [vmem:[#allocation7_spill] sm:$0xff] %v3124_v10  ;;  %v3144_v23 = vld [vmem:[#allocation2 + $0xc0] sm:$0xff]  ;;  %2225 = vrot.lane.b32.xlu0 %v3124_v10, %s2895_s29  ;;  %v3148_v24 = vpack.i.bf16 %v449_v19, %v447_v18  ;;  %v453_v25 = vrot.slane %v3118_v8, 1  ;;  %v455_v26 = vrot.slane %v3120_v9, 1  ;;  %v456_v27 = vrot.slane %v3129_v14, 1  ;;  %v3153_v28 = vld [vmem:[#allocation2 + $0xc8] sm:$0xff] }
  0x47   : > { %4332 = vst [vmem:[#allocation8_spill] sm:$0xff] %v3135_v17  ;;  %v3155_v29 = vld [vmem:[#allocation2 + $0xd0] sm:$0x3]  ;;  %v452_v30 = vsel %vm424_vm2, %v450_v13, %v451_v20  ;;  %v458_v31 = vrot.slane %v3131_v15, 1  ;;  %v460_v32 = vrot.slane %v3133_v16, 1  ;;  %v461_v33 = vrot.slane %v3140_v21, 1 }
  0x48   : > { %4333 = vst [vmem:[#allocation9_spill] sm:$0xff] %v3148_v24  ;;  %v3161_v34 = vld [vmem:[#allocation2 + $0xd8] sm:$0xff]  ;;  %v3163_v35 = vld [vmem:[#allocation2 + $0xe0] sm:$0xff]  ;;  %2235 = vrot.lane.b32.xlu1 %v3135_v17, %s2895_s29  ;;  %v454_v40 = vsel %vm424_vm2, %v451_v20, %v453_v25  ;;  %v457_v41 = vsel %vm424_vm2, %v455_v26, %v456_v27  ;;  %v463_v42 = vrot.slane %v3142_v22, 1  ;;  %v465_v47 = vrot.slane %v3144_v23, 1  ;;  %v3173_v51 = vld [vmem:[#allocation2 + $0xf0] sm:$0xff] }
  0x49   : > { %v3171_v48 = vld [vmem:[#allocation2 + $0xe8] sm:$0x3]  ;;  %v3175_v52 = vld [vmem:[#allocation2 + $0xf8] sm:$0xff]  ;;  %v3177_v53 = vpack.i.bf16 %v454_v40, %v452_v30  ;;  %v459_v55 = vsel %vm424_vm2, %v456_v27, %v458_v31  ;;  %v462_v59 = vsel %vm424_vm2, %v460_v32, %v461_v33  ;;  %v466_v60 = vrot.slane %v3153_v28, 1  ;;  %v3182_v61 = vld [vmem:[#allocation2 + $0x100] sm:$0x3] }
  0x4a   : > { %v3184_v4 = vld [vmem:[#allocation2 + $0x108] sm:$0xff]  ;;  %v3186_v5 = vld [vmem:[#allocation2 + $0x110] sm:$0xff]  ;;  %2240 = vrot.lane.b32.xlu0 %v3148_v24, %s2895_s29  ;;  %v3190_v6 = vpack.i.bf16 %v459_v55, %v457_v41  ;;  %v464_v7 = vsel %vm424_vm2, %v461_v33, %v463_v42  ;;  %v468_v11 = vrot.slane %v3155_v29, 1  ;;  %v470_v12 = vrot.slane %v3161_v34, 1  ;;  %v3195_v13 = vld [vmem:[#allocation2 + $0x118] sm:$0x3] }
  0x4b   : > { %4334 = vst [vmem:[#allocation10_spill] sm:$0xff] %v3177_v53  ;;  %v3197_v18 = vld [vmem:[#allocation2 + $0x120] sm:$0xff]  ;;  %v3199_v19 = vld [vmem:[#allocation2 + $0x128] sm:$0xff]  ;;  %v3201_v20 = vpack.i.bf16 %v464_v7, %v462_v59  ;;  %v467_v25 = vsel %vm424_vm2, %v465_v47, %v466_v60  ;;  %v471_v26 = vrot.slane %v3163_v35, 1  ;;  %v473_v27 = vrot.slane %v3171_v48, 1  ;;  %v3208_v31 = vld [vmem:[#allocation2 + $0x138] sm:$0xff] }
  0x4c   : > { %4335 = vst [vmem:[#allocation11_spill] sm:$0xff] %v3190_v6  ;;  %v3206_v30 = vld [vmem:[#allocation2 + $0x130] sm:$0x3]  ;;  %v3210_v32 = vld [vmem:[#allocation2 + $0x140] sm:$0xff]  ;;  %2245 = vrot.lane.b32.xlu1 %v3177_v53, %s2895_s29  ;;  %v469_v33 = vsel %vm424_vm2, %v466_v60, %v468_v11  ;;  %v475_v40 = vrot.slane %v3173_v51, 1  ;;  %v476_v41 = vrot.slane %v3175_v52, 1 }
  0x4d   : > { %4336 = vst [vmem:[#allocation12_spill] sm:$0xff] %v3201_v20  ;;  %v478_v42 = vrot.slane %v3182_v61, 1  ;;  %v3218_v47 = vld [vmem:[#allocation2 + $0x148] sm:$0x3]  ;;  %v282_v55 = vld [vmem:[%s2939_s21 + $0xd0] sm:$0xff]  ;;  %v283_v59 = vld [vmem:[%s2939_s21 + $0xd8] sm:$0xff]  ;;  %v472_v36 = vsel %vm424_vm2, %v470_v12, %v471_v26  ;;  %v474_v45 = vsel %vm424_vm2, %v471_v26, %v473_v27  ;;  %v3232_v11 = vpack.i.bf16 %v469_v33, %v467_v25 }
  0x4e   : > { %v284_v7 = vld [vmem:[%s2939_s21 + $0xe0] sm:$0xff]  ;;  %v480_v24 = vrot.slane %v3184_v4, 1  ;;  %316 = vst.msk [vmem:[#allocation2 + $0x151] sm:$0xff] %vm289_vm3, %v282_v55  ;;  %317 = vst.msk [vmem:[#allocation2 + $0x159] sm:$0xff] %vm289_vm3, %v283_v59  ;;  %v285_v60 = vld [vmem:[%s2939_s21 + $0xe8] sm:$0xff]  ;;  %2250 = vrot.lane.b32.xlu0 %v3190_v6, %s2895_s29  ;;  %v477_v53 = vsel %vm424_vm2, %v475_v40, %v476_v41  ;;  %v481_v12 = vrot.slane %v3186_v5, 1  ;;  %v3244_v25 = vpack.i.bf16 %v474_v45, %v472_v36 }
  0x4f   : > { %318 = vst.msk [vmem:[#allocation2 + $0x169] sm:$0xff] %vm289_vm3, %v284_v7  ;;  %4337 = vst [vmem:[#allocation13_spill] sm:$0xff] %v3232_v11  ;;  %v603_v26 = vrot.slane %v3008_v2, 2  ;;  %v479_v27 = vsel %vm424_vm2, %v476_v41, %v478_v42  ;;  %v483_v55 = vrot.slane %v3195_v13, 1  ;;  %v485_v59 = vrot.slane %v3197_v18, 1 }
  0x50   : > { %319 = vst.msk [vmem:[#allocation2 + $0x171] sm:$0xff] %vm289_vm3, %v285_v60  ;;  %v486_v7 = vrot.slane %v3199_v19, 1  ;;  %2255 = vrot.lane.b32.xlu1 %v3201_v20, %s2895_s29  ;;  %4338 = vst [vmem:[#allocation14_spill] sm:$0xff] %v3244_v25  ;;  %v488_v33 = vrot.slane %v3206_v30, 1  ;;  %v490_v40 = vrot.slane %v3208_v31, 1  ;;  %v491_v60 = vrot.slane %v3210_v32, 1 }
  0x51   : > { %v482_v2 = vsel %vm424_vm2, %v480_v24, %v481_v12  ;;  %v484_v41 = vsel %vm424_vm2, %v481_v12, %v483_v55  ;;  %v493_v42 = vrot.slane %v3218_v47, 1  ;;  %v3254_v6 = vpack.i.bf16 %v479_v27, %v477_v53 }
  0x52   : > { %2260 = vrot.lane.b32.xlu0 %v3232_v11, %s2895_s29  ;;  %v487_v36 = vsel %vm424_vm2, %v485_v59, %v486_v7  ;;  %v489_v45 = vsel %vm424_vm2, %v486_v7, %v488_v33  ;;  %v4340_v20 = vrot.slane %v3006_v1, 2  ;;  %v4341_v24 = vrot.slane %v3010_v3, 2 }
  0x53   : > { %4339 = vst [vmem:[#allocation15_spill] sm:$0xff] %v3254_v6  ;;  %v615_v55 = vrot.slane %v3072_v39, 2  ;;  %v3269_v53 = vpack.i.bf16 %v484_v41, %v482_v2  ;;  %v492_v27 = vsel %vm424_vm2, %v490_v40, %v491_v60  ;;  %v494_v3 = vsel %vm424_vm2, %v491_v60, %v493_v42 }
  0x54   : > { %v3261_v17 = vsel %vm601_vm4, %v4340_v20, %v603_v26  ;;  %v606_v12 = vsel %vm601_vm4, %v603_v26, %v4341_v24  ;;  %2265 = vrot.lane.b32.xlu1 %v3244_v25, %s2895_s29  ;;  %v607_v20 = vrot.slane %v3080_v43, 2  ;;  %v3289_v40 = vpack.i.bf16 %v489_v45, %v487_v36 }
  0x55   : > { %4342 = vst [vmem:[#allocation16_spill] sm:$0xff] %v3269_v53  ;;  %v3272_v59 = vld [vmem:[#allocation2 + $0x150] sm:$0xff]  ;;  %v3274_v7 = vld [vmem:[#allocation2 + $0x158] sm:$0xff]  ;;  %v3276_v1 = vld [vmem:[#allocation2 + $0x160] sm:$0x3]  ;;  %v608_v42 = vrot.slane %v3082_v44, 2  ;;  %v3302_v36 = vpack.i.bf16 %v494_v3, %v492_v27  ;;  %v2299_v27 = vpack.i.bf16 %v606_v12, %v3261_v17 }
  0x56   : > { %v495_v26 = vrot.slane %v3272_v59, 1  ;;  %v496_v39 = vrot.slane %v3274_v7, 1  ;;  %v498_v33 = vrot.slane %v3276_v1, 1  ;;  %v3283_v2 = vld [vmem:[#allocation2 + $0x168] sm:$0xff]  ;;  %2270 = vrot.lane.b32.xlu0 %v3254_v6, %s2895_s29  ;;  %v610_v43 = vrot.slane %v3085_v46, 2 }
  0x57   : > { %v3285_v41 = vld [vmem:[#allocation2 + $0x170] sm:$0xff]  ;;  %v3291_v24 = vld [vmem:[#allocation2 + $0x178] sm:$0x3]  ;;  %v500_v25 = vrot.slane %v3283_v2, 1  ;;  %4344 = vst [vmem:[#allocation18_spill] sm:$0xff] %v3302_v36  ;;  %v612_v45 = vrot.slane %v3068_v37, 2 }
  0x58   : > { %4343 = vst [vmem:[#allocation17_spill] sm:$0xff] %v3285_v41  ;;  %v501_v60 = vrot.slane %v3285_v41, 1  ;;  %v497_v11 = vsel %vm424_vm2, %v495_v26, %v496_v39  ;;  %v499_v58 = vsel %vm424_vm2, %v496_v39, %v498_v33  ;;  %v503_v10 = vrot.slane %v3291_v24, 1  ;;  %2275 = vrot.lane.b32.xlu1 %v3269_v53, %s2895_s29 }
  0x59   : > { %v613_v6 = vrot.slane %v3070_v38, 2  ;;  %v617_v41 = vrot.slane %v3089_v49, 2  ;;  %v618_v39 = vrot.slane %v3091_v50, 2  ;;  %v620_v33 = vrot.slane %v3096_v54, 2 }
  0x5a   : > { %v502_v44 = vsel %vm424_vm2, %v500_v25, %v501_v60  ;;  %v504_v26 = vsel %vm424_vm2, %v501_v60, %v503_v10  ;;  %2280 = vrot.lane.b32.xlu0 %v3289_v40, %s2895_s29  ;;  %v3313_v46 = vpack.i.bf16 %v499_v58, %v497_v11  ;;  %v622_v3 = vrot.slane %v3099_v56, 2 }
  0x5b   : > { %v623_v53 = vrot.slane %v3101_v57, 2  ;;  %v625_v49 = vrot.slane %v3108_v62, 2  ;;  %v3321_v10 = vpack.i.bf16 %v504_v26, %v502_v44  ;;  %v609_v54 = vsel %vm601_vm4, %v607_v20, %v608_v42 }
  0x5c   : > { %4345 = vst [vmem:[#allocation19_spill] sm:$0xff] %v3313_v46  ;;  %2285 = vrot.lane.b32.xlu1 %v3302_v36, %s2895_s29  ;;  %v611_v25 = vsel %vm601_vm4, %v608_v42, %v610_v43  ;;  %v614_v58 = vsel %vm601_vm4, %v612_v45, %v613_v6  ;;  %v616_v11 = vsel %vm601_vm4, %v613_v6, %v615_v55  ;;  %v627_v60 = vrot.slane %v3110_v63, 2 }
  0x5d   : > { %4346 = vst [vmem:[#allocation20_spill] sm:$0xff] %v3321_v10  ;;  %v619_v17 = vsel %vm601_vm4, %v617_v41, %v618_v39  ;;  %v621_v12 = vsel %vm601_vm4, %v618_v39, %v620_v33  ;;  %v628_v44 = vrot.slane %v3112_v0, 2  ;;  %v630_v62 = vrot.slane %v3118_v8, 2 }
  0x5e   : > { %2290 = vrot.lane.b32.xlu0 %v3313_v46, %s2895_s29  ;;  %v632_v20 = vrot.slane %v3120_v9, 2  ;;  %v633_v43 = vrot.slane %v3129_v14, 2  ;;  %v624_v42 = vsel %vm601_vm4, %v622_v3, %v623_v53  ;;  %v626_v6 = vsel %vm601_vm4, %v623_v53, %v625_v49 }
  0x5f   : > { %v635_v55 = vrot.slane %v3131_v15, 2  ;;  %v3341_v41 = vpack.i.bf16 %v611_v25, %v609_v54  ;;  %v3343_v45 = vpack.i.bf16 %v616_v11, %v614_v58  ;;  %v3345_v26 = vpack.i.bf16 %v621_v12, %v619_v17 }
  0x60   : > { %2295 = vrot.lane.b32.xlu1 %v3321_v10, %s2895_s29  ;;  %v3348_v8 = vpack.i.bf16 %v626_v6, %v624_v42  ;;  %v629_v39 = vsel %vm601_vm4, %v627_v60, %v628_v44  ;;  %v631_v49 = vsel %vm601_vm4, %v628_v44, %v630_v62  ;;  %v634_v15 = vsel %vm601_vm4, %v632_v20, %v633_v43 }
  0x61   : > { %v636_v53 = vsel %vm601_vm4, %v633_v43, %v635_v55  ;;  %v637_v33 = vrot.slane %v3133_v16, 2  ;;  %v638_v3 = vrot.slane %v3140_v21, 2  ;;  %v640_v54 = vrot.slane %v3142_v22, 2 }
  0x62   : > { %2300 = vrot.lane.b32.xlu0 %v2299_v27, %s2896_s30  ;;  %v642_v27 = vrot.slane %v3144_v23, 2  ;;  %v643_v25 = vrot.slane %v3153_v28, 2  ;;  %v645_v58 = vrot.slane %v3155_v29, 2  ;;  %v647_v11 = vrot.slane %v3161_v34, 2 }
  0x63   : > { %v648_v17 = vrot.slane %v3163_v35, 2  ;;  %v650_v12 = vrot.slane %v3171_v48, 2  ;;  %v652_v60 = vrot.slane %v3173_v51, 2  ;;  %v653_v44 = vrot.slane %v3175_v52, 2 }
  0x64   : > { %2305 = vrot.lane.b32.xlu1 %v3341_v41, %s2896_s30  ;;  %v655_v22 = vrot.slane %v3182_v61, 2  ;;  %v657_v62 = vrot.slane %v3184_v4, 2  ;;  %v658_v20 = vrot.slane %v3186_v5, 2  ;;  %v660_v29 = vrot.slane %v3195_v13, 2 }
  0x65   : > { %v3373_v43 = vpack.i.bf16 %v631_v49, %v629_v39  ;;  %v662_v42 = vrot.slane %v3197_v18, 2  ;;  %v663_v48 = vrot.slane %v3199_v19, 2  ;;  %v665_v6 = vrot.slane %v3206_v30, 2 }
  0x66   : > { %2310 = vrot.lane.b32.xlu0 %v3343_v45, %s2896_s30  ;;  %v3380_v55 = vpack.i.bf16 %v636_v53, %v634_v15  ;;  %v639_v61 = vsel %vm601_vm4, %v637_v33, %v638_v3  ;;  %v641_v10 = vsel %vm601_vm4, %v638_v3, %v640_v54  ;;  %v644_v46 = vsel %vm601_vm4, %v642_v27, %v643_v25 }
  0x67   : > { %v646_v13 = vsel %vm601_vm4, %v643_v25, %v645_v58  ;;  %v649_v39 = vsel %vm601_vm4, %v647_v11, %v648_v17  ;;  %v651_v49 = vsel %vm601_vm4, %v648_v17, %v650_v12  ;;  %v654_v36 = vsel %vm601_vm4, %v652_v60, %v653_v44 }
  0x68   : > { %2315 = vrot.lane.b32.xlu1 %v3345_v26, %s2896_s30  ;;  %v656_v30 = vsel %vm601_vm4, %v653_v44, %v655_v22  ;;  %v659_v15 = vsel %vm601_vm4, %v657_v62, %v658_v20  ;;  %v661_v53 = vsel %vm601_vm4, %v658_v20, %v660_v29  ;;  %v667_v33 = vrot.slane %v3208_v31, 2  ;;  %v4347_v20 = vld [vmem:[#allocation17_spill] sm:$0xff] }
  0x69   : > { %v664_v3 = vsel %vm601_vm4, %v662_v42, %v663_v48  ;;  %v666_v54 = vsel %vm601_vm4, %v663_v48, %v665_v6  ;;  %v668_v27 = vrot.slane %v3210_v32, 2  ;;  %v670_v25 = vrot.slane %v3218_v47, 2 }
  0x6a   : > { %2320 = vrot.lane.b32.xlu0 %v3348_v8, %s2896_s30  ;;  %v3401_v58 = vpack.i.bf16 %v641_v10, %v639_v61  ;;  %v3403_v11 = vpack.i.bf16 %v646_v13, %v644_v46  ;;  %v3405_v17 = vpack.i.bf16 %v651_v49, %v649_v39  ;;  %v3407_v12 = vpack.i.bf16 %v656_v30, %v654_v36  ;;  %v4348_v49 = vld [vmem:[#allocation3_spill] sm:$0xff]  ;;  %v4349_v30 = vld [vmem:[#allocation4_spill] sm:$0xff] }
  0x6b   : > { %v3409_v60 = vpack.i.bf16 %v661_v53, %v659_v15  ;;  %v3413_v44 = vpack.i.bf16 %v666_v54, %v664_v3  ;;  %v672_v47 = vrot.slane %v3272_v59, 2  ;;  %v673_v22 = vrot.slane %v3274_v7, 2 }
  0x6c   : > { %2325 = vrot.lane.b32.xlu1 %v3373_v43, %s2896_s30  ;;  %v669_v10 = vsel %vm601_vm4, %v667_v33, %v668_v27  ;;  %v671_v46 = vsel %vm601_vm4, %v668_v27, %v670_v25  ;;  %v675_v62 = vrot.slane %v3276_v1, 2  ;;  %v677_v36 = vrot.slane %v3283_v2, 2  ;;  %v4350_v33 = vld [vmem:[#allocation5_spill] sm:$0xff]  ;;  %v4353_v25 = vld [vmem:[#allocation8_spill] sm:$0xff] }
  0x6d   : > { %v678_v29 = vrot.slane %v4347_v20, 2  ;;  %v680_v42 = vrot.slane %v3291_v24, 2  ;;  %v3429_v48 = vpack.i.bf16 %v671_v46, %v669_v10  ;;  %v674_v6 = vsel %vm601_vm4, %v672_v47, %v673_v22  ;;  %v4354_v47 = vld [vmem:[#allocation9_spill] sm:$0xff]  ;;  %v4355_v46 = vld [vmem:[#allocation10_spill] sm:$0xff] }
  0x6e   : > { %2330 = vrot.lane.b32.xlu0 %v3380_v55, %s2896_s30  ;;  %v676_v1 = vsel %vm601_vm4, %v673_v22, %v675_v62  ;;  %v2379_v15 = vpack.i.bf16 %v4349_v30, %v4348_v49  ;;  %v2384_v53 = vpack.i.bf16 %v3070_v38, %v3068_v37  ;;  %v2389_v3 = vpack.i.bf16 %v3091_v50, %v4350_v33 }
  0x6f   : > { %v679_v61 = vsel %vm601_vm4, %v677_v36, %v678_v29  ;;  %v681_v13 = vsel %vm601_vm4, %v678_v29, %v680_v42  ;;  %v3441_v24 = vpack.i.bf16 %v676_v1, %v674_v6  ;;  %v2394_v54 = vpack.i.bf16 %v3101_v57, %v3099_v56  ;;  %v4356_v42 = vld [vmem:[#allocation11_spill] sm:$0xff] }
  0x70   : > { %2335 = vrot.lane.b32.xlu1 %v3401_v58, %s2896_s30  ;;  %v3445_v39 = vpack.i.bf16 %v681_v13, %v679_v61  ;;  %v2399_v27 = vpack.i.bf16 %v3112_v0, %v3110_v63  ;;  %v3467_v37 = vpack.i.bf16 %v3129_v14, %v3120_v9  ;;  %v3472_v38 = vpack.i.bf16 %v3140_v21, %v3133_v16  ;;  %v2859_v0 = vld [vmem:[%s4285_s1 + $0x10] ss:$0 sps:$4 sm:$0x33]   ;;  %v2860_v16 = vld [vmem:[%s4285_s1 + $0x8] sm:$0xff]  }
  0x71   : > { %v3478_v50 = vpack.i.bf16 %v3153_v28, %v3144_v23  ;;  %v3484_v56 = vpack.i.bf16 %v3163_v35, %v3161_v34  ;;  %v3490_v57 = vpack.i.bf16 %v3175_v52, %v3173_v51  ;;  %v3496_v63 = vpack.i.bf16 %v3186_v5, %v3184_v4  ;;  %2200 = vmatprep.subr.msk.bf16.mxu0 %vm1728_vm5, %v2859_v0  ;;  %v4351_v14 = vld [vmem:[#allocation7_spill] sm:$0xff]  ;;  %v4352_v21 = vld [vmem:[#allocation6_spill] sm:$0xff]  ;;  %v2861_v4 = vld [vmem:[%s4285_s1] sm:$0xff]  }
  0x72   : > { %2340 = vrot.lane.b32.xlu0 %v3403_v11, %s2896_s30  ;;  %v1730_v9 = vsel %vm1728_vm5, %v2859_v0, 0  ;;  %2201 = vmatprep.subr.msk.bf16.mxu1 %vm1728_vm5, %v2859_v0  ;;  %v286_v5 = vld [vmem:[%s2939_s21 + $0xf0] sm:$0xff] }
  0x73   : > { %2157 = vmatpush3.bf16.msra.mxu0 %v1730_v9  ;;  %2197 = vmatpush3.bf16.msra.mxu1 %v1730_v9  ;;  %320 = vst.msk [vmem:[#allocation2 + $0x181] sm:$0xff] %vm289_vm3, %v286_v5 }
  0x74   : > { %2345 = vrot.lane.b32.xlu1 %v3405_v17, %s2896_s30  ;;  %2158 = vmatprep.subr.bf16.mxu0 %v2860_v16 }
  0x75   : > { %2195 = vmatprep.subr.bf16.mxu1 %v2860_v16 }
  0x76   : > { %2350 = vrot.lane.b32.xlu0 %v3407_v12, %s2896_s30 }
  0x77   : > { %2159 = vmatpush3.bf16.msra.mxu0 %v2860_v16  ;;  %2198 = vmatpush3.bf16.msra.mxu1 %v2860_v16  ;;  %v4363_v16 = vld [vmem:[#allocation15_spill] sm:$0xff] }
  0x78   : > { %2355 = vrot.lane.b32.xlu1 %v3409_v60, %s2896_s30  ;;  %2160 = vmatprep.subr.bf16.mxu0 %v2861_v4 }
  0x79   : > { %2196 = vmatprep.subr.bf16.mxu1 %v2861_v4 }
  0x7a   : > { %2360 = vrot.lane.b32.xlu0 %v3413_v44, %s2896_s30 }
  0x7b   : > { %2161 = vmatpush3.bf16.msra.mxu0 %v2861_v4  ;;  %2199 = vmatpush3.bf16.msra.mxu1 %v2861_v4 }
  0x7c   : > { %2365 = vrot.lane.b32.xlu1 %v3429_v48, %s2896_s30 }
  0x7e   : > { %2370 = vrot.lane.b32.xlu0 %v3441_v24, %s2896_s30 }
  0x80   : > { %2375 = vrot.lane.b32.xlu1 %v3445_v39, %s2896_s30 }
  0x82   : > { %2380 = vrot.lane.b32.xlu0 %v2379_v15, %s2897_s5 }
  0x84   : > { %2385 = vrot.lane.b32.xlu1 %v2384_v53, %s2897_s5 }
  0x86   : > { %2390 = vrot.lane.b32.xlu0 %v2389_v3, %s2897_s5 }
  0x88   : > { %2395 = vrot.lane.b32.xlu1 %v2394_v54, %s2897_s5 }
  0x8a   : > { %2400 = vrot.lane.b32.xlu0 %v2399_v27, %s2897_s5 }
  0x8c   : > { %2405 = vrot.lane.b32.xlu1 %v3467_v37, %s2897_s5 }
  0x8e   : > { %2410 = vrot.lane.b32.xlu0 %v3472_v38, %s2897_s5 }
  0x90   : > { %2415 = vrot.lane.b32.xlu1 %v3478_v50, %s2897_s5 }
  0x92   : > { %2420 = vrot.lane.b32.xlu0 %v3484_v56, %s2897_s5 }
  0x94   : > { %2425 = vrot.lane.b32.xlu1 %v3490_v57, %s2897_s5 }
  0x96   : > { %2430 = vrot.lane.b32.xlu0 %v3496_v63, %s2897_s5 }
  0x98   : > { %2435 = vrot.lane.b32.xlu1 %v4351_v14, %s2898_s8 }
  0x9a   : > { %2440 = vrot.lane.b32.xlu0 %v4352_v21, %s2898_s8 }
  0x9c   : > { %2445 = vrot.lane.b32.xlu1 %v3341_v41, %s2899_s11  ;;  %v287_v41 = vld [vmem:[%s2939_s21 + $0xf8] sm:$0xff] }
  0x9d   : > { %321 = vst.msk [vmem:[#allocation2 + $0x189] sm:$0xff] %vm289_vm3, %v287_v41 }
  0x9e   : > { %2450 = vrot.lane.b32.xlu0 %v3343_v45, %s2899_s11 }
  0xa0   : > { %2455 = vrot.lane.b32.xlu1 %v2384_v53, %s2900_s14 }
  0xa2   : > { %2460 = vrot.lane.b32.xlu0 %v2389_v3, %s2900_s14  ;;  %v4361_v3 = vld [vmem:[#allocation13_spill] sm:$0xff] }
  0xa4   : > { %2465 = vrot.lane.b32.xlu1 %v4352_v21, %s2901_s16 }
  0xa6   : > { %2470 = vrot.lane.b32.xlu0 %v4353_v25, %s2901_s16 }
  0xa8   : > { %2475 = vrot.lane.b32.xlu1 %v3343_v45, %s2902_s17  ;;  %v3541_v22 = vpop.permute.xlu0 %2220 }
  0xaa   : > { %2480 = vrot.lane.b32.xlu0 %v3345_v26, %s2902_s17 }
  0xac   : > { %2485 = vrot.lane.b32.xlu1 %v4353_v25, %s2898_s8 }
  0xae   : > { %2490 = vrot.lane.b32.xlu0 %v4354_v47, %s2898_s8 }
  0xb0   : > { %2495 = vrot.lane.b32.xlu1 %v3345_v26, %s2899_s11 }
  0xb2   : > { %2500 = vrot.lane.b32.xlu0 %v3348_v8, %s2899_s11 }
  0xb4   : > { %2505 = vrot.lane.b32.xlu1 %v2394_v54, %s2900_s14 }
  0xb6   : > { %2510 = vrot.lane.b32.xlu0 %v2399_v27, %s2900_s14  ;;  %v3545_v45 = vpop.permute.xlu1 %2230 }
  0xb8   : > { %v3547_v10 = vpop.permute.xlu0 %2225  ;;  %2515 = vrot.lane.b32.xlu1 %v4354_v47, %s2901_s16 }
  0xba   : > { %2520 = vrot.lane.b32.xlu0 %v4355_v46, %s2901_s16  ;;  %v3553_v26 = vpop.permute.xlu1 %2235 }
  0xbc   : > { %v3555_v62 = vpop.permute.xlu0 %2240  ;;  %2525 = vrot.lane.b32.xlu1 %v3348_v8, %s2902_s17 }
  0xbe   : > { %2530 = vrot.lane.b32.xlu0 %v3373_v43, %s2902_s17  ;;  %v3561_v36 = vpop.permute.xlu1 %2245 }
  0xc0   : > { %v3563_v29 = vpop.permute.xlu0 %2250  ;;  %2535 = vrot.lane.b32.xlu1 %v4355_v46, %s2898_s8 }
  0xc2   : > { %2540 = vrot.lane.b32.xlu0 %v4356_v42, %s2898_s8  ;;  %v3569_v6 = vpop.permute.xlu1 %2255 }
  0xc4   : > { %v3571_v1 = vpop.permute.xlu0 %2260  ;;  %2545 = vrot.lane.b32.xlu1 %v3373_v43, %s2899_s11  ;;  %v4359_v43 = vld [vmem:[#allocation12_spill] sm:$0xff] }
  0xc6   : > { %2550 = vrot.lane.b32.xlu0 %v3380_v55, %s2899_s11  ;;  %v3577_v8 = vpop.permute.xlu1 %2265 }
  0xc8   : > { %v3579_v61 = vpop.permute.xlu0 %2270  ;;  %2555 = vrot.lane.b32.xlu1 %v3467_v37, %s2900_s14 }
  0xca   : > { %2560 = vrot.lane.b32.xlu0 %v3472_v38, %s2900_s14  ;;  %v3585_v13 = vpop.permute.xlu1 %2275 }
  0xcb   : > { %4357 = vst [vmem:[#allocation17_spill] sm:$0xff] %v3585_v13 }
  0xcc   : > { %v3587_v49 = vpop.permute.xlu0 %2280  ;;  %2565 = vrot.lane.b32.xlu1 %v4356_v42, %s2901_s16 }
  0xcd   : > { %4358 = vst [vmem:[#allocation3_spill] sm:$0xff] %v3587_v49 }
  0xce   : > { %2570 = vrot.lane.b32.xlu0 %v4359_v43, %s2901_s16  ;;  %v3593_v30 = vpop.permute.xlu1 %2285 }
  0xcf   : > { %4360 = vst [vmem:[#allocation4_spill] sm:$0xff] %v3593_v30 }
  0xd0   : > { %v2291_v15 = vpop.permute.xlu0 %2290  ;;  %2575 = vrot.lane.b32.xlu1 %v3380_v55, %s2902_s17 }
  0xd1   : > { %v2292_v5 = vunpack.i.l.bf16 %v2291_v15 }
  0xd2   : > { %2580 = vrot.lane.b32.xlu0 %v3401_v58, %s2902_s17  ;;  %v2296_v53 = vpop.permute.xlu1 %2295 }
  0xd3   : > { %v2298_v25 = vunpack.i.h.bf16 %v2296_v53  ;;  %v2297_v47 = vunpack.i.l.bf16 %v2296_v53 }
  0xd4   : > { %v3599_v33 = vpop.permute.xlu0 %2300  ;;  %2585 = vrot.lane.b32.xlu1 %v4359_v43, %s2898_s8 }
  0xd6   : > { %2590 = vrot.lane.b32.xlu0 %v4361_v3, %s2898_s8  ;;  %v3605_v54 = vpop.permute.xlu1 %2305 }
  0xd8   : > { %v3607_v27 = vpop.permute.xlu0 %2310  ;;  %2595 = vrot.lane.b32.xlu1 %v3401_v58, %s2899_s11  ;;  %v4362_v58 = vld [vmem:[#allocation14_spill] sm:$0xff] }
  0xda   : > { %2600 = vrot.lane.b32.xlu0 %v3403_v11, %s2899_s11  ;;  %v3613_v55 = vpop.permute.xlu1 %2315 }
  0xdc   : > { %v3615_v37 = vpop.permute.xlu0 %2320  ;;  %2605 = vrot.lane.b32.xlu1 %v3478_v50, %s2900_s14 }
  0xde   : > { %2610 = vrot.lane.b32.xlu0 %v3484_v56, %s2900_s14  ;;  %v3621_v38 = vpop.permute.xlu1 %2325 }
  0xe0   : > { %v3623_v0 = vpop.permute.xlu0 %2330  ;;  %2615 = vrot.lane.b32.xlu1 %v4361_v3, %s2901_s16 }
  0xe2   : > { %2620 = vrot.lane.b32.xlu0 %v4362_v58, %s2901_s16  ;;  %v3629_v9 = vpop.permute.xlu1 %2335 }
  0xe4   : > { %v3631_v14 = vpop.permute.xlu0 %2340  ;;  %2625 = vrot.lane.b32.xlu1 %v3403_v11, %s2902_s17  ;;  %v2293_v11 = vunpack.i.h.bf16 %v2291_v15 }
  0xe6   : > { %2630 = vrot.lane.b32.xlu0 %v3405_v17, %s2902_s17  ;;  %v3637_v50 = vpop.permute.xlu1 %2345  ;;  %v1409_v3 = vsel %vm289_vm3, %v3274_v7, %v2293_v11  ;;  %v1410_v11 = vsel %vm289_vm3, %v3283_v2, %v2297_v47  ;;  %v2684_v47 = vpack.i.bf16 %v3199_v19, %v3197_v18  ;;  %v2268_v18 = vunpack.i.h.bf16 %v3577_v8 }
  0xe7   : > { %v2267_v19 = vunpack.i.l.bf16 %v3577_v8  ;;  %v2273_v8 = vunpack.i.h.bf16 %v3579_v61 }
  0xe8   : > { %v3639_v56 = vpop.permute.xlu0 %2350  ;;  %2635 = vrot.lane.b32.xlu1 %v4362_v58, %s2898_s8 }
  0xea   : > { %2640 = vrot.lane.b32.xlu0 %v4363_v16, %s2898_s8  ;;  %v3645_v21 = vpop.permute.xlu1 %2355 }
  0xeb   : > { %4364 = vst [vmem:[#allocation5_spill] sm:$0xff] %v3645_v21 }
  0xec   : > { %v3647_v4 = vpop.permute.xlu0 %2360  ;;  %2645 = vrot.lane.b32.xlu1 %v3405_v17, %s2899_s11  ;;  %v1408_v17 = vsel %vm289_vm3, %v3272_v59, %v2292_v5 }
  0xed   : > { %4365 = vst [vmem:[#allocation7_spill] sm:$0xff] %v3647_v4 }
  0xee   : > { %2650 = vrot.lane.b32.xlu0 %v3407_v12, %s2899_s11  ;;  %v3653_v41 = vpop.permute.xlu1 %2365 }
  0xef   : > { %4366 = vst [vmem:[#allocation6_spill] sm:$0xff] %v3653_v41 }
  0xf0   : > { %v2371_v46 = vpop.permute.xlu0 %2370  ;;  %2655 = vrot.lane.b32.xlu1 %v3490_v57, %s2900_s14 }
  0xf1   : > { %v2373_v42 = vunpack.i.h.bf16 %v2371_v46  ;;  %v2372_v43 = vunpack.i.l.bf16 %v2371_v46  ;;  %v1411_v46 = vsel %vm289_vm3, %v4347_v20, %v2298_v25 }
  0xf2   : > { %2660 = vrot.lane.b32.xlu0 %v3496_v63, %s2900_s14  ;;  %v2376_v15 = vpop.permute.xlu1 %2375 }
  0xf3   : > { %v3664_v58 = vsel %vm1412_vm6, %v1408_v17, %v2372_v43  ;;  %v3667_v53 = vsel %vm1412_vm6, %v1409_v3, %v2373_v42  ;;  %v2378_v57 = vunpack.i.h.bf16 %v2376_v15  ;;  %v2377_v41 = vunpack.i.l.bf16 %v2376_v15  ;;  %v4371_v42 = vld [vmem:[#allocation16_spill] sm:$0xff] }
  0xf4   : > { %4367 = vst [vmem:[#allocation8_spill] sm:$0xff] %v3664_v58  ;;  %4368 = vst [vmem:[#allocation9_spill] sm:$0xff] %v3667_v53  ;;  %v3673_v5 = vpop.permute.xlu0 %2380  ;;  %2665 = vrot.lane.b32.xlu1 %v4363_v16, %s2901_s16  ;;  %v2263_v15 = vunpack.i.h.bf16 %v3571_v1  ;;  %v2348_v53 = vunpack.i.h.bf16 %v3637_v50 }
  0xf5   : > { %v3678_v63 = vsel %vm1412_vm6, %v1411_v46, %v2378_v57  ;;  %v3681_v43 = vsel %vm1412_vm6, %v1410_v11, %v2377_v41  ;;  %v2343_v46 = vunpack.i.h.bf16 %v3631_v14  ;;  %v2342_v11 = vunpack.i.l.bf16 %v3631_v14 }
  0xf6   : > { %4369 = vst [vmem:[#allocation10_spill] sm:$0xff] %v3678_v63  ;;  %4370 = vst [vmem:[#allocation11_spill] sm:$0xff] %v3681_v43  ;;  %2670 = vrot.lane.b32.xlu0 %v4371_v42, %s2901_s16  ;;  %v3685_v3 = vpop.permute.xlu1 %2385  ;;  %v3724_v63 = vpack.i.bf16 %v3210_v32, %v3208_v31  ;;  %v2272_v14 = vunpack.i.l.bf16 %v3579_v61 }
  0xf8   : > { %v3687_v25 = vpop.permute.xlu0 %2390  ;;  %2675 = vrot.lane.b32.xlu1 %v3407_v12, %s2902_s17  ;;  %v2262_v12 = vunpack.i.l.bf16 %v3571_v1  ;;  %v1397_v1 = vsel %vm289_vm3, %v3153_v28, %v2263_v15  ;;  %v1399_v28 = vsel %vm289_vm3, %v3163_v35, %v2268_v18 }
  0xf9   : > { %v1430_v61 = vsel %vm1412_vm6, %v1397_v1, %v2343_v46 }
  0xfa   : > { %2680 = vrot.lane.b32.xlu0 %v3409_v60, %s2902_s17  ;;  %v3695_v16 = vpop.permute.xlu1 %2395  ;;  %v1396_v43 = vsel %vm289_vm3, %v3144_v23, %v2262_v12  ;;  %v1398_v23 = vsel %vm289_vm3, %v3161_v34, %v2267_v19  ;;  %v2353_v12 = vunpack.i.h.bf16 %v3639_v56  ;;  %v1432_v19 = vsel %vm1412_vm6, %v1399_v28, %v2348_v53  ;;  %v372_v28 = vld [vmem:[#allocation2 + $0x190] sm:$0x3] }
  0xfb   : > { %v1429_v15 = vsel %vm1412_vm6, %v1396_v43, %v2342_v11  ;;  %v1400_v43 = vsel %vm289_vm3, %v3173_v51, %v2272_v14 }
  0xfc   : > { %v3697_v41 = vpop.permute.xlu0 %2400  ;;  %2685 = vrot.lane.b32.xlu1 %v2684_v47, %s2897_s5 }
  0xfe   : > { %2690 = vrot.lane.b32.xlu0 %v4371_v42, %s2898_s8  ;;  %v3702_v17 = vpop.permute.xlu1 %2405 }
 0x100   : > { %v3706_v57 = vpop.permute.xlu0 %2410  ;;  %2695 = vrot.lane.b32.xlu1 %v3289_v40, %s2898_s8 }
 0x102   : > { %2700 = vrot.lane.b32.xlu0 %v3409_v60, %s2899_s11  ;;  %v3716_v42 = vpop.permute.xlu1 %2415  ;;  %v2347_v60 = vunpack.i.l.bf16 %v3637_v50  ;;  %v2352_v50 = vunpack.i.l.bf16 %v3639_v56 }
 0x104   : > { %v2421_v58 = vpop.permute.xlu0 %2420  ;;  %2705 = vrot.lane.b32.xlu1 %v3413_v44, %s2899_s11  ;;  %v1431_v56 = vsel %vm1412_vm6, %v1398_v23, %v2347_v60  ;;  %v1433_v51 = vsel %vm1412_vm6, %v1400_v43, %v2352_v50  ;;  %v3773_v60 = vpack.i.bf16 %v3274_v7, %v3272_v59  ;;  %v2223_v23 = vunpack.i.h.bf16 %v3541_v22 }
 0x105   : > { %v2423_v31 = vunpack.i.h.bf16 %v2421_v58  ;;  %v2422_v32 = vunpack.i.l.bf16 %v2421_v58  ;;  %v1401_v58 = vsel %vm289_vm3, %v3175_v52, %v2273_v8  ;;  %v3761_v52 = vld [vmem:[#allocation2 + $0x180] sm:$0xff]  ;;  %v3763_v8 = vld [vmem:[#allocation2 + $0x188] sm:$0xff]  ;;  %v2227_v43 = vunpack.i.l.bf16 %v3547_v10 }
 0x106   : > { %2710 = vrot.lane.b32.xlu0 %v2684_v47, %s2900_s14  ;;  %v2426_v4 = vpop.permute.xlu1 %2425  ;;  %v1434_v53 = vsel %vm1412_vm6, %v1401_v58, %v2353_v12  ;;  %v877_v7 = vrot.slane %v3761_v52, 1  ;;  %v878_v12 = vrot.slane %v3763_v8, 1  ;;  %v978_v50 = vrot.slane %v3761_v52, 2 }
 0x107   : > { %v3742_v30 = vsel %vm1445_vm7, %v1429_v15, %v2422_v32  ;;  %v3745_v35 = vsel %vm1445_vm7, %v1430_v61, %v2423_v31  ;;  %v2428_v34 = vunpack.i.h.bf16 %v2426_v4  ;;  %v2427_v18 = vunpack.i.l.bf16 %v2426_v4 }
 0x108   : > { %v2431_v47 = vpop.permute.xlu0 %2430  ;;  %2715 = vrot.lane.b32.xlu1 %v3724_v63, %s2900_s14  ;;  %v2222_v31 = vunpack.i.l.bf16 %v3541_v22  ;;  %v880_v22 = vrot.slane %v372_v28, 1  ;;  %v2228_v58 = vunpack.i.h.bf16 %v3547_v10  ;;  %v2307_v10 = vunpack.i.l.bf16 %v3605_v54 }
 0x109   : > { %v3756_v46 = vsel %vm1445_vm7, %v1431_v56, %v2427_v18  ;;  %v3759_v11 = vsel %vm1445_vm7, %v1432_v19, %v2428_v34  ;;  %v2433_v4 = vunpack.i.h.bf16 %v2431_v47  ;;  %v2432_v1 = vunpack.i.l.bf16 %v2431_v47  ;;  %v2862_v56 = vld [vmem:[#allocation2] sm:$0xff] }
 0x10a   : > { %2720 = vrot.lane.b32.xlu0 %v3289_v40, %s2901_s16  ;;  %v3769_v14 = vpop.permute.xlu1 %2435  ;;  %v4374_v40 = vld [vmem:[#allocation18_spill] sm:$0xff]  ;;  %v979_v34 = vrot.slane %v3763_v8, 2  ;;  %v981_v18 = vrot.slane %v372_v28, 2  ;;  %v1380_v47 = vsel %vm289_vm3, %v2862_v56, %v2222_v31  ;;  %v2308_v28 = vunpack.i.h.bf16 %v3605_v54  ;;  %v2864_v56 = vld [vmem:[#allocation2 + $0x20] sm:$0xff] }
 0x10b   : > { %v3778_v32 = vsel %vm1445_vm7, %v1433_v51, %v2432_v1  ;;  %v3781_v15 = vsel %vm1445_vm7, %v1434_v53, %v2433_v4  ;;  %v2863_v4 = vld [vmem:[#allocation2 + $0x8] sm:$0xff]  ;;  %v2303_v51 = vunpack.i.h.bf16 %v3599_v33  ;;  %v2302_v53 = vunpack.i.l.bf16 %v3599_v33 }
 0x10c   : > { %4372 = vst [vmem:[#allocation12_spill] sm:$0xff] %v3778_v32  ;;  %4373 = vst [vmem:[#allocation13_spill] sm:$0xff] %v3781_v15  ;;  %v3783_v61 = vpop.permute.xlu0 %2440  ;;  %2725 = vrot.lane.b32.xlu1 %v4374_v40, %s2901_s16  ;;  %v1381_v1 = vsel %vm289_vm3, %v2863_v4, %v2223_v23  ;;  %v2383_v59 = vunpack.i.h.bf16 %v3673_v5  ;;  %v3810_v23 = vsel %vm424_vm2, %v877_v7, %v878_v12  ;;  %v2865_v4 = vld [vmem:[#allocation2 + $0x18] sm:$0xff]  ;;  %v2388_v32 = vunpack.i.h.bf16 %v3685_v3 }
 0x10d   : > { %v3813_v31 = vsel %vm424_vm2, %v878_v12, %v880_v22  ;;  %v3816_v33 = vsel %vm601_vm4, %v978_v50, %v979_v34  ;;  %v3819_v54 = vsel %vm601_vm4, %v979_v34, %v981_v18  ;;  %v1382_v15 = vsel %vm289_vm3, %v2865_v4, %v2227_v43 }
 0x10e   : > { %2730 = vrot.lane.b32.xlu0 %v3413_v44, %s2902_s17  ;;  %v3797_v19 = vpop.permute.xlu1 %2445  ;;  %v2382_v44 = vunpack.i.l.bf16 %v3673_v5  ;;  %v1383_v5 = vsel %vm289_vm3, %v2864_v56, %v2228_v58  ;;  %v2387_v7 = vunpack.i.l.bf16 %v3685_v3  ;;  %v1414_v22 = vsel %vm1412_vm6, %v1381_v1, %v2303_v51 }
 0x10f   : > { %v1413_v50 = vsel %vm1412_vm6, %v1380_v47, %v2302_v53  ;;  %v2438_v34 = vunpack.i.h.bf16 %v3769_v14  ;;  %v2437_v18 = vunpack.i.l.bf16 %v3769_v14  ;;  %v1415_v58 = vsel %vm1412_vm6, %v1382_v15, %v2307_v10 }
 0x110   : > { %v2451_v49 = vpop.permute.xlu0 %2450  ;;  %2735 = vrot.lane.b32.xlu1 %v3429_v48, %s2902_s17  ;;  %v1416_v43 = vsel %vm1412_vm6, %v1383_v5, %v2308_v28  ;;  %v1446_v56 = vsel %vm1445_vm7, %v1413_v50, %v2382_v44  ;;  %v1447_v3 = vsel %vm1445_vm7, %v1414_v22, %v2383_v59  ;;  %v2442_v47 = vunpack.i.l.bf16 %v3783_v61 }
 0x111   : > { %v2448_v1 = vunpack.i.h.bf16 %v3797_v19  ;;  %v2447_v14 = vunpack.i.l.bf16 %v3797_v19  ;;  %v1448_v15 = vsel %vm1445_vm7, %v1415_v58, %v2387_v7  ;;  %v1449_v51 = vsel %vm1445_vm7, %v1416_v43, %v2388_v32  ;;  %v4375_v7 = vld [vmem:[#allocation19_spill] sm:$0xff] }
 0x112   : > { %2740 = vrot.lane.b32.xlu0 %v3724_v63, %s2897_s5  ;;  %v2456_v12 = vpop.permute.xlu1 %2455  ;;  %v2443_v63 = vunpack.i.h.bf16 %v3783_v61  ;;  %v2453_v53 = vunpack.i.h.bf16 %v2451_v49  ;;  %v2452_v28 = vunpack.i.l.bf16 %v2451_v49  ;;  %v1479_v10 = vsel %vm1478_vm8, %v1446_v56, %v2437_v18 }
 0x113   : > { %v1480_v44 = vsel %vm1478_vm8, %v1447_v3, %v2438_v34  ;;  %v2458_v61 = vunpack.i.h.bf16 %v2456_v12  ;;  %v2457_v5 = vunpack.i.l.bf16 %v2456_v12  ;;  %v1481_v49 = vsel %vm1478_vm8, %v1448_v15, %v2442_v47 }
 0x114   : > { %v2461_v4 = vpop.permute.xlu0 %2460  ;;  %2745 = vrot.lane.b32.xlu1 %v3773_v60, %s2897_s5  ;;  %v1482_v32 = vsel %vm1478_vm8, %v1449_v51, %v2443_v63  ;;  %v1513_v18 = vsel %vm1511_vm9, %v1480_v44, %v2448_v1  ;;  %v1514_v34 = vsel %vm1511_vm9, %v1481_v49, %v2452_v28 }
 0x115   : > { %v2463_v22 = vunpack.i.h.bf16 %v2461_v4  ;;  %v2462_v50 = vunpack.i.l.bf16 %v2461_v4  ;;  %v1515_v12 = vsel %vm1511_vm9, %v1482_v32, %v2453_v53  ;;  %v1546_v4 = vsel %vm1544_vm10, %v1513_v18, %v2458_v61  ;;  %v2867_v18 = vld [vmem:[#allocation2 + $0x170] sm:$0xff] }
 0x116   : > { %2750 = vrot.lane.b32.xlu0 %v4374_v40, %s2898_s8  ;;  %v2466_v59 = vpop.permute.xlu1 %2465  ;;  %v1512_v40 = vsel %vm1511_vm9, %v1479_v10, %v2447_v14  ;;  %v2233_v10 = vunpack.i.h.bf16 %v3545_v45 }
 0x117   : > { %v2468_v19 = vunpack.i.h.bf16 %v2466_v59  ;;  %v2467_v21 = vunpack.i.l.bf16 %v2466_v59  ;;  %v1545_v3 = vsel %vm1544_vm10, %v1512_v40, %v2457_v5  ;;  %v1547_v14 = vsel %vm1544_vm10, %v1514_v34, %v2462_v50 }
 0x118   : > { %v2471_v13 = vpop.permute.xlu0 %2470  ;;  %2755 = vrot.lane.b32.xlu1 %v4375_v7, %s2898_s8  ;;  %v1548_v1 = vsel %vm1544_vm10, %v1515_v12, %v2463_v22  ;;  %v2232_v22 = vunpack.i.l.bf16 %v3545_v45  ;;  %v4376_v40 = vpack.i.bf16 %v4347_v20, %v3283_v2  ;;  %v3886_v45 = vpack.i.bf16 %v3763_v8, %v3761_v52  ;;  %v3888_v12 = vld [vmem:[#allocation2 + $0x1a0] sm:$0xff]  ;;  %v2868_v2 = vld [vmem:[#allocation2 + $0x38] sm:$0xff] }
 0x119   : > { %v2473_v58 = vunpack.i.h.bf16 %v2471_v13  ;;  %v2472_v43 = vunpack.i.l.bf16 %v2471_v13  ;;  %v1578_v13 = vsel %vm1577_vm11, %v1545_v3, %v2467_v21  ;;  %v1579_v51 = vsel %vm1577_vm11, %v1546_v4, %v2468_v19  ;;  %v3904_v8 = vld [vmem:[#allocation2 + $0x198] sm:$0xff] }
 0x11a   : > { %2760 = vrot.lane.b32.xlu0 %v3429_v48, %s2899_s11  ;;  %v2476_v56 = vpop.permute.xlu1 %2475  ;;  %v1385_v20 = vsel %vm289_vm3, %v2868_v2, %v2233_v10  ;;  %v2237_v3 = vunpack.i.l.bf16 %v3553_v26  ;;  %v2312_v4 = vunpack.i.l.bf16 %v3607_v27  ;;  %v2397_v10 = vunpack.i.l.bf16 %v3695_v16 }
 0x11b   : > { %v2478_v47 = vunpack.i.h.bf16 %v2476_v56  ;;  %v2477_v63 = vunpack.i.l.bf16 %v2476_v56  ;;  %v1580_v44 = vsel %vm1577_vm11, %v1547_v14, %v2472_v43  ;;  %v1581_v61 = vsel %vm1577_vm11, %v1548_v1, %v2473_v58 }
 0x11c   : > { %v2481_v15 = vpop.permute.xlu0 %2480  ;;  %2765 = vrot.lane.b32.xlu1 %v3441_v24, %s2899_s11  ;;  %v3892_v58 = vpack.i.bf16 %v3813_v31, %v3810_v23  ;;  %v3896_v43 = vpack.i.bf16 %v3819_v54, %v3816_v33  ;;  %v2238_v56 = vunpack.i.h.bf16 %v3553_v26  ;;  %v3906_v23 = vld [vmem:[#allocation2 + $0x1a8] sm:$0x3]  ;;  %v2869_v31 = vld [vmem:[#allocation2 + $0x30] sm:$0xff]  ;;  %v2313_v54 = vunpack.i.h.bf16 %v3607_v27 }
 0x11d   : > { %v2483_v48 = vunpack.i.h.bf16 %v2481_v15  ;;  %v2482_v53 = vunpack.i.l.bf16 %v2481_v15  ;;  %v1611_v28 = vsel %vm1610_vm12, %v1578_v13, %v2477_v63  ;;  %v1612_v59 = vsel %vm1610_vm12, %v1579_v51, %v2478_v47  ;;  %v4377_v15 = vld [vmem:[#allocation20_spill] sm:$0xff] }
 0x11e   : > { %2770 = vrot.lane.b32.xlu0 %v3773_v60, %s2900_s14  ;;  %v3872_v5 = vpop.permute.xlu1 %2485  ;;  %v1643_v21 = vpack.c.bf16 %v1612_v59, %v1611_v28  ;;  %v2866_v60 = vld [vmem:[#allocation2 + $0x168] sm:$0xff]  ;;  %v1384_v33 = vsel %vm289_vm3, %v2869_v31, %v2232_v22  ;;  %v1179_v47 = vrot.slane %v3888_v12, 1  ;;  %v2318_v26 = vunpack.i.h.bf16 %v3613_v55 }
 0x11f   : > { %v1613_v50 = vsel %vm1610_vm12, %v1580_v44, %v2482_v53  ;;  %v1614_v19 = vsel %vm1610_vm12, %v1581_v61, %v2483_v48  ;;  %v2799_v34 = vpack.i.bf16 %v2867_v18, %v2866_v60  ;;  %v2393_v63 = vunpack.i.h.bf16 %v3687_v25  ;;  %v2870_v53 = vld [vmem:[#allocation2 + $0x50] sm:$0xff] }
 0x120   : > { %v1644_v49 = vpack.c.bf16 %v1614_v19, %v1613_v50  ;;  %v3877_v32 = vpop.permute.xlu0 %2490  ;;  %2775 = vrot.lane.b32.xlu1 %v4376_v40, %s2900_s14  ;;  %2162 = vmatprep.mubr.msk.bf16.mxu0 %vm1679_vm13, %v1643_v21  ;;  %v2392_v14 = vunpack.i.l.bf16 %v3687_v25  ;;  %v1280_v13 = vrot.slane %v3888_v12, 2  ;;  %v1178_v51 = vrot.slane %v3904_v8, 1 }
 0x121   : > { %v1279_v27 = vrot.slane %v3904_v8, 2  ;;  %v1181_v48 = vrot.slane %v3906_v23, 1  ;;  %v1387_v28 = vsel %vm289_vm3, %v2870_v53, %v2238_v56  ;;  %v2398_v25 = vunpack.i.h.bf16 %v3695_v16 }
 0x122   : > { %2780 = vrot.lane.b32.xlu0 %v4375_v7, %s2901_s16  ;;  %2163 = vmatmul.mubr.msk.bf16.vlgmr.msra.gmra.mxu0 %vm1679_vm13, %v1644_v49  ;;  %v2496_v52 = vpop.permute.xlu1 %2495  ;;  %v2317_v7 = vunpack.i.l.bf16 %v3613_v55  ;;  %v2871_v55 = vld [vmem:[#allocation2 + $0x48] sm:$0xff]  ;;  %v1418_v61 = vsel %vm1412_vm6, %v1385_v20, %v2313_v54  ;;  %v1417_v21 = vsel %vm1412_vm6, %v1384_v33, %v2312_v4  ;;  %v2488_v22 = vunpack.i.h.bf16 %v3872_v5 }
 0x123   : > { %v1386_v59 = vsel %vm289_vm3, %v2871_v55, %v2237_v3  ;;  %v2487_v50 = vunpack.i.l.bf16 %v3872_v5  ;;  %v1420_v19 = vsel %vm1412_vm6, %v1387_v28, %v2318_v26  ;;  %v1450_v40 = vsel %vm1445_vm7, %v1417_v21, %v2392_v14 }
 0x124   : > { %v2501_v1 = vpop.permute.xlu0 %2500  ;;  %2785 = vrot.lane.b32.xlu1 %v4377_v15, %s2901_s16  ;;  %v1419_v49 = vsel %vm1412_vm6, %v1386_v59, %v2317_v7  ;;  %v1451_v16 = vsel %vm1445_vm7, %v1418_v61, %v2393_v63  ;;  %v2492_v18 = vunpack.i.l.bf16 %v3877_v32  ;;  %v2498_v2 = vunpack.i.h.bf16 %v2496_v52 }
 0x125   : > { %v2497_v20 = vunpack.i.l.bf16 %v2496_v52  ;;  %v1452_v5 = vsel %vm1445_vm7, %v1419_v49, %v2397_v10  ;;  %v1453_v56 = vsel %vm1445_vm7, %v1420_v19, %v2398_v25  ;;  %v2503_v3 = vunpack.i.h.bf16 %v2501_v1 }
 0x126   : > { %2790 = vrot.lane.b32.xlu0 %v3441_v24, %s2902_s17  ;;  %v2506_v44 = vpop.permute.xlu1 %2505  ;;  %v2493_v24 = vunpack.i.h.bf16 %v3877_v32  ;;  %v2502_v31 = vunpack.i.l.bf16 %v2501_v1  ;;  %v1483_v54 = vsel %vm1478_vm8, %v1450_v40, %v2487_v50  ;;  %v1484_v4 = vsel %vm1478_vm8, %v1451_v16, %v2488_v22 }
 0x127   : > { %v2508_v26 = vunpack.i.h.bf16 %v2506_v44  ;;  %v2507_v7 = vunpack.i.l.bf16 %v2506_v44  ;;  %v1485_v1 = vsel %vm1478_vm8, %v1452_v5, %v2492_v18  ;;  %v1517_v55 = vsel %vm1511_vm9, %v1484_v4, %v2498_v2 }
 0x128   : > { %v2511_v60 = vpop.permute.xlu0 %2510  ;;  %2795 = vrot.lane.b32.xlu1 %v3445_v39, %s2902_s17  ;;  %v1486_v28 = vsel %vm1478_vm8, %v1453_v56, %v2493_v24  ;;  %v1518_v59 = vsel %vm1511_vm9, %v1485_v1, %v2502_v31  ;;  %v2327_v1 = vunpack.i.l.bf16 %v3621_v38 }
 0x129   : > { %v2513_v63 = vunpack.i.h.bf16 %v2511_v60  ;;  %v2512_v14 = vunpack.i.l.bf16 %v2511_v60  ;;  %v1519_v25 = vsel %vm1511_vm9, %v1486_v28, %v2503_v3  ;;  %v1550_v22 = vsel %vm1544_vm10, %v1517_v55, %v2508_v26 }
 0x12a   : > { %2800 = vrot.lane.b32.xlu0 %v2799_v34, %s2897_s5  ;;  %v2516_v33 = vpop.permute.xlu1 %2515  ;;  %v1516_v34 = vsel %vm1511_vm9, %v1483_v54, %v2497_v20  ;;  %v1182_v26 = vsel %vm424_vm2, %v1179_v47, %v1181_v48  ;;  %v2322_v28 = vunpack.i.l.bf16 %v3615_v37  ;;  %v2402_v55 = vunpack.i.l.bf16 %v3697_v41 }
 0x12b   : > { %v2518_v32 = vunpack.i.h.bf16 %v2516_v33  ;;  %v2517_v53 = vunpack.i.l.bf16 %v2516_v33  ;;  %v1549_v21 = vsel %vm1544_vm10, %v1516_v34, %v2507_v7  ;;  %v1551_v49 = vsel %vm1544_vm10, %v1518_v59, %v2512_v14 }
 0x12c   : > { %v2521_v52 = vpop.permute.xlu0 %2520  ;;  %2805 = vrot.lane.b32.xlu1 %v3886_v45, %s2897_s5  ;;  %v1552_v40 = vsel %vm1544_vm10, %v1519_v25, %v2513_v63  ;;  %v1180_v33 = vsel %vm424_vm2, %v1178_v51, %v1179_v47  ;;  %v2834_v51 = vpack.i.bf16 %v3888_v12, %v3904_v8  ;;  %v2243_v14 = vunpack.i.h.bf16 %v3555_v62  ;;  %v2873_v25 = vld [vmem:[#allocation2 + $0x60] sm:$0xff] }
 0x12d   : > { %v2523_v10 = vunpack.i.h.bf16 %v2521_v52  ;;  %v2522_v44 = vunpack.i.l.bf16 %v2521_v52  ;;  %v1582_v16 = vsel %vm1577_vm11, %v1549_v21, %v2517_v53  ;;  %v1583_v60 = vsel %vm1577_vm11, %v1550_v22, %v2518_v32  ;;  %v2874_v12 = vld [vmem:[#allocation2 + $0x80] sm:$0xff] }
 0x12e   : > { %2810 = vrot.lane.b32.xlu0 %v4377_v15, %s2898_s8  ;;  %v2526_v61 = vpop.permute.xlu1 %2525  ;;  %v2242_v32 = vunpack.i.l.bf16 %v3555_v62  ;;  %v2248_v53 = vunpack.i.h.bf16 %v3561_v36  ;;  %v2247_v47 = vunpack.i.l.bf16 %v3561_v36  ;;  %v2844_v48 = vpack.i.bf16 %v1182_v26, %v1180_v33 }
 0x12f   : > { %v2528_v50 = vunpack.i.h.bf16 %v2526_v61  ;;  %v2527_v19 = vunpack.i.l.bf16 %v2526_v61  ;;  %v1584_v5 = vsel %vm1577_vm11, %v1551_v49, %v2522_v44  ;;  %v1585_v56 = vsel %vm1577_vm11, %v1552_v40, %v2523_v10  ;;  %v2875_v10 = vld [vmem:[#allocation2 + $0x78] sm:$0xff] }
 0x130   : > { %v2531_v24 = vpop.permute.xlu0 %2530  ;;  %2815 = vrot.lane.b32.xlu1 %v3892_v58, %s2898_s8  ;;  %v2323_v52 = vunpack.i.h.bf16 %v3615_v37  ;;  %v1281_v62 = vsel %vm601_vm4, %v1279_v27, %v1280_v13  ;;  %v2403_v34 = vunpack.i.h.bf16 %v3697_v41  ;;  %v2872_v37 = vld [vmem:[#allocation2 + $0x68] sm:$0xff]  ;;  %v1388_v27 = vsel %vm289_vm3, %v2873_v25, %v2242_v32 }
 0x131   : > { %v1615_v15 = vsel %vm1610_vm12, %v1582_v16, %v2527_v19  ;;  %v1616_v18 = vsel %vm1610_vm12, %v1583_v60, %v2528_v50  ;;  %v2533_v2 = vunpack.i.h.bf16 %v2531_v24  ;;  %v2532_v20 = vunpack.i.l.bf16 %v2531_v24 }
 0x132   : > { %v1645_v3 = vpack.c.bf16 %v1616_v18, %v1615_v15  ;;  %2820 = vrot.lane.b32.xlu0 %v3445_v39, %s2899_s11  ;;  %v3969_v31 = vpop.permute.xlu1 %2535  ;;  %v1282_v39 = vrot.slane %v3906_v23, 2  ;;  %v1389_v8 = vsel %vm289_vm3, %v2872_v37, %v2243_v14  ;;  %v1390_v44 = vsel %vm289_vm3, %v2875_v10, %v2247_v47 }
 0x133   : > { %v1617_v54 = vsel %vm1610_vm12, %v1584_v5, %v2532_v20  ;;  %v1618_v4 = vsel %vm1610_vm12, %v1585_v56, %v2533_v2  ;;  %v2407_v61 = vunpack.i.l.bf16 %v3702_v17  ;;  %v1421_v22 = vsel %vm1412_vm6, %v1388_v27, %v2322_v28 }
 0x134   : > { %v1646_v7 = vpack.c.bf16 %v1618_v4, %v1617_v54  ;;  %v3984_v63 = vpop.permute.xlu0 %2540  ;;  %2825 = vrot.lane.b32.xlu1 %v3896_v43, %s2899_s11  ;;  %2166 = vmatprep.mubr.msk.bf16.mxu0 %vm1679_vm13, %v1645_v3  ;;  %v1283_v36 = vsel %vm601_vm4, %v1280_v13, %v1282_v39  ;;  %v1391_v13 = vsel %vm289_vm3, %v2874_v12, %v2248_v53  ;;  %v2538_v19 = vunpack.i.h.bf16 %v3969_v31 }
 0x135   : > { %v2854_v21 = vpack.i.bf16 %v1283_v36, %v1281_v62  ;;  %v1422_v50 = vsel %vm1412_vm6, %v1389_v8, %v2323_v52  ;;  %v2537_v49 = vunpack.i.l.bf16 %v3969_v31  ;;  %v1423_v16 = vsel %vm1412_vm6, %v1390_v44, %v2327_v1 }
 0x136   : > { %2830 = vrot.lane.b32.xlu0 %v3886_v45, %s2900_s14  ;;  %2167 = vmatmul.mubr.msk.bf16.gmra.mxu0 %vm1679_vm13, %v1646_v7  ;;  %v2546_v23 = vpop.permute.xlu1 %2545  ;;  %v2328_v45 = vunpack.i.h.bf16 %v3621_v38  ;;  %v2408_v38 = vunpack.i.h.bf16 %v3702_v17  ;;  %v1454_v60 = vsel %vm1445_vm7, %v1421_v22, %v2402_v55  ;;  %v1455_v17 = vsel %vm1445_vm7, %v1422_v50, %v2403_v34 }
 0x137   : > { %v2542_v15 = vunpack.i.l.bf16 %v3984_v63  ;;  %v2548_v18 = vunpack.i.h.bf16 %v2546_v23  ;;  %v2547_v2 = vunpack.i.l.bf16 %v2546_v23  ;;  %v1456_v20 = vsel %vm1445_vm7, %v1423_v16, %v2407_v61 }
 0x138   : > { %v2551_v59 = vpop.permute.xlu0 %2550  ;;  %2835 = vrot.lane.b32.xlu1 %v2834_v51, %s2900_s14  ;;  %v1424_v40 = vsel %vm1412_vm6, %v1391_v13, %v2328_v45  ;;  %v1487_v33 = vsel %vm1478_vm8, %v1454_v60, %v2537_v49  ;;  %v1488_v54 = vsel %vm1478_vm8, %v1455_v17, %v2538_v19  ;;  %v2253_v49 = vunpack.i.h.bf16 %v3563_v29 }
 0x139   : > { %v1457_v5 = vsel %vm1445_vm7, %v1424_v40, %v2408_v38  ;;  %v2553_v56 = vunpack.i.h.bf16 %v2551_v59  ;;  %v2552_v3 = vunpack.i.l.bf16 %v2551_v59  ;;  %v1489_v53 = vsel %vm1478_vm8, %v1456_v20, %v2542_v15 }
 0x13a   : > { %2840 = vrot.lane.b32.xlu0 %v3892_v58, %s2901_s16  ;;  %v2556_v41 = vpop.permute.xlu1 %2555  ;;  %v2543_v58 = vunpack.i.h.bf16 %v3984_v63  ;;  %v1521_v47 = vsel %vm1511_vm9, %v1488_v54, %v2548_v18  ;;  %v2252_v40 = vunpack.i.l.bf16 %v3563_v29  ;;  %v2258_v16 = vunpack.i.h.bf16 %v3569_v6  ;;  %v2879_v54 = vld [vmem:[#allocation2 + $0xa8] sm:$0xff] }
 0x13b   : > { %v2558_v4 = vunpack.i.h.bf16 %v2556_v41  ;;  %v2557_v26 = vunpack.i.l.bf16 %v2556_v41  ;;  %v1522_v23 = vsel %vm1511_vm9, %v1489_v53, %v2552_v3  ;;  %v2257_v60 = vunpack.i.l.bf16 %v3569_v6  ;;  %v2877_v6 = vld [vmem:[#allocation2 + $0x90] sm:$0xff] }
 0x13c   : > { %v2561_v24 = vpop.permute.xlu0 %2560  ;;  %2845 = vrot.lane.b32.xlu1 %v2844_v48, %s2901_s16  ;;  %v1490_v32 = vsel %vm1478_vm8, %v1457_v5, %v2543_v58  ;;  %v2332_v58 = vunpack.i.l.bf16 %v3623_v0  ;;  %v2338_v15 = vunpack.i.h.bf16 %v3629_v9  ;;  %v2337_v18 = vunpack.i.l.bf16 %v3629_v9  ;;  %v2876_v5 = vld [vmem:[#allocation2 + $0x98] sm:$0xff] }
 0x13d   : > { %v2563_v39 = vunpack.i.h.bf16 %v2561_v24  ;;  %v2562_v7 = vunpack.i.l.bf16 %v2561_v24  ;;  %v1523_v48 = vsel %vm1511_vm9, %v1490_v32, %v2553_v56  ;;  %v1554_v45 = vsel %vm1544_vm10, %v1521_v47, %v2558_v4 }
 0x13e   : > { %2850 = vrot.lane.b32.xlu0 %v3896_v43, %s2902_s17  ;;  %v2566_v31 = vpop.permute.xlu1 %2565  ;;  %v1520_v43 = vsel %vm1511_vm9, %v1487_v33, %v2547_v2  ;;  %v2333_v24 = vunpack.i.h.bf16 %v3623_v0  ;;  %v2413_v2 = vunpack.i.h.bf16 %v3706_v57  ;;  %v2412_v20 = vunpack.i.l.bf16 %v3706_v57 }
 0x13f   : > { %v2568_v63 = vunpack.i.h.bf16 %v2566_v31  ;;  %v2567_v51 = vunpack.i.l.bf16 %v2566_v31  ;;  %v1553_v36 = vsel %vm1544_vm10, %v1520_v43, %v2557_v26  ;;  %v1555_v55 = vsel %vm1544_vm10, %v1522_v23, %v2562_v7  ;;  %v2878_v31 = vld [vmem:[#allocation2 + $0xb0] sm:$0xff] }
 0x140   : > { %v2571_v14 = vpop.permute.xlu0 %2570  ;;  %2855 = vrot.lane.b32.xlu1 %v2854_v21, %s2902_s17  ;;  %v1556_v59 = vsel %vm1544_vm10, %v1523_v48, %v2563_v39  ;;  %v1393_v56 = vsel %vm289_vm3, %v2876_v5, %v2253_v49  ;;  %v1392_v3 = vsel %vm289_vm3, %v2877_v6, %v2252_v40  ;;  %v1395_v33 = vsel %vm289_vm3, %v2878_v31, %v2258_v16 }
 0x141   : > { %v2573_v52 = vunpack.i.h.bf16 %v2571_v14  ;;  %v2572_v28 = vunpack.i.l.bf16 %v2571_v14  ;;  %v1586_v37 = vsel %vm1577_vm11, %v1553_v36, %v2567_v51  ;;  %v1587_v8 = vsel %vm1577_vm11, %v1554_v45, %v2568_v63 }
 0x142   : > { %v2576_v62 = vpop.permute.xlu1 %2575  ;;  %v1394_v0 = vsel %vm289_vm3, %v2879_v54, %v2257_v60  ;;  %v2418_v4 = vunpack.i.h.bf16 %v3716_v42  ;;  %v2417_v9 = vunpack.i.l.bf16 %v3716_v42  ;;  %v1425_v57 = vsel %vm1412_vm6, %v1392_v3, %v2332_v58 }
 0x143   : > { %v2578_v1 = vunpack.i.h.bf16 %v2576_v62  ;;  %v2577_v34 = vunpack.i.l.bf16 %v2576_v62  ;;  %v1588_v44 = vsel %vm1577_vm11, %v1555_v55, %v2572_v28  ;;  %v1589_v38 = vsel %vm1577_vm11, %v1556_v59, %v2573_v52 }
 0x144   : > { %v2581_v25 = vpop.permute.xlu0 %2580  ;;  %v1426_v39 = vsel %vm1412_vm6, %v1393_v56, %v2333_v24  ;;  %v1428_v51 = vsel %vm1412_vm6, %v1395_v33, %v2338_v15  ;;  %v1427_v14 = vsel %vm1412_vm6, %v1394_v0, %v2337_v18  ;;  %v1458_v32 = vsel %vm1445_vm7, %v1425_v57, %v2412_v20 }
 0x145   : > { %v1619_v27 = vsel %vm1610_vm12, %v1586_v37, %v2577_v34  ;;  %v1620_v12 = vsel %vm1610_vm12, %v1587_v8, %v2578_v1  ;;  %v2583_v13 = vunpack.i.h.bf16 %v2581_v25  ;;  %v2582_v10 = vunpack.i.l.bf16 %v2581_v25 }
 0x146   : > { %v1647_v61 = vpack.c.bf16 %v1620_v12, %v1619_v27  ;;  %v2586_v41 = vpop.permute.xlu1 %2585  ;;  %v1459_v53 = vsel %vm1445_vm7, %v1426_v39, %v2413_v2  ;;  %v1460_v52 = vsel %vm1445_vm7, %v1427_v14, %v2417_v9  ;;  %v1461_v28 = vsel %vm1445_vm7, %v1428_v51, %v2418_v4 }
 0x147   : > { %v1621_v21 = vsel %vm1610_vm12, %v1588_v44, %v2582_v10  ;;  %v1622_v22 = vsel %vm1610_vm12, %v1589_v38, %v2583_v13  ;;  %v2588_v7 = vunpack.i.h.bf16 %v2586_v41  ;;  %v2587_v63 = vunpack.i.l.bf16 %v2586_v41 }
 0x148   : > { %v1648_v50 = vpack.c.bf16 %v1622_v22, %v1621_v21  ;;  %v2591_v19 = vpop.permute.xlu0 %2590  ;;  %2170 = vmatprep.mubr.msk.bf16.mxu0 %vm1679_vm13, %v1647_v61 }
 0x149   : > { %v2593_v47 = vunpack.i.h.bf16 %v2591_v19  ;;  %v2592_v23 = vunpack.i.l.bf16 %v2591_v19  ;;  %v1491_v1 = vsel %vm1478_vm8, %v1458_v32, %v2587_v63  ;;  %v1492_v34 = vsel %vm1478_vm8, %v1459_v53, %v2588_v7 }
 0x14a   : > { %2171 = vmatmul.mubr.msk.bf16.gmra.mxu0 %vm1679_vm13, %v1648_v50  ;;  %v2596_v17 = vpop.permute.xlu1 %2595 }
 0x14b   : > { %v2598_v48 = vunpack.i.h.bf16 %v2596_v17  ;;  %v2597_v42 = vunpack.i.l.bf16 %v2596_v17  ;;  %v1494_v13 = vsel %vm1478_vm8, %v1461_v28, %v2593_v47  ;;  %v1493_v10 = vsel %vm1478_vm8, %v1460_v52, %v2592_v23 }
 0x14c   : > { %v2601_v29 = vpop.permute.xlu0 %2600 }
 0x14d   : > { %v2603_v62 = vunpack.i.h.bf16 %v2601_v29  ;;  %v2602_v36 = vunpack.i.l.bf16 %v2601_v29  ;;  %v1524_v44 = vsel %vm1511_vm9, %v1491_v1, %v2597_v42  ;;  %v1525_v38 = vsel %vm1511_vm9, %v1492_v34, %v2598_v48 }
 0x14e   : > { %v2606_v26 = vpop.permute.xlu1 %2605 }
 0x14f   : > { %v2608_v55 = vunpack.i.h.bf16 %v2606_v26  ;;  %v2607_v59 = vunpack.i.l.bf16 %v2606_v26  ;;  %v1526_v61 = vsel %vm1511_vm9, %v1493_v10, %v2602_v36  ;;  %v1527_v41 = vsel %vm1511_vm9, %v1494_v13, %v2603_v62 }
 0x150   : > { %v2611_v43 = vpop.permute.xlu0 %2610 }
 0x151   : > { %v2613_v37 = vunpack.i.h.bf16 %v2611_v43  ;;  %v2612_v8 = vunpack.i.l.bf16 %v2611_v43  ;;  %v1557_v19 = vsel %vm1544_vm10, %v1524_v44, %v2607_v59  ;;  %v1558_v49 = vsel %vm1544_vm10, %v1525_v38, %v2608_v55 }
 0x152   : > { %v2616_v45 = vpop.permute.xlu1 %2615 }
 0x153   : > { %v2618_v25 = vunpack.i.h.bf16 %v2616_v45  ;;  %v2617_v27 = vunpack.i.l.bf16 %v2616_v45  ;;  %v1559_v60 = vsel %vm1544_vm10, %v1526_v61, %v2612_v8  ;;  %v1560_v17 = vsel %vm1544_vm10, %v1527_v41, %v2613_v37 }
 0x154   : > { %v2621_v12 = vpop.permute.xlu0 %2620 }
 0x155   : > { %v2623_v21 = vunpack.i.h.bf16 %v2621_v12  ;;  %v2622_v22 = vunpack.i.l.bf16 %v2621_v12  ;;  %v1590_v24 = vsel %vm1577_vm11, %v1557_v19, %v2617_v27  ;;  %v1591_v58 = vsel %vm1577_vm11, %v1558_v49, %v2618_v25 }
 0x156   : > { %v2626_v50 = vpop.permute.xlu1 %2625 }
 0x157   : > { %v2628_v40 = vunpack.i.h.bf16 %v2626_v50  ;;  %v2627_v16 = vunpack.i.l.bf16 %v2626_v50  ;;  %v1592_v5 = vsel %vm1577_vm11, %v1559_v60, %v2622_v22  ;;  %v1593_v56 = vsel %vm1577_vm11, %v1560_v17, %v2623_v21 }
 0x158   : > { %v2631_v15 = vpop.permute.xlu0 %2630 }
 0x159   : > { %v1623_v18 = vsel %vm1610_vm12, %v1590_v24, %v2627_v16  ;;  %v1624_v2 = vsel %vm1610_vm12, %v1591_v58, %v2628_v40  ;;  %v2633_v20 = vunpack.i.h.bf16 %v2631_v15  ;;  %v2632_v29 = vunpack.i.l.bf16 %v2631_v15 }
 0x15a   : > { %v1649_v6 = vpack.c.bf16 %v1624_v2, %v1623_v18  ;;  %v2636_v3 = vpop.permute.xlu1 %2635 }
 0x15b   : > { %v1625_v31 = vsel %vm1610_vm12, %v1592_v5, %v2632_v29  ;;  %v1626_v33 = vsel %vm1610_vm12, %v1593_v56, %v2633_v20  ;;  %v2638_v57 = vunpack.i.h.bf16 %v2636_v3  ;;  %v2637_v39 = vunpack.i.l.bf16 %v2636_v3  ;;  %v4378_v20 = vld [vmem:[#allocation17_spill] sm:$0xff] }
 0x15c   : > { %v1650_v54 = vpack.c.bf16 %v1626_v33, %v1625_v31  ;;  %v2641_v0 = vpop.permute.xlu0 %2640  ;;  %2174 = vmatprep.mubr.msk.bf16.mxu0 %vm1679_vm13, %v1649_v6  ;;  %v2278_v29 = vunpack.i.h.bf16 %v4378_v20  ;;  %v2277_v5 = vunpack.i.l.bf16 %v4378_v20  ;;  %v4379_v56 = vld [vmem:[#allocation5_spill] sm:$0xff] }
 0x15d   : > { %v2643_v63 = vunpack.i.h.bf16 %v2641_v0  ;;  %v2642_v51 = vunpack.i.l.bf16 %v2641_v0  ;;  %v1495_v23 = vsel %vm1478_vm8, %v3742_v30, %v2637_v39  ;;  %v1496_v48 = vsel %vm1478_vm8, %v3745_v35, %v2638_v57 }
 0x15e   : > { %2175 = vmatmul.mubr.msk.bf16.gmra.mxu0 %vm1679_vm13, %v1650_v54  ;;  %v2646_v4 = vpop.permute.xlu1 %2645  ;;  %v2358_v6 = vunpack.i.h.bf16 %v4379_v56  ;;  %v2357_v3 = vunpack.i.l.bf16 %v4379_v56 }
 0x15f   : > { %v2648_v14 = vunpack.i.h.bf16 %v2646_v4  ;;  %v2647_v32 = vunpack.i.l.bf16 %v2646_v4  ;;  %v1498_v34 = vsel %vm1478_vm8, %v3759_v11, %v2643_v63  ;;  %v1497_v55 = vsel %vm1478_vm8, %v3756_v46, %v2642_v51  ;;  %v2880_v4 = vld [vmem:[#allocation2 + $0x110] sm:$0xff] }
 0x160   : > { %v2651_v9 = vpop.permute.xlu0 %2650 }
 0x161   : > { %v2653_v53 = vunpack.i.h.bf16 %v2651_v9  ;;  %v2652_v43 = vunpack.i.l.bf16 %v2651_v9  ;;  %v1528_v59 = vsel %vm1511_vm9, %v1495_v23, %v2647_v32  ;;  %v1529_v30 = vsel %vm1511_vm9, %v1496_v48, %v2648_v14 }
 0x162   : > { %v2656_v26 = vpop.permute.xlu1 %2655  ;;  %v1403_v9 = vsel %vm289_vm3, %v2880_v4, %v2278_v29  ;;  %v4383_v4 = vld [vmem:[#allocation4_spill] sm:$0xff] }
 0x163   : > { %v2658_v42 = vunpack.i.h.bf16 %v2656_v26  ;;  %v2657_v52 = vunpack.i.l.bf16 %v2656_v26  ;;  %v1530_v37 = vsel %vm1511_vm9, %v1497_v55, %v2652_v43  ;;  %v1531_v35 = vsel %vm1511_vm9, %v1498_v34, %v2653_v53  ;;  %v2881_v26 = vld [vmem:[#allocation2 + $0x108] sm:$0xff] }
 0x164   : > { %v2661_v7 = vpop.permute.xlu0 %2660  ;;  %v1402_v57 = vsel %vm289_vm3, %v2881_v26, %v2277_v5  ;;  %v1436_v63 = vsel %vm1412_vm6, %v1403_v9, %v2358_v6  ;;  %v2288_v9 = vunpack.i.h.bf16 %v4383_v4  ;;  %v2287_v26 = vunpack.i.l.bf16 %v4383_v4 }
 0x165   : > { %v2663_v28 = vunpack.i.h.bf16 %v2661_v7  ;;  %v2662_v62 = vunpack.i.l.bf16 %v2661_v7  ;;  %v1561_v12 = vsel %vm1544_vm10, %v1528_v59, %v2657_v52  ;;  %v1562_v13 = vsel %vm1544_vm10, %v1529_v30, %v2658_v42 }
 0x166   : > { %v2666_v47 = vpop.permute.xlu1 %2665  ;;  %v1435_v51 = vsel %vm1412_vm6, %v1402_v57, %v2357_v3 }
 0x167   : > { %v2668_v36 = vunpack.i.h.bf16 %v2666_v47  ;;  %v2667_v45 = vunpack.i.l.bf16 %v2666_v47  ;;  %v1563_v44 = vsel %vm1544_vm10, %v1530_v37, %v2662_v62  ;;  %v1564_v46 = vsel %vm1544_vm10, %v1531_v35, %v2663_v28  ;;  %v4380_v62 = vld [vmem:[#allocation12_spill] sm:$0xff] }
 0x168   : > { %v2671_v1 = vpop.permute.xlu0 %2670 }
 0x169   : > { %v2673_v8 = vunpack.i.h.bf16 %v2671_v1  ;;  %v2672_v25 = vunpack.i.l.bf16 %v2671_v1  ;;  %v1594_v61 = vsel %vm1577_vm11, %v1561_v12, %v2667_v45  ;;  %v1595_v41 = vsel %vm1577_vm11, %v1562_v13, %v2668_v36  ;;  %v4381_v45 = vld [vmem:[#allocation13_spill] sm:$0xff] }
 0x16a   : > { %v2676_v27 = vpop.permute.xlu1 %2675 }
 0x16b   : > { %v2678_v10 = vunpack.i.h.bf16 %v2676_v27  ;;  %v2677_v11 = vunpack.i.l.bf16 %v2676_v27  ;;  %v1596_v49 = vsel %vm1577_vm11, %v1563_v44, %v2672_v25  ;;  %v1597_v40 = vsel %vm1577_vm11, %v1564_v46, %v2673_v8 }
 0x16c   : > { %v2681_v38 = vpop.permute.xlu0 %2680 }
 0x16d   : > { %v2683_v21 = vunpack.i.h.bf16 %v2681_v38  ;;  %v2682_v22 = vunpack.i.l.bf16 %v2681_v38  ;;  %v1627_v50 = vsel %vm1610_vm12, %v1594_v61, %v2677_v11  ;;  %v1628_v19 = vsel %vm1610_vm12, %v1595_v41, %v2678_v10 }
 0x16e   : > { %v2686_v16 = vpop.permute.xlu1 %2685  ;;  %v1651_v60 = vpack.c.bf16 %v1628_v19, %v1627_v50 }
 0x16f   : > { %v1629_v17 = vsel %vm1610_vm12, %v1596_v49, %v2682_v22  ;;  %v1630_v24 = vsel %vm1610_vm12, %v1597_v40, %v2683_v21  ;;  %v2688_v33 = vunpack.i.h.bf16 %v2686_v16  ;;  %v2687_v54 = vunpack.i.l.bf16 %v2686_v16 }
 0x170   : > { %v1652_v58 = vpack.c.bf16 %v1630_v24, %v1629_v17  ;;  %v2691_v15 = vpop.permute.xlu0 %2690  ;;  %2178 = vmatprep.mubr.msk.bf16.mxu1 %vm1679_vm13, %v1651_v60 }
 0x171   : > { %v2693_v39 = vunpack.i.h.bf16 %v2691_v15  ;;  %v2692_v7 = vunpack.i.l.bf16 %v2691_v15  ;;  %v1469_v23 = vsel %vm1445_vm7, %v1436_v63, %v2688_v33  ;;  %v1468_v48 = vsel %vm1445_vm7, %v1435_v51, %v2687_v54  ;;  %v4382_v33 = vld [vmem:[#allocation3_spill] sm:$0xff]  ;;  %v4385_v51 = vld [vmem:[#allocation6_spill] sm:$0xff] }
 0x172   : > { %2179 = vmatmul.mubr.msk.bf16.vlgmr.msra.gmra.mxu1 %vm1679_vm13, %v1652_v58  ;;  %v2696_v18 = vpop.permute.xlu1 %2695  ;;  %v2283_v54 = vunpack.i.h.bf16 %v4382_v33 }
 0x173   : > { %v2698_v32 = vunpack.i.h.bf16 %v2696_v18  ;;  %v2697_v53 = vunpack.i.l.bf16 %v2696_v18  ;;  %v1499_v36 = vsel %vm1478_vm8, %v4380_v62, %v2692_v7  ;;  %v1500_v1 = vsel %vm1478_vm8, %v4381_v45, %v2693_v39  ;;  %v4384_v39 = vld [vmem:[#allocation7_spill] sm:$0xff] }
 0x174   : > { %v2701_v2 = vpop.permute.xlu0 %2700  ;;  %v2363_v7 = vunpack.i.h.bf16 %v4384_v39  ;;  %v2362_v63 = vunpack.i.l.bf16 %v4384_v39 }
 0x175   : > { %v2703_v43 = vunpack.i.h.bf16 %v2701_v2  ;;  %v2702_v47 = vunpack.i.l.bf16 %v2701_v2  ;;  %v1501_v25 = vsel %vm1478_vm8, %v1468_v48, %v2697_v53  ;;  %v1502_v27 = vsel %vm1478_vm8, %v1469_v23, %v2698_v32  ;;  %v2882_v23 = vld [vmem:[#allocation2 + $0x128] sm:$0xff] }
 0x176   : > { %v2706_v31 = vpop.permute.xlu1 %2705  ;;  %v2367_v32 = vunpack.i.l.bf16 %v4385_v51  ;;  %v1405_v48 = vsel %vm289_vm3, %v2882_v23, %v2283_v54 }
 0x177   : > { %v2708_v42 = vunpack.i.h.bf16 %v2706_v31  ;;  %v2707_v52 = vunpack.i.l.bf16 %v2706_v31  ;;  %v1532_v12 = vsel %vm1511_vm9, %v1499_v36, %v2702_v47  ;;  %v1533_v13 = vsel %vm1511_vm9, %v1500_v1, %v2703_v43  ;;  %v2885_v36 = vld [vmem:[#allocation2 + $0x138] sm:$0xff] }
 0x178   : > { %v2711_v0 = vpop.permute.xlu0 %2710  ;;  %v1406_v45 = vsel %vm289_vm3, %v2885_v36, %v2287_v26 }
 0x179   : > { %v2713_v34 = vunpack.i.h.bf16 %v2711_v0  ;;  %v2712_v55 = vunpack.i.l.bf16 %v2711_v0  ;;  %v1534_v10 = vsel %vm1511_vm9, %v1501_v25, %v2707_v52  ;;  %v1535_v11 = vsel %vm1511_vm9, %v1502_v27, %v2708_v42  ;;  %v2883_v42 = vld [vmem:[#allocation2 + $0x120] sm:$0xff] }
 0x17a   : > { %v2716_v14 = vpop.permute.xlu1 %2715  ;;  %v2282_v0 = vunpack.i.l.bf16 %v4382_v33  ;;  %v1439_v25 = vsel %vm1412_vm6, %v1406_v45, %v2367_v32 }
 0x17b   : > { %v2718_v59 = vunpack.i.h.bf16 %v2716_v14  ;;  %v2717_v30 = vunpack.i.l.bf16 %v2716_v14  ;;  %v1565_v61 = vsel %vm1544_vm10, %v1532_v12, %v2712_v55  ;;  %v1566_v41 = vsel %vm1544_vm10, %v1533_v13, %v2713_v34 }
 0x17c   : > { %v2721_v28 = vpop.permute.xlu0 %2720  ;;  %v2368_v14 = vunpack.i.h.bf16 %v4385_v51  ;;  %v1404_v52 = vsel %vm289_vm3, %v2883_v42, %v2282_v0 }
 0x17d   : > { %v2723_v37 = vunpack.i.h.bf16 %v2721_v28  ;;  %v2722_v35 = vunpack.i.l.bf16 %v2721_v28  ;;  %v1567_v50 = vsel %vm1544_vm10, %v1534_v10, %v2717_v30  ;;  %v1568_v19 = vsel %vm1544_vm10, %v1535_v11, %v2718_v59  ;;  %v2884_v28 = vld [vmem:[#allocation2 + $0x140] sm:$0xff] }
 0x17e   : > { %v2726_v8 = vpop.permute.xlu1 %2725  ;;  %v1407_v62 = vsel %vm289_vm3, %v2884_v28, %v2288_v9  ;;  %v1437_v59 = vsel %vm1412_vm6, %v1404_v52, %v2362_v63  ;;  %v1438_v30 = vsel %vm1412_vm6, %v1405_v48, %v2363_v7 }
 0x17f   : > { %v2728_v44 = vunpack.i.h.bf16 %v2726_v8  ;;  %v2727_v46 = vunpack.i.l.bf16 %v2726_v8  ;;  %v1598_v49 = vsel %vm1577_vm11, %v1565_v61, %v2722_v35  ;;  %v1599_v40 = vsel %vm1577_vm11, %v1566_v41, %v2723_v37 }
 0x180   : > { %v2731_v38 = vpop.permute.xlu0 %2730  ;;  %v1440_v8 = vsel %vm1412_vm6, %v1407_v62, %v2368_v14 }
 0x181   : > { %v2733_v21 = vunpack.i.h.bf16 %v2731_v38  ;;  %v2732_v22 = vunpack.i.l.bf16 %v2731_v38  ;;  %v1600_v15 = vsel %vm1577_vm11, %v1567_v50, %v2727_v46  ;;  %v1601_v18 = vsel %vm1577_vm11, %v1568_v19, %v2728_v44 }
 0x182   : > { %v2736_v16 = vpop.permute.xlu1 %2735 }
 0x183   : > { %v1631_v60 = vsel %vm1610_vm12, %v1598_v49, %v2732_v22  ;;  %v1632_v17 = vsel %vm1610_vm12, %v1599_v40, %v2733_v21  ;;  %v2738_v24 = vunpack.i.h.bf16 %v2736_v16  ;;  %v2737_v58 = vunpack.i.l.bf16 %v2736_v16 }
 0x184   : > { %v1653_v2 = vpack.c.bf16 %v1632_v17, %v1631_v60  ;;  %v2741_v20 = vpop.permute.xlu0 %2740 }
 0x185   : > { %v1633_v29 = vsel %vm1610_vm12, %v1600_v15, %v2737_v58  ;;  %v1634_v5 = vsel %vm1610_vm12, %v1601_v18, %v2738_v24  ;;  %v2743_v53 = vunpack.i.h.bf16 %v2741_v20  ;;  %v2742_v43 = vunpack.i.l.bf16 %v2741_v20 }
 0x186   : > { %v1654_v56 = vpack.c.bf16 %v1634_v5, %v1633_v29  ;;  %2182 = vmatprep.mubr.msk.bf16.mxu1 %vm1679_vm13, %v1653_v2  ;;  %v2746_v6 = vpop.permute.xlu1 %2745 }
 0x187   : > { %v2748_v1 = vunpack.i.h.bf16 %v2746_v6  ;;  %v2747_v34 = vunpack.i.l.bf16 %v2746_v6  ;;  %v1470_v27 = vsel %vm1445_vm7, %v1437_v59, %v2742_v43  ;;  %v1471_v12 = vsel %vm1445_vm7, %v1438_v30, %v2743_v53 }
 0x188   : > { %v2751_v3 = vpop.permute.xlu0 %2750  ;;  %2183 = vmatmul.mubr.msk.bf16.gmra.mxu1 %vm1679_vm13, %v1654_v56 }
 0x189   : > { %v2753_v37 = vunpack.i.h.bf16 %v2751_v3  ;;  %v2752_v35 = vunpack.i.l.bf16 %v2751_v3  ;;  %v1473_v38 = vsel %vm1445_vm7, %v1440_v8, %v2748_v1  ;;  %v1472_v61 = vsel %vm1445_vm7, %v1439_v25, %v2747_v34  ;;  %v4386_v8 = vld [vmem:[#allocation8_spill] sm:$0xff] }
 0x18a   : > { %v2756_v31 = vpop.permute.xlu1 %2755 }
 0x18b   : > { %v2758_v10 = vunpack.i.h.bf16 %v2756_v31  ;;  %v2757_v11 = vunpack.i.l.bf16 %v2756_v31  ;;  %v1503_v50 = vsel %vm1478_vm8, %v1470_v27, %v2752_v35  ;;  %v1504_v19 = vsel %vm1478_vm8, %v1471_v12, %v2753_v37  ;;  %v4387_v27 = vld [vmem:[#allocation9_spill] sm:$0xff] }
 0x18c   : > { %v2761_v57 = vpop.permute.xlu0 %2760 }
 0x18d   : > { %v2763_v44 = vunpack.i.h.bf16 %v2761_v57  ;;  %v2762_v46 = vunpack.i.l.bf16 %v2761_v57  ;;  %v1505_v15 = vsel %vm1478_vm8, %v1472_v61, %v2757_v11  ;;  %v1506_v18 = vsel %vm1478_vm8, %v1473_v38, %v2758_v10  ;;  %v4388_v38 = vld [vmem:[#allocation10_spill] sm:$0xff] }
 0x18e   : > { %v2766_v47 = vpop.permute.xlu1 %2765 }
 0x18f   : > { %v2768_v41 = vunpack.i.h.bf16 %v2766_v47  ;;  %v2767_v21 = vunpack.i.l.bf16 %v2766_v47  ;;  %v1536_v2 = vsel %vm1511_vm9, %v1503_v50, %v2762_v46  ;;  %v1537_v20 = vsel %vm1511_vm9, %v1504_v19, %v2763_v44 }
 0x190   : > { %v2771_v55 = vpop.permute.xlu0 %2770 }
 0x191   : > { %v2773_v49 = vunpack.i.h.bf16 %v2771_v55  ;;  %v2772_v40 = vunpack.i.l.bf16 %v2771_v55  ;;  %v1538_v29 = vsel %vm1511_vm9, %v1505_v15, %v2767_v21  ;;  %v1539_v5 = vsel %vm1511_vm9, %v1506_v18, %v2768_v41  ;;  %v4389_v41 = vld [vmem:[#allocation11_spill] sm:$0xff] }
 0x192   : > { %v2776_v13 = vpop.permute.xlu1 %2775 }
 0x193   : > { %v2778_v16 = vunpack.i.h.bf16 %v2776_v13  ;;  %v2777_v60 = vunpack.i.l.bf16 %v2776_v13  ;;  %v1569_v31 = vsel %vm1544_vm10, %v1536_v2, %v2772_v40  ;;  %v1570_v33 = vsel %vm1544_vm10, %v1537_v20, %v2773_v49 }
 0x194   : > { %v2781_v22 = vpop.permute.xlu0 %2780 }
 0x195   : > { %v2783_v17 = vunpack.i.h.bf16 %v2781_v22  ;;  %v2782_v24 = vunpack.i.l.bf16 %v2781_v22  ;;  %v1571_v4 = vsel %vm1544_vm10, %v1538_v29, %v2777_v60  ;;  %v1572_v9 = vsel %vm1544_vm10, %v1539_v5, %v2778_v16 }
 0x196   : > { %v2786_v58 = vpop.permute.xlu1 %2785 }
 0x197   : > { %v2788_v56 = vunpack.i.h.bf16 %v2786_v58  ;;  %v2787_v6 = vunpack.i.l.bf16 %v2786_v58  ;;  %v1602_v26 = vsel %vm1577_vm11, %v1569_v31, %v2782_v24  ;;  %v1603_v57 = vsel %vm1577_vm11, %v1570_v33, %v2783_v17 }
 0x198   : > { %v2791_v3 = vpop.permute.xlu0 %2790 }
 0x199   : > { %v2793_v54 = vunpack.i.h.bf16 %v2791_v3  ;;  %v2792_v0 = vunpack.i.l.bf16 %v2791_v3  ;;  %v1604_v32 = vsel %vm1577_vm11, %v1571_v4, %v2787_v6  ;;  %v1605_v53 = vsel %vm1577_vm11, %v1572_v9, %v2788_v56 }
 0x19a   : > { %v2796_v39 = vpop.permute.xlu1 %2795 }
 0x19b   : > { %v1635_v7 = vsel %vm1610_vm12, %v1602_v26, %v2792_v0  ;;  %v1636_v63 = vsel %vm1610_vm12, %v1603_v57, %v2793_v54  ;;  %v2798_v51 = vunpack.i.h.bf16 %v2796_v39  ;;  %v2797_v14 = vunpack.i.l.bf16 %v2796_v39 }
 0x19c   : > { %v1655_v43 = vpack.c.bf16 %v1636_v63, %v1635_v7  ;;  %v2801_v47 = vpop.permute.xlu0 %2800 }
 0x19d   : > { %v1637_v23 = vsel %vm1610_vm12, %v1604_v32, %v2797_v14  ;;  %v1638_v48 = vsel %vm1610_vm12, %v1605_v53, %v2798_v51  ;;  %v2803_v45 = vunpack.i.h.bf16 %v2801_v47  ;;  %v2802_v1 = vunpack.i.l.bf16 %v2801_v47 }
 0x19e   : > { %v1656_v42 = vpack.c.bf16 %v1638_v48, %v1637_v23  ;;  %2186 = vmatprep.mubr.msk.bf16.mxu1 %vm1679_vm13, %v1655_v43  ;;  %v2806_v52 = vpop.permute.xlu1 %2805 }
 0x19f   : > { %v2808_v55 = vunpack.i.h.bf16 %v2806_v52  ;;  %v2807_v59 = vunpack.i.l.bf16 %v2806_v52  ;;  %v1474_v25 = vsel %vm1445_vm7, %v4386_v8, %v2802_v1  ;;  %v1475_v12 = vsel %vm1445_vm7, %v4387_v27, %v2803_v45 }
 0x1a0   : > { %v2811_v28 = vpop.permute.xlu0 %2810  ;;  %2187 = vmatmul.mubr.msk.bf16.gmra.mxu1 %vm1679_vm13, %v1656_v42 }
 0x1a1   : > { %v2813_v37 = vunpack.i.h.bf16 %v2811_v28  ;;  %v2812_v35 = vunpack.i.l.bf16 %v2811_v28  ;;  %v1477_v61 = vsel %vm1445_vm7, %v4388_v38, %v2808_v55  ;;  %v1476_v21 = vsel %vm1445_vm7, %v4389_v41, %v2807_v59 }
 0x1a2   : > { %v2816_v62 = vpop.permute.xlu1 %2815 }
 0x1a3   : > { %v2818_v10 = vunpack.i.h.bf16 %v2816_v62  ;;  %v2817_v11 = vunpack.i.l.bf16 %v2816_v62  ;;  %v1507_v49 = vsel %vm1478_vm8, %v1474_v25, %v2812_v35  ;;  %v1508_v40 = vsel %vm1478_vm8, %v1475_v12, %v2813_v37 }
 0x1a4   : > { %v2821_v36 = vpop.permute.xlu0 %2820 }
 0x1a5   : > { %v2823_v44 = vunpack.i.h.bf16 %v2821_v36  ;;  %v2822_v46 = vunpack.i.l.bf16 %v2821_v36  ;;  %v1509_v2 = vsel %vm1478_vm8, %v1476_v21, %v2817_v11  ;;  %v1510_v20 = vsel %vm1478_vm8, %v1477_v61, %v2818_v10 }
 0x1a6   : > { %v2826_v34 = vpop.permute.xlu1 %2825 }
 0x1a7   : > { %v2828_v22 = vunpack.i.h.bf16 %v2826_v34  ;;  %v2827_v50 = vunpack.i.l.bf16 %v2826_v34  ;;  %v1540_v29 = vsel %vm1511_vm9, %v1507_v49, %v2822_v46  ;;  %v1541_v5 = vsel %vm1511_vm9, %v1508_v40, %v2823_v44 }
 0x1a8   : > { %v2831_v30 = vpop.permute.xlu0 %2830 }
 0x1a9   : > { %v2833_v16 = vunpack.i.h.bf16 %v2831_v30  ;;  %v2832_v60 = vunpack.i.l.bf16 %v2831_v30  ;;  %v1542_v56 = vsel %vm1511_vm9, %v1509_v2, %v2827_v50  ;;  %v1543_v6 = vsel %vm1511_vm9, %v1510_v20, %v2828_v22 }
 0x1aa   : > { %v2836_v13 = vpop.permute.xlu1 %2835 }
 0x1ab   : > { %v2838_v17 = vunpack.i.h.bf16 %v2836_v13  ;;  %v2837_v24 = vunpack.i.l.bf16 %v2836_v13  ;;  %v1573_v54 = vsel %vm1544_vm10, %v1540_v29, %v2832_v60  ;;  %v1574_v0 = vsel %vm1544_vm10, %v1541_v5, %v2833_v16 }
 0x1ac   : > { %v2841_v19 = vpop.permute.xlu0 %2840 }
 0x1ad   : > { %v2843_v58 = vunpack.i.h.bf16 %v2841_v19  ;;  %v2842_v15 = vunpack.i.l.bf16 %v2841_v19  ;;  %v1575_v26 = vsel %vm1544_vm10, %v1542_v56, %v2837_v24  ;;  %v1576_v57 = vsel %vm1544_vm10, %v1543_v6, %v2838_v17 }
 0x1ae   : > { %v2846_v18 = vpop.permute.xlu1 %2845 }
 0x1af   : > { %v2848_v3 = vunpack.i.h.bf16 %v2846_v18  ;;  %v2847_v31 = vunpack.i.l.bf16 %v2846_v18  ;;  %v1606_v39 = vsel %vm1577_vm11, %v1573_v54, %v2842_v15  ;;  %v1607_v7 = vsel %vm1577_vm11, %v1574_v0, %v2843_v58 }
 0x1b0   : > { %v2851_v33 = vpop.permute.xlu0 %2850 }
 0x1b1   : > { %v2853_v4 = vunpack.i.h.bf16 %v2851_v33  ;;  %v2852_v9 = vunpack.i.l.bf16 %v2851_v33  ;;  %v1608_v43 = vsel %vm1577_vm11, %v1575_v26, %v2847_v31  ;;  %v1609_v47 = vsel %vm1577_vm11, %v1576_v57, %v2848_v3 }
 0x1b2   : > { %v2856_v63 = vpop.permute.xlu1 %2855 }
 0x1b3   : > { %v1639_v51 = vsel %vm1610_vm12, %v1606_v39, %v2852_v9  ;;  %v1640_v14 = vsel %vm1610_vm12, %v1607_v7, %v2853_v4  ;;  %v2858_v32 = vunpack.i.h.bf16 %v2856_v63  ;;  %v2857_v53 = vunpack.i.l.bf16 %v2856_v63 }
 0x1b4   : > { %v1657_v23 = vpack.c.bf16 %v1640_v14, %v1639_v51 }
 0x1b5   : > { %v1641_v48 = vsel %vm1610_vm12, %v1608_v43, %v2857_v53  ;;  %v1642_v42 = vsel %vm1610_vm12, %v1609_v47, %v2858_v32 }
 0x1b6   : > { %v1658_v52 = vpack.c.bf16 %v1642_v42, %v1641_v48  ;;  %2190 = vmatprep.mubr.msk.bf16.mxu1 %vm1679_vm13, %v1657_v23 }
 0x1b8   : > { %2191 = vmatmul.mubr.msk.bf16.gmra.mxu1 %vm1679_vm13, %v1658_v52 }
 0x1e2   : > { %v2164_v28 = vpop.f32.mrf.mxu0 }
 0x1e3   : > { %1895 = vst [vmem:[%s2944_s24 + $0x10] sm:$0xff] %v2164_v28  ;;  %v1968_v59 = vmul.f32 %v2164_v28, %v2164_v28 }
 0x1e4   : > { %v1766_v62 = vpop.f32.mrf.mxu0 }
 0x1e5   : > { %1893 = vst [vmem:[%s2944_s24] sm:$0xff] %v1766_v62  ;;  %v1966_v1 = vmul.f32 %v1766_v62, %v1766_v62 }
 0x1e6   : > { %v2165_v36 = vpop.f32.mrf.mxu0 }
 0x1e7   : > { %1896 = vst [vmem:[%s2944_s24 + $0x18] sm:$0xff] %v2165_v36  ;;  %v1969_v35 = vmul.f32 %v2165_v36, %v2165_v36 }
 0x1e8   : > { %v1769_v45 = vpop.f32.mrf.mxu0 }
 0x1e9   : > { %1894 = vst [vmem:[%s2944_s24 + $0x8] sm:$0xff] %v1769_v45  ;;  %v1926_v34 = vadd.f32 %v1769_v45, %v1766_v62  ;;  %v1967_v55 = vmul.f32 %v1769_v45, %v1769_v45 }
 0x1eb   : > { %v1927_v30 = vadd.f32 %v2164_v28, %v1926_v34  ;;  %v1998_v37 = vadd.f32 %v1967_v55, %v1966_v1 }
 0x1ed   : > { %v1999_v8 = vadd.f32 %v1998_v37, %v1968_v59  ;;  %v1928_v25 = vadd.f32 %v2165_v36, %v1927_v30 }
 0x1ef   : > { %v2000_v27 = vadd.f32 %v1999_v8, %v1969_v35 }
 0x1f6   : > { %v2168_v12 = vpop.f32.mrf.mxu0 }
 0x1f7   : > { %1899 = vst [vmem:[%s2944_s24 + $0x30] sm:$0xff] %v2168_v12  ;;  %v1972_v21 = vmul.f32 %v2168_v12, %v2168_v12 }
 0x1f8   : > { %v1782_v13 = vpop.f32.mrf.mxu0 }
 0x1f9   : > { %1897 = vst [vmem:[%s2944_s24 + $0x20] sm:$0xff] %v1782_v13  ;;  %v1929_v10 = vadd.f32 %v1928_v25, %v1782_v13  ;;  %v1970_v11 = vmul.f32 %v1782_v13, %v1782_v13 }
 0x1fa   : > { %v2169_v44 = vpop.f32.mrf.mxu0 }
 0x1fb   : > { %v2001_v46 = vadd.f32 %v2000_v27, %v1970_v11  ;;  %1900 = vst [vmem:[%s2944_s24 + $0x38] sm:$0xff] %v2169_v44  ;;  %v1973_v19 = vmul.f32 %v2169_v44, %v2169_v44 }
 0x1fc   : > { %v1785_v38 = vpop.f32.mrf.mxu0 }
 0x1fd   : > { %1898 = vst [vmem:[%s2944_s24 + $0x28] sm:$0xff] %v1785_v38  ;;  %v1930_v61 = vadd.f32 %v1929_v10, %v1785_v38  ;;  %v1971_v41 = vmul.f32 %v1785_v38, %v1785_v38 }
 0x1ff   : > { %v1931_v22 = vadd.f32 %v2168_v12, %v1930_v61  ;;  %v2002_v50 = vadd.f32 %v2001_v46, %v1971_v41 }
 0x201   : > { %v2003_v49 = vadd.f32 %v2002_v50, %v1972_v21  ;;  %v1932_v40 = vadd.f32 %v2169_v44, %v1931_v22 }
 0x203   : > { %v2004_v16 = vadd.f32 %v2003_v49, %v1973_v19 }
 0x20a   : > { %v2172_v60 = vpop.f32.mrf.mxu0 }
 0x20b   : > { %1903 = vst [vmem:[%s2944_s24 + $0x50] sm:$0xff] %v2172_v60  ;;  %v1976_v5 = vmul.f32 %v2172_v60, %v2172_v60 }
 0x20c   : > { %v1798_v17 = vpop.f32.mrf.mxu0 }
 0x20d   : > { %1901 = vst [vmem:[%s2944_s24 + $0x40] sm:$0xff] %v1798_v17  ;;  %v1933_v24 = vadd.f32 %v1932_v40, %v1798_v17  ;;  %v1974_v58 = vmul.f32 %v1798_v17, %v1798_v17 }
 0x20e   : > { %v2173_v15 = vpop.f32.mrf.mxu0 }
 0x20f   : > { %v2005_v18 = vadd.f32 %v2004_v16, %v1974_v58  ;;  %1904 = vst [vmem:[%s2944_s24 + $0x58] sm:$0xff] %v2173_v15  ;;  %v1977_v3 = vmul.f32 %v2173_v15, %v2173_v15 }
 0x210   : > { %v1801_v2 = vpop.f32.mrf.mxu0 }
 0x211   : > { %1902 = vst [vmem:[%s2944_s24 + $0x48] sm:$0xff] %v1801_v2  ;;  %v1934_v20 = vadd.f32 %v1933_v24, %v1801_v2  ;;  %v1975_v29 = vmul.f32 %v1801_v2, %v1801_v2 }
 0x213   : > { %v1935_v56 = vadd.f32 %v2172_v60, %v1934_v20  ;;  %v2006_v6 = vadd.f32 %v2005_v18, %v1975_v29 }
 0x215   : > { %v2007_v31 = vadd.f32 %v2006_v6, %v1976_v5  ;;  %v1936_v33 = vadd.f32 %v2173_v15, %v1935_v56 }
 0x217   : > { %v2008_v54 = vadd.f32 %v2007_v31, %v1977_v3 }
 0x21e   : > { %v2176_v0 = vpop.f32.mrf.mxu0 }
 0x21f   : > { %1907 = vst [vmem:[%s2944_s24 + $0x70] sm:$0xff] %v2176_v0  ;;  %v1980_v14 = vmul.f32 %v2176_v0, %v2176_v0 }
 0x220   : > { %v1814_v4 = vpop.f32.mrf.mxu0 }
 0x221   : > { %1905 = vst [vmem:[%s2944_s24 + $0x60] sm:$0xff] %v1814_v4  ;;  %v1978_v9 = vmul.f32 %v1814_v4, %v1814_v4  ;;  %v1937_v57 = vadd.f32 %v1936_v33, %v1814_v4 }
 0x222   : > { %v2177_v26 = vpop.f32.mrf.mxu0 }
 0x223   : > { %1908 = vst [vmem:[%s2944_s24 + $0x78] sm:$0xff] %v2177_v26  ;;  %v2009_v7 = vadd.f32 %v2008_v54, %v1978_v9  ;;  %v1981_v43 = vmul.f32 %v2177_v26, %v2177_v26 }
 0x224   : > { %v1817_v39 = vpop.f32.mrf.mxu0 }
 0x225   : > { %1906 = vst [vmem:[%s2944_s24 + $0x68] sm:$0xff] %v1817_v39  ;;  %v1938_v63 = vadd.f32 %v1937_v57, %v1817_v39  ;;  %v1979_v51 = vmul.f32 %v1817_v39, %v1817_v39 }
 0x227   : > { %v1939_v32 = vadd.f32 %v2176_v0, %v1938_v63  ;;  %v2010_v53 = vadd.f32 %v2009_v7, %v1979_v51 }
 0x229   : > { %v2011_v47 = vadd.f32 %v2010_v53, %v1980_v14  ;;  %v1940_v23 = vadd.f32 %v2177_v26, %v1939_v32 }
 0x22b   : > { %v2012_v48 = vadd.f32 %v2011_v47, %v1981_v43 }
 0x232   : > { %v2180_v42 = vpop.f32.mrf.mxu1 }
 0x233   : > { %1911 = vst [vmem:[%s2944_s24 + $0x90] sm:$0xff] %v2180_v42  ;;  %v1984_v25 = vmul.f32 %v2180_v42, %v2180_v42 }
 0x234   : > { %v1830_v52 = vpop.f32.mrf.mxu1 }
 0x235   : > { %1909 = vst [vmem:[%s2944_s24 + $0x80] sm:$0xff] %v1830_v52  ;;  %v1982_v55 = vmul.f32 %v1830_v52, %v1830_v52  ;;  %v1941_v59 = vadd.f32 %v1940_v23, %v1830_v52 }
 0x236   : > { %v2181_v28 = vpop.f32.mrf.mxu1 }
 0x237   : > { %1912 = vst [vmem:[%s2944_s24 + $0x98] sm:$0xff] %v2181_v28  ;;  %v2013_v37 = vadd.f32 %v2012_v48, %v1982_v55  ;;  %v1985_v11 = vmul.f32 %v2181_v28, %v2181_v28 }
 0x238   : > { %v1833_v62 = vpop.f32.mrf.mxu1 }
 0x239   : > { %1910 = vst [vmem:[%s2944_s24 + $0x88] sm:$0xff] %v1833_v62  ;;  %v1983_v30 = vmul.f32 %v1833_v62, %v1833_v62  ;;  %v1942_v35 = vadd.f32 %v1941_v59, %v1833_v62  ;;  %v1925_v59 = vld [vmem:[%s4287_s3] sm:$0x1] }
 0x23b   : > { %v2014_v8 = vadd.f32 %v2013_v37, %v1983_v30  ;;  %v1943_v27 = vadd.f32 %v2180_v42, %v1942_v35  ;;  %v1965_v35 = vld [vmem:[%s4288_s4] sm:$0x1] }
 0x23d   : > { %v2015_v13 = vadd.f32 %v2014_v8, %v1984_v25  ;;  %v1944_v44 = vadd.f32 %v2181_v28, %v1943_v27 }
 0x23f   : > { %v2016_v41 = vadd.f32 %v2015_v13, %v1985_v11 }
 0x248   : > { %v2184_v36 = vpop.f32.mrf.mxu1 }
 0x249   : > { %1915 = vst [vmem:[%s2944_s24 + $0xb0] sm:$0xff] %v2184_v36  ;;  %v1988_v40 = vmul.f32 %v2184_v36, %v2184_v36 }
 0x24a   : > { %v1846_v45 = vpop.f32.mrf.mxu1 }
 0x24b   : > { %1913 = vst [vmem:[%s2944_s24 + $0xa0] sm:$0xff] %v1846_v45  ;;  %v1986_v46 = vmul.f32 %v1846_v45, %v1846_v45  ;;  %v1945_v61 = vadd.f32 %v1944_v44, %v1846_v45 }
 0x24c   : > { %v2185_v1 = vpop.f32.mrf.mxu1 }
 0x24d   : > { %1916 = vst [vmem:[%s2944_s24 + $0xb8] sm:$0xff] %v2185_v1  ;;  %v2017_v50 = vadd.f32 %v2016_v41, %v1986_v46  ;;  %v1989_v17 = vmul.f32 %v2185_v1, %v2185_v1 }
 0x24e   : > { %v1849_v34 = vpop.f32.mrf.mxu1 }
 0x24f   : > { %1914 = vst [vmem:[%s2944_s24 + $0xa8] sm:$0xff] %v1849_v34  ;;  %v1987_v21 = vmul.f32 %v1849_v34, %v1849_v34  ;;  %v1946_v19 = vadd.f32 %v1945_v61, %v1849_v34 }
 0x251   : > { %v2018_v49 = vadd.f32 %v2017_v50, %v1987_v21  ;;  %v1947_v16 = vadd.f32 %v2184_v36, %v1946_v19 }
 0x253   : > { %v2019_v60 = vadd.f32 %v2018_v49, %v1988_v40  ;;  %v1948_v24 = vadd.f32 %v2185_v1, %v1947_v16 }
 0x255   : > { %v2020_v18 = vadd.f32 %v2019_v60, %v1989_v17 }
 0x260   : > { %v2188_v12 = vpop.f32.mrf.mxu1 }
 0x261   : > { %1919 = vst [vmem:[%s2944_s24 + $0xd0] sm:$0xff] %v2188_v12  ;;  %v1992_v56 = vmul.f32 %v2188_v12, %v2188_v12 }
 0x262   : > { %v1862_v10 = vpop.f32.mrf.mxu1 }
 0x263   : > { %1917 = vst [vmem:[%s2944_s24 + $0xc0] sm:$0xff] %v1862_v10  ;;  %v1990_v58 = vmul.f32 %v1862_v10, %v1862_v10  ;;  %v1949_v15 = vadd.f32 %v1948_v24, %v1862_v10 }
 0x264   : > { %v2189_v38 = vpop.f32.mrf.mxu1 }
 0x265   : > { %1920 = vst [vmem:[%s2944_s24 + $0xd8] sm:$0xff] %v2189_v38  ;;  %v2021_v20 = vadd.f32 %v2020_v18, %v1990_v58  ;;  %v1993_v54 = vmul.f32 %v2189_v38, %v2189_v38 }
 0x266   : > { %v1865_v22 = vpop.f32.mrf.mxu1 }
 0x267   : > { %1918 = vst [vmem:[%s2944_s24 + $0xc8] sm:$0xff] %v1865_v22  ;;  %v1991_v2 = vmul.f32 %v1865_v22, %v1865_v22  ;;  %v1950_v29 = vadd.f32 %v1949_v15, %v1865_v22 }
 0x269   : > { %v2022_v5 = vadd.f32 %v2021_v20, %v1991_v2  ;;  %v1951_v6 = vadd.f32 %v2188_v12, %v1950_v29 }
 0x26b   : > { %v2023_v31 = vadd.f32 %v2022_v5, %v1992_v56  ;;  %v1952_v0 = vadd.f32 %v2189_v38, %v1951_v6 }
 0x26d   : > { %v2024_v57 = vadd.f32 %v2023_v31, %v1993_v54 }
 0x278   : > { %v2192_v3 = vpop.f32.mrf.mxu1 }
 0x279   : > { %1923 = vst [vmem:[%s2944_s24 + $0xf0] sm:$0xff] %v2192_v3  ;;  %v1996_v14 = vmul.f32 %v2192_v3, %v2192_v3 }
 0x27a   : > { %v1878_v33 = vpop.f32.mrf.mxu1 }
 0x27b   : > { %1921 = vst [vmem:[%s2944_s24 + $0xe0] sm:$0xff] %v1878_v33  ;;  %v1994_v4 = vmul.f32 %v1878_v33, %v1878_v33  ;;  %v1953_v26 = vadd.f32 %v1952_v0, %v1878_v33 }
 0x27c   : > { %v2193_v9 = vpop.f32.mrf.mxu1 }
 0x27d   : > { %1924 = vst [vmem:[%s2944_s24 + $0xf8] sm:$0xff] %v2193_v9  ;;  %v2025_v7 = vadd.f32 %v2024_v57, %v1994_v4  ;;  %v1997_v43 = vmul.f32 %v2193_v9, %v2193_v9 }
 0x27e   : > { %v1881_v39 = vpop.f32.mrf.mxu1 }
 0x27f   : > { %1922 = vst [vmem:[%s2944_s24 + $0xe8] sm:$0xff] %v1881_v39  ;;  %v1954_v63 = vadd.f32 %v1953_v26, %v1881_v39  ;;  %v1995_v51 = vmul.f32 %v1881_v39, %v1881_v39 }
 0x281   : > { %v1955_v32 = vadd.f32 %v2192_v3, %v1954_v63  ;;  %v2026_v53 = vadd.f32 %v2025_v7, %v1995_v51 }
 0x283   : > { %v1956_v47 = vadd.f32 %v2193_v9, %v1955_v32  ;;  %v2027_v23 = vadd.f32 %v2026_v53, %v1996_v14 }
 0x285   : > { %v1957_v48 = vrot.slane %v1956_v47, 4  ;;  %v2028_v42 = vadd.f32 %v2027_v23, %v1997_v43 }
 0x287   : > { %v1958_v52 = vadd.f32 %v1957_v48, %v1956_v47  ;;  %v2029_v28 = vrot.slane %v2028_v42, 4 }
 0x289   : > { %v1959_v62 = vrot.slane %v1958_v52, 2  ;;  %v2030_v36 = vadd.f32 %v2029_v28, %v2028_v42 }
 0x28b   : > { %v1960_v45 = vadd.f32 %v1959_v62, %v1958_v52  ;;  %v2031_v1 = vrot.slane %v2030_v36, 2 }
 0x28d   : > { %v1961_v34 = vrot.slane %v1960_v45, 1  ;;  %v2032_v55 = vadd.f32 %v2031_v1, %v2030_v36 }
 0x28f   : > { %v1962_v30 = vadd.f32 %v1961_v34, %v1960_v45  ;;  %v2033_v37 = vrot.slane %v2032_v55, 1 }
 0x291   : > { %v1963_v8 = vadd.f32 %v1962_v30, %v1925_v59  ;;  %v2034_v25 = vadd.f32 %v2033_v37, %v2032_v55 }
 0x293   : > { %1964 = vst [vmem:[%s4287_s3] sm:$0x1] %v1963_v8  ;;  %v2035_v27 = vadd.f32 %v2034_v25, %v1965_v35 }
 0x295   : > { %2036 = vst [vmem:[%s4288_s4] sm:$0x1] %v2035_v27 }
 0x296 PF: > { %s15_s15 = sadd.s32 1, %s2892_s15  }
 0x297   : > { %p12_p5 = scmp.ge.s32.totalorder %s15_s15, 4  }
 0x299   :  { %14 = sbr.rel (!%p12_p5) target bundleno = 1 (0x1), region = 79 }

</bundles_post_ra>
